<compile_context>
chip_gen: v7x
topology: tpu7x:2x2x1
jax: 0.10.0
libtpu: 0.0.40
codegen_flags: <defaults>
</compile_context>

<pallas_src>
import functools

import jax
import jax.numpy as jnp
from jax.experimental import pallas as pl
from jax.experimental.pallas import tpu as pltpu


def _cross_attn_kernel(xq_ref, xkv_ref, wq_ref, wkv_ref, wout_ref, bout_ref,
                       o_ref, *, heads, dim_head):
    hidden = heads * dim_head

    xq = xq_ref[0].astype(jnp.bfloat16)     # (Cx, tq)  query-tile slice of x
    xkv = xkv_ref[0].astype(jnp.bfloat16)   # (Cx, N)   full sequence for K/V

    # 1x1 convs in channels-first layout == plain matmuls on the MXU.
    # wq already carries the softmax scale; only the live q/k/v rows exist.
    q = jnp.dot(wq_ref[...], xq, preferred_element_type=jnp.float32)      # (H, tq)
    kv = jnp.dot(wkv_ref[...], xkv, preferred_element_type=jnp.float32)   # (2H, N)

    qh = q.reshape(heads, dim_head, q.shape[-1]).astype(jnp.bfloat16)              # (h, d, tq)
    kh = kv[:hidden].reshape(heads, dim_head, kv.shape[-1]).astype(jnp.bfloat16)   # (h, d, N)
    vh = kv[hidden:].reshape(heads, dim_head, kv.shape[-1]).astype(jnp.bfloat16)   # (h, d, N)

    # sim[h, i, j] = sum_d q[h, d, i] * k[h, d, j]   (batched over heads)
    sim = jnp.einsum("hdi,hdj->hij", qh, kh,
                     preferred_element_type=jnp.float32)        # (h, tq, N) f32

    # Numerically-stable softmax with deferred normalization (f32 VPU/EUP path).
    sim = sim - jnp.max(sim, axis=-1, keepdims=True)
    p = jnp.exp(sim)                                            # (h, tq, N)
    denom = jnp.sum(p, axis=-1)                                 # (h, tq)

    # out[h, d, i] = sum_j v[h, d, j] * p[h, i, j]   (unnormalized)
    out = jnp.einsum("hdj,hij->hdi", vh, p.astype(jnp.bfloat16),
                     preferred_element_type=jnp.float32)        # (h, d, tq)
    out = out * pl.reciprocal(denom, approx=True)[:, None, :]

    # rearrange 'b h n d -> b (h d) n': channel index = h * dim_head + d.
    out = out.reshape(hidden, out.shape[-1]).astype(jnp.bfloat16)   # (H, tq)

    # to_outx: 1x1 conv with bias (bias kept in f32).
    o = jnp.dot(wout_ref[...], out, preferred_element_type=jnp.float32)  # (Cout, tq)
    o_ref[0] = (o + bout_ref[...]).astype(o_ref.dtype)


def _pick_query_tile(n):
    for cand in (512, 256, 128):
        if n >= cand and n % cand == 0:
            return cand
    return n


def cross_attention_pallas(x_ncl, y_ncl, params, *, heads, dim_head, tq=None):
    """x_ncl: (B, dimx, N), y_ncl: (B, dimy, Ny)  ->  (B, dimx_out, N).

    Params use the PyTorch Conv1d layout (kernel-size-1 dim squeezed):
      wqkvx: (3H, dimx)   wqkvy: (3H, dimy)   wout: (dimx_out, H)   bout: (dimx_out,)
    """
    del y_ncl  # unused by the reference forward (to_qkvy is applied to x).

    B, Cx, N = x_ncl.shape
    hidden = heads * dim_head
    scale = dim_head ** (-0.5)

    wqkvx = params["wqkvx"]
    wqkvy = params["wqkvy"]
    wout = params["wout"]
    bout = params["bout"]
    Cout = wout.shape[0]

    if wqkvy.shape[1] != Cx:
        raise ValueError(
            f"dimy ({wqkvy.shape[1]}) must equal dimx ({Cx}): the reference "
            "forward applies to_qkvy to x.")

    if tq is None:
        tq = _pick_query_tile(N)
    if N % tq != 0 or (tq != N and tq % 128 != 0):
        raise ValueError(
            f"tq={tq} must divide N={N} and be a multiple of 128 (or equal N).")

    # Fused / pre-scaled weights (trace-time, tiny): only the q rows of
    # to_qkvx and the k/v rows of to_qkvy are live; bf16 for the MXU.
    wq = (wqkvx[:hidden] * scale).astype(jnp.bfloat16)      # (H, Cx), scale folded in
    wkv = wqkvy[hidden:].astype(jnp.bfloat16)               # (2H, Cx) = [k-rows | v-rows]
    wout_b = wout.astype(jnp.bfloat16)                      # (Cout, H)
    bout_c = bout.reshape(Cout, 1).astype(jnp.float32)      # (Cout, 1), broadcasts over N

    kernel = functools.partial(_cross_attn_kernel, heads=heads, dim_head=dim_head)

    # TODO(synk): for very large N, additionally stream K/V tiles with an
    # online-softmax accumulator instead of holding the (heads, tq, N)
    # probability block in VMEM at once.
    return pl.pallas_call(
        kernel,
        out_shape=jax.ShapeDtypeStruct((B, Cout, N), jnp.float32),
        grid_spec=pltpu.PrefetchScalarGridSpec(
            num_scalar_prefetch=0,
            grid=(B, N // tq),
            in_specs=[
                pl.BlockSpec((1, Cx, tq), lambda b, qi: (b, 0, qi)),    # x -> Q slice
                pl.BlockSpec((1, Cx, N), lambda b, qi: (b, 0, 0)),      # x -> K/V (full seq)
                pl.BlockSpec((hidden, Cx), lambda b, qi: (0, 0)),       # wq (scaled)
                pl.BlockSpec((2 * hidden, Cx), lambda b, qi: (0, 0)),   # wkv
                pl.BlockSpec((Cout, hidden), lambda b, qi: (0, 0)),     # wout
                pl.BlockSpec((Cout, 1), lambda b, qi: (0, 0)),          # bout
            ],
            out_specs=pl.BlockSpec((1, Cout, tq), lambda b, qi: (b, 0, qi)),
        ),
        compiler_params=pltpu.CompilerParams(
            dimension_semantics=("parallel", "parallel"),
            vmem_limit_bytes=32 * 1024 * 1024,
        ),
    )(x_ncl, x_ncl, wq, wkv, wout_b, bout_c)


def cross_attention_ref(x_ncl, params, *, heads, dim_head):
    """Pure-JAX f32 mirror of the PyTorch forward (for verification)."""
    scale = dim_head ** (-0.5)
    hidden = heads * dim_head
    B, Cx, N = x_ncl.shape
    qkvx = jnp.einsum("oc,bcn->bon", params["wqkvx"], x_ncl)   # (B, 3H, N)
    qkvy = jnp.einsum("oc,bcn->bon", params["wqkvy"], x_ncl)   # applied to x (reference bug)
    qx = qkvx[:, :hidden] * scale
    ky = qkvy[:, hidden:2 * hidden]
    vy = qkvy[:, 2 * hidden:]

    def split(t):  # (B, H, N) -> (B, h, d, N)
        return t.reshape(B, heads, dim_head, N)

    q, k, v = split(qx), split(ky), split(vy)
    sim = jnp.einsum("bhdi,bhdj->bhij", q, k)
    attn = jax.nn.softmax(sim, axis=-1)
    out = jnp.einsum("bhij,bhdj->bhid", attn, v)                  # (B, h, N, d)
    out = jnp.transpose(out, (0, 1, 3, 2)).reshape(B, hidden, N)  # 'b h n d -> b (h d) n'
    o = jnp.einsum("oc,bcn->bon", params["wout"], out)
    return o + params["bout"][None, :, None]


if __name__ == "__main__":
    # Small, module-consistent shapes; N is a multiple of 128 so the
    # query-tile grid axis is actually exercised (2 tiles per batch element).
    B = 2
    dimx = dimy = 8
    dimx_out = 8
    N = 256
    Ny = 256
    heads = 4
    dim_head = 32
    hidden = heads * dim_head

    key = jax.random.PRNGKey(0)
    k1, k2, k3, k4, k5, k6 = jax.random.split(key, 6)

    # Deterministic parameters in PyTorch Conv1d (out_ch, in_ch) layout.
    params = {
        "wqkvx": 0.1 * jax.random.normal(k1, (3 * hidden, dimx), jnp.float32),
        "wqkvy": 0.1 * jax.random.normal(k2, (3 * hidden, dimy), jnp.float32),
        "wout": 0.1 * jax.random.normal(k3, (dimx_out, hidden), jnp.float32),
        "bout": 0.1 * jax.random.normal(k4, (dimx_out,), jnp.float32),
    }

    x = jax.random.normal(k5, (B, dimx, N), jnp.float32)    # PyTorch NCL layout
    y = jax.random.normal(k6, (B, dimy, Ny), jnp.float32)   # unused by forward (reference bug)

    out = cross_attention_pallas(x, y, params, heads=heads, dim_head=dim_head, tq=128)
    out = jax.block_until_ready(out)

    ref = cross_attention_ref(x, params, heads=heads, dim_head=dim_head)
    assert out.shape == (B, dimx_out, N)
    max_err = jnp.max(jnp.abs(out - ref))
    # bf16 MXU operands + approx reciprocal -> loosened tolerance vs f32 reference.
    assert jnp.allclose(out, ref, atol=3e-2, rtol=3e-2), f"max abs err {max_err}"

    print("KERNEL_OK")
</pallas_src>

<mosaic_0001>
module attributes {stable_mosaic.version = 11 : i64} {
  func.func @_cross_attn_kernel(%arg0: i32, %arg1: i32, %arg2: memref<1x8x128xf32, #tpu.memory_space<vmem>>, %arg3: memref<1x8x256xf32, #tpu.memory_space<vmem>>, %arg4: memref<128x8xbf16, #tpu.memory_space<vmem>>, %arg5: memref<256x8xbf16, #tpu.memory_space<vmem>>, %arg6: memref<8x128xbf16, #tpu.memory_space<vmem>>, %arg7: memref<8x1xf32, #tpu.memory_space<vmem>>, %arg8: memref<1x8x128xf32, #tpu.memory_space<vmem>>) attributes {dimension_semantics = [#tpu.dimension_semantics<parallel>, #tpu.dimension_semantics<parallel>], iteration_bounds = array<i64: 2, 2>, scalar_prefetch = 0 : i64, scratch_operands = 0 : i64, tpu.core_type = #tpu.core_type<tc>, window_params = [{transform_indices = @transform_0, window_bounds = array<i64: 1, 8, 128>}, {transform_indices = @transform_1, window_bounds = array<i64: 1, 8, 256>}, {pipeline_mode = #tpu.pipeline_mode<synchronous>, transform_indices = @transform_2, window_bounds = array<i64: 128, 8>}, {pipeline_mode = #tpu.pipeline_mode<synchronous>, transform_indices = @transform_3, window_bounds = array<i64: 256, 8>}, {pipeline_mode = #tpu.pipeline_mode<synchronous>, transform_indices = @transform_4, window_bounds = array<i64: 8, 128>}, {pipeline_mode = #tpu.pipeline_mode<synchronous>, transform_indices = @transform_5, window_bounds = array<i64: 8, 1>}, {transform_indices = @transform_6, window_bounds = array<i64: 1, 8, 128>}]} {
    %c0 = arith.constant 0 : index
    %c0_0 = arith.constant 0 : index
    %c0_1 = arith.constant 0 : index
    %0 = vector.load %arg2[%c0, %c0_0, %c0_1] : memref<1x8x128xf32, #tpu.memory_space<vmem>>, vector<1x8x128xf32>
    %1 = vector.shape_cast %0 : vector<1x8x128xf32> to vector<8x128xf32>
    %2 = arith.truncf %1 : vector<8x128xf32> to vector<8x128xbf16>
    %c0_2 = arith.constant 0 : index
    %c0_3 = arith.constant 0 : index
    %c0_4 = arith.constant 0 : index
    %3 = vector.load %arg3[%c0_2, %c0_3, %c0_4] : memref<1x8x256xf32, #tpu.memory_space<vmem>>, vector<1x8x256xf32>
    %4 = vector.shape_cast %3 : vector<1x8x256xf32> to vector<8x256xf32>
    %5 = arith.truncf %4 : vector<8x256xf32> to vector<8x256xbf16>
    %c0_5 = arith.constant 0 : index
    %c0_6 = arith.constant 0 : index
    %6 = vector.load %arg4[%c0_5, %c0_6] : memref<128x8xbf16, #tpu.memory_space<vmem>>, vector<128x8xbf16>
    %cst = arith.constant dense<0.000000e+00> : vector<128x128xf32>
    %7 = tpu.matmul %6, %2, %cst {dimension_numbers = #tpu.dot_dimension_numbers<[1], [0], [0], [1], [0, 0, 1, 1], [], []>} : vector<128x8xbf16>, vector<8x128xbf16>, vector<128x128xf32> -> vector<128x128xf32>
    %c0_7 = arith.constant 0 : index
    %c0_8 = arith.constant 0 : index
    %8 = vector.load %arg5[%c0_7, %c0_8] : memref<256x8xbf16, #tpu.memory_space<vmem>>, vector<256x8xbf16>
    %cst_9 = arith.constant dense<0.000000e+00> : vector<256x256xf32>
    %9 = tpu.matmul %8, %5, %cst_9 {dimension_numbers = #tpu.dot_dimension_numbers<[1], [0], [0], [1], [0, 0, 1, 1], [], []>} : vector<256x8xbf16>, vector<8x256xbf16>, vector<256x256xf32> -> vector<256x256xf32>
    %10 = vector.shape_cast %7 : vector<128x128xf32> to vector<4x32x128xf32>
    %11 = arith.truncf %10 : vector<4x32x128xf32> to vector<4x32x128xbf16>
    %12 = vector.extract_strided_slice %9 {offsets = [0, 0], sizes = [128, 256], strides = [1, 1]} : vector<256x256xf32> to vector<128x256xf32>
    %13 = vector.shape_cast %12 : vector<128x256xf32> to vector<4x32x256xf32>
    %14 = arith.truncf %13 : vector<4x32x256xf32> to vector<4x32x256xbf16>
    %15 = vector.extract_strided_slice %9 {offsets = [128, 0], sizes = [128, 256], strides = [1, 1]} : vector<256x256xf32> to vector<128x256xf32>
    %16 = vector.shape_cast %15 : vector<128x256xf32> to vector<4x32x256xf32>
    %17 = arith.truncf %16 : vector<4x32x256xf32> to vector<4x32x256xbf16>
    "tpu.trace_start"() <{level = 10 : i32, message = "hdi,hdj->hij"}> : () -> ()
    %cst_10 = arith.constant dense<0.000000e+00> : vector<4x128x256xf32>
    %18 = tpu.matmul %11, %14, %cst_10 {dimension_numbers = #tpu.dot_dimension_numbers<[1], [1], [2], [2], [0, 0, 0, 2, 1, 2], [0], [0]>} : vector<4x32x128xbf16>, vector<4x32x256xbf16>, vector<4x128x256xf32> -> vector<4x128x256xf32>
    "tpu.trace_stop"() : () -> ()
    %cst_11 = arith.constant dense<0xFF800000> : vector<4x128xf32>
    %19 = vector.multi_reduction <maximumf>, %18, %cst_11 [2] : vector<4x128x256xf32> to vector<4x128xf32>
    %20 = vector.shape_cast %19 : vector<4x128xf32> to vector<4x128x1xf32>
    %21 = vector.broadcast %20 : vector<4x128x1xf32> to vector<4x128x256xf32>
    %22 = arith.subf %18, %21 : vector<4x128x256xf32>
    %23 = math.exp %22 : vector<4x128x256xf32>
    %cst_12 = arith.constant dense<0.000000e+00> : vector<4x128xf32>
    %24 = vector.multi_reduction <add>, %23, %cst_12 [2] : vector<4x128x256xf32> to vector<4x128xf32>
    %25 = arith.truncf %23 : vector<4x128x256xf32> to vector<4x128x256xbf16>
    "tpu.trace_start"() <{level = 10 : i32, message = "hdj,hij->hdi"}> : () -> ()
    %cst_13 = arith.constant dense<0.000000e+00> : vector<4x32x128xf32>
    %26 = tpu.matmul %17, %25, %cst_13 {dimension_numbers = #tpu.dot_dimension_numbers<[2], [2], [1], [1], [0, 0, 0, 1, 1, 1], [0], [0]>} : vector<4x32x256xbf16>, vector<4x128x256xbf16>, vector<4x32x128xf32> -> vector<4x32x128xf32>
    "tpu.trace_stop"() : () -> ()
    %27 = tpu.reciprocal %24 {approx = true} : vector<4x128xf32> -> vector<4x128xf32>
    %28 = vector.shape_cast %27 : vector<4x128xf32> to vector<4x1x128xf32>
    %29 = vector.broadcast %28 : vector<4x1x128xf32> to vector<4x32x128xf32>
    %30 = arith.mulf %26, %29 : vector<4x32x128xf32>
    %31 = vector.shape_cast %30 : vector<4x32x128xf32> to vector<128x128xf32>
    %32 = arith.truncf %31 : vector<128x128xf32> to vector<128x128xbf16>
    %c0_14 = arith.constant 0 : index
    %c0_15 = arith.constant 0 : index
    %33 = vector.load %arg6[%c0_14, %c0_15] : memref<8x128xbf16, #tpu.memory_space<vmem>>, vector<8x128xbf16>
    %cst_16 = arith.constant dense<0.000000e+00> : vector<8x128xf32>
    %34 = tpu.matmul %33, %32, %cst_16 {dimension_numbers = #tpu.dot_dimension_numbers<[1], [0], [0], [1], [0, 0, 1, 1], [], []>} : vector<8x128xbf16>, vector<128x128xbf16>, vector<8x128xf32> -> vector<8x128xf32>
    %c0_17 = arith.constant 0 : index
    %c0_18 = arith.constant 0 : index
    %35 = vector.load %arg7[%c0_17, %c0_18] : memref<8x1xf32, #tpu.memory_space<vmem>>, vector<8x1xf32>
    %36 = vector.broadcast %35 : vector<8x1xf32> to vector<8x128xf32>
    %37 = arith.addf %34, %36 : vector<8x128xf32>
    %c0_19 = arith.constant 0 : index
    %c0_20 = arith.constant 0 : index
    %c0_21 = arith.constant 0 : index
    %38 = vector.load %arg8[%c0_19, %c0_20, %c0_21] : memref<1x8x128xf32, #tpu.memory_space<vmem>>, vector<1x8x128xf32>
    %39 = vector.shape_cast %38 : vector<1x8x128xf32> to vector<8x128xf32>
    %40 = vector.shape_cast %37 : vector<8x128xf32> to vector<1x8x128xf32>
    tpu.vector_store %arg8[%c0_19, %c0_20, %c0_21], %40 {strides = array<i32>} : memref<1x8x128xf32, #tpu.memory_space<vmem>>, vector<1x8x128xf32>,
    return
  }
  func.func @transform_0(%arg0: i32, %arg1: i32) -> (i32, i32, i32) {
    %c0_i32 = arith.constant 0 : i32
    %c0_i32_0 = arith.constant 0 : i32
    return %arg0, %c0_i32, %arg1 : i32, i32, i32
  }
  func.func @transform_1(%arg0: i32, %arg1: i32) -> (i32, i32, i32) {
    %c0_i32 = arith.constant 0 : i32
    %c0_i32_0 = arith.constant 0 : i32
    %c0_i32_1 = arith.constant 0 : i32
    return %arg0, %c0_i32, %c0_i32_0 : i32, i32, i32
  }
  func.func @transform_2(%arg0: i32, %arg1: i32) -> (i32, i32) {
    %c0_i32 = arith.constant 0 : i32
    %c0_i32_0 = arith.constant 0 : i32
    %c0_i32_1 = arith.constant 0 : i32
    return %c0_i32, %c0_i32_0 : i32, i32
  }
  func.func @transform_3(%arg0: i32, %arg1: i32) -> (i32, i32) {
    %c0_i32 = arith.constant 0 : i32
    %c0_i32_0 = arith.constant 0 : i32
    %c0_i32_1 = arith.constant 0 : i32
    return %c0_i32, %c0_i32_0 : i32, i32
  }
  func.func @transform_4(%arg0: i32, %arg1: i32) -> (i32, i32) {
    %c0_i32 = arith.constant 0 : i32
    %c0_i32_0 = arith.constant 0 : i32
    %c0_i32_1 = arith.constant 0 : i32
    return %c0_i32, %c0_i32_0 : i32, i32
  }
  func.func @transform_5(%arg0: i32, %arg1: i32) -> (i32, i32) {
    %c0_i32 = arith.constant 0 : i32
    %c0_i32_0 = arith.constant 0 : i32
    %c0_i32_1 = arith.constant 0 : i32
    return %c0_i32, %c0_i32_0 : i32, i32
  }
  func.func @transform_6(%arg0: i32, %arg1: i32) -> (i32, i32, i32) {
    %c0_i32 = arith.constant 0 : i32
    %c0_i32_0 = arith.constant 0 : i32
    return %arg0, %c0_i32, %arg1 : i32, i32, i32
  }
}

</mosaic_0001>

<bundles_post_ra>
// kernel: tpu_custom_call.1
= control target key start
LH: loop header
LB: loop body
LE: loop exit
PB: predicated region body
PF: predicated region fallthrough
CT: control target
= control target key end

     0   :  { %11 = vsyncpa [#allocation3], 0  ;;  %s5552_s0 = inlined_call_operand.vmem [shape: f32[2,8,256], index: 0, kind: input, shape index: {}]   ;;  %s5553_s1 = inlined_call_operand.vmem [shape: f32[2,8,256], index: 1, kind: input, shape index: {}]   ;;  %s5554_s2 = inlined_call_operand.vmem [shape: bf16[128,8], index: 2, kind: input, shape index: {}]   ;;  %s5555_s3 = inlined_call_operand.vmem [shape: bf16[256,8], index: 3, kind: input, shape index: {}]   ;;  %s5556_s4 = inlined_call_operand.vmem [shape: bf16[8,128], index: 4, kind: input, shape index: {}]   ;;  %s5557_s5 = inlined_call_operand.vmem [shape: f32[8,1], index: 5, kind: input, shape index: {}]   ;;  %s5558_s6 = inlined_call_operand.hbm [shape: f32[2,8,256], index: 6, kind: output, shape index: {}]  }
   0x1   :  { %13 = vsyncpa [#allocation3 + $0x1], 0  ;;  %s3984_s21 = smov 0   ;;  %s3986_s22 = smov 0  }
   0x2   :  { %s3988_s23 = smov 0   ;;  %s3990_s24 = smov 0  }
   0x3   :  { %s3992_s25 = smov 0   ;;  %s3994_s26 = smov 0  }
   0x4   :  { %s3996_s27 = smov 0   ;;  %s3998_s28 = smov 0  }
   0x5 LB: > { %s3212_s29 = sadd.s32 4294967295, %s3943_s28   ;;  %s3213_s30 = sadd.s32 4294967294, %s3943_s28   ;;  %s3943_s28 = sphi %s3998_s28, %s19_s28   ;;  %s3939_s27 = sphi %s3996_s27, %s5940_s27   ;;  %s3935_s26 = sphi %s3994_s26, %s5939_s26   ;;  %s3931_s25 = sphi %s3992_s25, %s5938_s25   ;;  %s3927_s24 = sphi %s3990_s24, %s5937_s24   ;;  %s3923_s23 = sphi %s3988_s23, %s5936_s23   ;;  %s3919_s22 = sphi %s3986_s22, %s5935_s22   ;;  %s3915_s21 = sphi %s3984_s21, %s5934_s21  }
   0x6   : > { %s28_s7 = sadd.s32 1, %s3935_s26  ;;  %s31_s8 = sadd.s32 1, %s3939_s27 }
   0x7   : > { %p29_p0 = scmp.ge.s32.totalorder %s28_s7, 2  ;;  %p188_p1 = scmp.ne.s32.totalorder %s3923_s23, %s3919_s22 }
   0x8   : > { %p189_p2 = scmp.eq.s32.totalorder %s3212_s29, 3  ;;  %p194_p5 = scmp.ne.s32.totalorder %s3919_s22, %s3915_s21 }
   0x9   : > { %s5942_s7 = smov (%p29_p0, %s28_s7), 0  ;;  %s5944_s8 = smov (!%p29_p0, %s31_s8), %s3939_s27 }
   0xa   : > { %s174_s9 = ssub.s32 %s3935_s26, %s5942_s7  ;;  %p4035_p3 = por %p189_p2, %p188_p1 }
   0xb   : > { %p33_p4 = scmp.ge.s32.totalorder %s5944_s8, 2  ;;  %p195_p6 = scmp.eq.s32.totalorder %s3213_s30, 3 }
   0xc   : > { %p3216_p7 = scmp.ge.s32.totalorder %s3943_s28, 1  ;;  %p244_p9 = scmp.lt.s32.totalorder %s3943_s28, 5 }
   0xd   : > { %s5946_s8 = smov (%p33_p4, %s5944_s8), 0  ;;  %p4044_p8 = por %p195_p6, %p194_p5 }
   0xe   : > { %5669 = sst [smem:[#allocation5_spill]] %s5946_s8  ;;  %s173_s12 = ssub.s32 %s3939_s27, %s5946_s8 }
   0xf   : > { %s178_s13 = sadd.s32 1, %s3923_s23  ;;  %s175_s14 = sor.u32 %s174_s9, %s173_s12 }
  0x10   : > { %p245_p10 = pnand %p3216_p7, %p244_p9  ;;  %p176_p11 = scmp.eq.s32.totalorder %s175_s14, 0 }
  0x12   : > { %s4053_s15 = scalar_select %p176_p11, %s3923_s23, %s178_s13  }
  0x13   : > { %248 = sbr.rel (%p245_p10) target bundleno = 1391 (0x56f), region = 44 }
  0x1a   : > { %p282_p12 = scmp.lt.s32.totalorder %s3931_s25, 1  ;;  %p284_p13 = scmp.lt.s32.totalorder %s3927_s24, 1  ;;  %v3441_v0 = vld [vmem:[%s5554_s2] sm:$0xff]   ;;  %vm358_vm0 = vcmask 64512   ;;  %v3945_v1 = vmov 0   ;;  %vm383_vm1 = vcmask 1043456  }
  0x1b   : > { %3329 = vmatprep.mubr.msk.bf16.mxu0 %vm358_vm0, %v3441_v0  ;;  %682 = vmatprep.mubr.bf16.mxu1 %v3945_v1  ;;  %v3443_v9 = vld [vmem:[%s5555_s3] sm:$0xff]   ;;  %v3442_v11 = vld [vmem:[%s5554_s2 + $0x8] sm:$0xff]   ;;  %v3444_v12 = vld [vmem:[%s5554_s2 + $0x10] sm:$0xff]   ;;  %vm899_vm2 = vcmask 261120   ;;  %vm2663_vm3 = vcmask 130112   ;;  %vm2670_vm4 = vcmask 195712  }
  0x1c   : > { %s283_s18 = scalar_select %p282_p12, %s3931_s25, 1  ;;  %v3445_v13 = vld [vmem:[%s5554_s2 + $0x18] sm:$0xff]   ;;  %v3446_v14 = vld [vmem:[%s5555_s3 + $0x8] sm:$0xff]   ;;  %v3450_v15 = vld [vmem:[%s5554_s2 + $0x20] sm:$0xff]   ;;  %vm2677_vm5 = vcmask 261312   ;;  %vm2684_vm6 = vcmask 326912  }
  0x1d   : > { %s285_s19 = scalar_select %p284_p13, %s3927_s24, 1  ;;  %v3447_v16 = vld [vmem:[%s5555_s3 + $0x10] sm:$0xff]   ;;  %v3451_v17 = vld [vmem:[%s5554_s2 + $0x28] sm:$0xff]   ;;  %v3448_v19 = vld [vmem:[%s5555_s3 + $0x18] sm:$0xff]   ;;  %vm3947_vm7 = vmmov 0   ;;  %vm2691_vm8 = vcmask 392512  }
  0x1e   : > { %s3218_s20 = sshll.u32 %s283_s18, 1  ;;  %s3308_s29 = sshll.u32 %s283_s18, 4  ;;  %v3452_v18 = vld [vmem:[%s5554_s2 + $0x30] sm:$0xff]   ;;  %v3453_v20 = vld [vmem:[%s5554_s2 + $0x38] sm:$0xff]   ;;  %v3449_v21 = vld [vmem:[%s5555_s3 + $0x20] sm:$0xff]   ;;  %vm2698_vm9 = vcmask 458112  }
  0x1f   : > { %s287_s30 = sadd.s32 %s3218_s20, %s285_s19  ;;  %s294_s13 = scalar_lea.vmem %s5553_s1, %s3308_s29  ;;  %v3454_v22 = vld [vmem:[%s5555_s3 + $0x28] sm:$0xff]   ;;  %v3455_v23 = vld [vmem:[%s5555_s3 + $0x30] sm:$0xff]   ;;  %v3456_v24 = vld [vmem:[%s5555_s3 + $0x38] sm:$0xff]   ;;  %vm2705_vm10 = vcmask 523712   ;;  %vm2712_vm11 = vcmask 589312   ;;  %vm2719_vm12 = vcmask 654912  }
  0x20   : > { %s3219_s14 = sshll.u32 %s287_s30, 3  ;;  %v299_v2 = vld [vmem:[%s294_s13 + $0x8] sm:$0xff]  ;;  %v298_v3 = vld [vmem:[%s294_s13] sm:$0xff]  ;;  %vm2726_vm13 = vcmask 720512   ;;  %vm2733_vm14 = vcmask 786112   ;;  %vm2740_vm15 = vcmask 851712  }
  0x21   : > { %s289_s8 = scalar_lea.vmem %s5552_s0, %s3219_s14  ;;  %v301_v4 = vpack.c.bf16 %v299_v2, %v299_v2  ;;  %v300_v5 = vpack.c.bf16 %v298_v3, %v298_v3  ;;  %s279_s20 = sand.u32 1, %s3919_s22  }
  0x22   : > { %v296_v6 = vld [vmem:[%s289_s8] sm:$0xff]  ;;  %s3217_s29 = sshll.u32 %s279_s20, 3  ;;  %s3304_s30 = sshll.u32 %s3931_s25, 1 }
  0x23   : > { %v297_v7 = vpack.c.bf16 %v296_v6, %v296_v6  ;;  %3254 = vmatprep.subr.msk.bf16.mxu1 %vm383_vm1, %v301_v4  ;;  %v645_v8 = vsel %vm383_vm1, %v300_v5, 0  ;;  %s3118_s9 = sadd.s32 %s3927_s24, %s3304_s30  ;;  %s281_s12 = scalar_lea.vmem [#allocation2], %s3217_s29 }
  0x24   : > { %651 = vmatpush1.bf16.msra.mxu1 %v645_v8  ;;  %s3305_s8 = sshll.u32 %s3118_s9, 7  ;;  %s3122_s13 = sshll.u32 %s281_s12, 4  ;;  %s5501_s13 = int_to_ptr.vmem [resolvable:$true] %s3122_s13 }
  0x25   : > { %3365 = vmatprep.subr.msk.bf16.mxu0 %vm383_vm1, %v297_v7  ;;  %v385_v10 = vsel %vm383_vm1, %v297_v7, 0  ;;  %vm2754_vm1 = vcmask 982912   ;;  %s5499_s17 = scalar_lea.hbm %s5558_s6, %s3305_s8  ;;  %s3107_s24 = scalar_lea.sflag [#allocation3], %s279_s20 }
  0x26   : > { %3328 = vmatpush3.bf16.msra.mxu0 %v385_v10  ;;  %v3457_v10 = vld [vmem:[%s5555_s3 + $0x40] sm:$0xff]   ;;  %s3849_s25 = scalar_lea.vmem %s5501_s13, 128  ;;  %s3948_s18 = smov [#allocation2]  }
  0x27   : > { %3255 = vmatmul.mubr.msk.bf16.vlgmr.msra.gmra.mrb[0].mxu1 %vm358_vm0, %v3443_v9  ;;  %p3850_p0 = scmp.ne.s32.totalorder %s5501_s13, %s3849_s25  ;;  %s3853_s19 = sshll.u32 %s3948_s18, 4  ;;  %s3854_s19 = int_to_ptr.vmem [resolvable:$false] %s3853_s19 }
  0x28   : > { %692 = vmatprep.mubr.bf16.mxu1 %v3945_v1  ;;  %s3855_s29 = scalar_lea.vmem %s3854_s19, 256  ;;  %p3856_p4 = scmp.lt.s32.totalorder %s5501_s13, %s3854_s19 }
  0x29   : > { %3330 = vmatmul.mubr.msk.bf16.vlgmr.msra.gmra.mrb[0].mxu0 %vm358_vm0, %v3442_v11  ;;  %p3851_p1 = pnand %p3850_p0, %p4035_p3  ;;  %p3857_p5 = scmp.lt.s32.totalorder %s3855_s29, %s3849_s25 }
  0x2a   : > { %3333 = vmatprep.mubr.msk.bf16.mxu0 %vm358_vm0, %v3444_v12 }
  0x2b   : > { %p3852_p2 = pneg %p3851_p1  ;;  %p3858_p6 = por %p3857_p5, %p3856_p4 }
  0x2d   : > { %p3859_p7 = pnand %p3858_p6, %p3852_p2 }
  0x2f   : > { %3256 = vmatmul.mubr.msk.bf16.gmra.mrb[4].mxu1 %vm358_vm0, %v3446_v14 }
  0x30   : > { %702 = vmatprep.mubr.bf16.mxu1 %v3945_v1 }
  0x31   : > { %3334 = vmatmul.mubr.msk.bf16.gmra.mrb[4].mxu0 %vm358_vm0, %v3445_v13 }
  0x32   : > { %3337 = vmatprep.mubr.msk.bf16.mxu0 %vm358_vm0, %v3450_v15 }
  0x37   : > { %3257 = vmatmul.mubr.msk.bf16.gmra.mrb[8].mxu1 %vm358_vm0, %v3447_v16 }
  0x38   : > { %712 = vmatprep.mubr.bf16.mxu1 %v3945_v1 }
  0x39   : > { %3338 = vmatmul.mubr.msk.bf16.gmra.mrb[8].mxu0 %vm358_vm0, %v3451_v17  ;;  %v3458_v17 = vld [vmem:[%s5555_s3 + $0x48] sm:$0xff]  }
  0x3a   : > { %3341 = vmatprep.mubr.msk.bf16.mxu0 %vm358_vm0, %v3452_v18 }
  0x3f   : > { %3258 = vmatmul.mubr.msk.bf16.gmra.mrb[12].mxu1 %vm358_vm0, %v3448_v19 }
  0x40   : > { %722 = vmatprep.mubr.bf16.mxu1 %v3945_v1 }
  0x41   : > { %3342 = vmatmul.mubr.msk.bf16.gmra.mrb[12].mxu0 %vm358_vm0, %v3453_v20 }
  0x42   : > { %956 = vmatprep.mubr.bf16.mxu0 %v3945_v1 }
  0x47   : > { %3259 = vmatmul.mubr.msk.bf16.gmra.mrb[16].mxu1 %vm358_vm0, %v3449_v21 }
  0x48   : > { %732 = vmatprep.mubr.bf16.mxu1 %v3945_v1 }
  0x4f   : > { %3260 = vmatmul.mubr.msk.bf16.gmra.mrb[20].mxu1 %vm358_vm0, %v3454_v22 }
  0x50   : > { %742 = vmatprep.mubr.bf16.mxu1 %v3945_v1 }
  0x57   : > { %3261 = vmatmul.mubr.msk.bf16.gmra.mrb[24].mxu1 %vm358_vm0, %v3455_v23 }
  0x58   : > { %752 = vmatprep.mubr.bf16.mxu1 %v3945_v1 }
  0x5f   : > { %3262 = vmatmul.mubr.msk.bf16.gmra.mrb[28].mxu1 %vm358_vm0, %v3456_v24  ;;  %v3459_v24 = vld [vmem:[%s5555_s3 + $0x50] sm:$0xff]  }
  0x60   : > { %762 = vmatprep.mubr.bf16.mxu1 %v3945_v1 }
  0x67   : > { %3263 = vmatmul.mubr.msk.bf16.gmra.mrb[32].mxu1 %vm358_vm0, %v3457_v10 }
  0x68   : > { %772 = vmatprep.mubr.bf16.mxu1 %v3945_v1 }
  0x6f   : > { %3264 = vmatmul.mubr.msk.bf16.gmra.mrb[36].mxu1 %vm358_vm0, %v3458_v17 }
  0x70   : > { %782 = vmatprep.mubr.bf16.mxu1 %v3945_v1 }
  0x77   : > { %3265 = vmatmul.mubr.msk.bf16.gmra.mrb[40].mxu1 %vm358_vm0, %v3459_v24 }
  0x78   : > { %792 = vmatprep.mubr.bf16.mxu1 %v3945_v1 }
  0xfa   : > { %v684_v25 = vpop.f32.mrb[0].mxu1 }
  0xfb   : > { %v686_v26 = vpop.f32.mrb[1].mxu1 }
  0xfc   : > { %v3331_v27 = vpop.f32.mrb[0].mxu0  ;;  %v688_v28 = vpop.f32.mrb[2].mxu1 }
  0xfd   : > { %v421_v29 = vpop.f32.mrb[1].mxu0  ;;  %v851_v30 = vpack.c.bf16 %v688_v28, %v684_v25  ;;  %v690_v31 = vpop.f32.mrb[3].mxu1 }
  0xfe   : > { %v3332_v32 = vpop.f32.mrb[2].mxu0  ;;  %v852_v33 = vpack.c.bf16 %v690_v31, %v686_v26  ;;  %v3460_v31 = vld [vmem:[%s5555_s3 + $0x58] sm:$0xff]  }
  0xff   : > { %v844_v34 = vpack.c.bf16 %v3332_v32, %v3331_v27  ;;  %v424_v35 = vpop.f32.mrb[3].mxu0  ;;  %3266 = vmatmul.mubr.msk.bf16.gmra.mrb[44].mxu1 %vm358_vm0, %v3460_v31  ;;  %v3461_v32 = vld [vmem:[%s5555_s3 + $0x60] sm:$0xff]  }
 0x100   : > { %v843_v36 = vpack.c.bf16 %v424_v35, %v421_v29  ;;  %924 = vmatprep.subr.bf16.mxu0 %v852_v33  ;;  %802 = vmatprep.mubr.bf16.mxu1 %v3945_v1 }
 0x101   : > { %925 = vmatpush1.bf16.msra.mxu0 %v851_v30 }
 0x102   : > { %883 = vxpose.xlu0.c.b16.start [1/2] (short) %v843_v36, 128  ;;  %v694_v37 = vpop.f32.mrb[4].mxu1 }
 0x103   : > { %v696_v38 = vpop.f32.mrb[5].mxu1 }
 0x104   : > { %v3335_v39 = vpop.f32.mrb[4].mxu0  ;;  %v698_v40 = vpop.f32.mrb[6].mxu1 }
 0x105   : > { %v437_v41 = vpop.f32.mrb[5].mxu0  ;;  %v853_v42 = vpack.c.bf16 %v698_v40, %v694_v37  ;;  %v700_v43 = vpop.f32.mrb[7].mxu1  ;;  %v3463_v40 = vld [vmem:[%s5555_s3 + $0x70] sm:$0xff]  }
 0x106   : > { %884 = vxpose.xlu0.c.b16.end [2/2] (short) %v844_v34, 128  ;;  %v3336_v44 = vpop.f32.mrb[6].mxu0  ;;  %v854_v45 = vpack.c.bf16 %v700_v43, %v696_v38 }
 0x107   : > { %v846_v46 = vpack.c.bf16 %v3336_v44, %v3335_v39  ;;  %v440_v47 = vpop.f32.mrb[7].mxu0  ;;  %3267 = vmatmul.mubr.msk.bf16.gmra.mrb[48].mxu1 %vm358_vm0, %v3461_v32  ;;  %v3462_v39 = vld [vmem:[%s5555_s3 + $0x68] sm:$0xff]  }
 0x108   : > { %v845_v48 = vpack.c.bf16 %v440_v47, %v437_v41  ;;  %926 = vmatprep.subr.bf16.mxu0 %v854_v45  ;;  %812 = vmatprep.mubr.bf16.mxu1 %v3945_v1  ;;  %v3464_v41 = vld [vmem:[%s5555_s3 + $0x78] sm:$0xff]  }
 0x109   : > { %927 = vmatpush1.bf16.msra.mxu0 %v853_v42 }
 0x10a   : > { %1037 = vxpose.xlu1.c.b16.start [1/2] (short) %v845_v48, 128  ;;  %v4139_v49 = vpop.f32.mrb[8].mxu1 }
 0x10b   : > { %v706_v50 = vpop.f32.mrb[9].mxu1 }
 0x10c   : > { %v4141_v51 = vpop.f32.mrb[10].mxu1  ;;  %v3339_v52 = vpop.f32.mrb[8].mxu0 }
 0x10d   : > { %v855_v53 = vpack.c.bf16 %v4141_v51, %v4139_v49  ;;  %v710_v54 = vpop.f32.mrb[11].mxu1  ;;  %v453_v55 = vpop.f32.mrb[9].mxu0 }
 0x10e   : > { %1038 = vxpose.xlu1.c.b16.end [2/2] (short) %v846_v46, 128  ;;  %v856_v56 = vpack.c.bf16 %v710_v54, %v706_v50  ;;  %v3340_v57 = vpop.f32.mrb[10].mxu0 }
 0x10f   : > { %v848_v58 = vpack.c.bf16 %v3340_v57, %v3339_v52  ;;  %v456_v59 = vpop.f32.mrb[11].mxu0  ;;  %3268 = vmatmul.mubr.msk.bf16.gmra.mrb[52].mxu1 %vm358_vm0, %v3462_v39 }
 0x110   : > { %1077 = vmatprep.subr.bf16.mxu0 %v856_v56  ;;  %v847_v60 = vpack.c.bf16 %v456_v59, %v453_v55  ;;  %822 = vmatprep.mubr.bf16.mxu1 %v3945_v1 }
 0x112   : > { %v4145_v61 = vpop.f32.mrb[12].mxu1 }
 0x113   : > { %v4147_v62 = vpop.f32.mrb[13].mxu1 }
 0x114   : > { %v4149_v63 = vpop.f32.mrb[14].mxu1  ;;  %v3343_v0 = vpop.f32.mrb[12].mxu0 }
 0x115   : > { %v857_v2 = vpack.c.bf16 %v4149_v63, %v4145_v61  ;;  %v4153_v3 = vpop.f32.mrb[15].mxu1  ;;  %v469_v4 = vpop.f32.mrb[13].mxu0 }
 0x116   : > { %v858_v5 = vpack.c.bf16 %v4153_v3, %v4147_v62  ;;  %v3344_v6 = vpop.f32.mrb[14].mxu0 }
 0x117   : > { %v850_v7 = vpack.c.bf16 %v3344_v6, %v3343_v0  ;;  %v472_v8 = vpop.f32.mrb[15].mxu0  ;;  %3269 = vmatmul.mubr.msk.bf16.gmra.mrb[56].mxu1 %vm358_vm0, %v3463_v40 }
 0x118   : > { %v849_v9 = vpack.c.bf16 %v472_v8, %v469_v4  ;;  %832 = vmatprep.mubr.bf16.mxu1 %v3945_v1 }
 0x11a   : > { %v724_v11 = vpop.f32.mrb[16].mxu1 }
 0x11b   : > { %v726_v12 = vpop.f32.mrb[17].mxu1 }
 0x11c   : > { %v728_v13 = vpop.f32.mrb[18].mxu1 }
 0x11d   : > { %v859_v14 = vpack.c.bf16 %v728_v13, %v724_v11  ;;  %v730_v15 = vpop.f32.mrb[19].mxu1 }
 0x11e   : > { %v860_v16 = vpack.c.bf16 %v730_v15, %v726_v12 }
 0x11f   : > { %1190 = vxpose.xlu0.c.b16.start [1/2] (short) %v847_v60, 128  ;;  %3270 = vmatmul.mubr.msk.bf16.gmra.mrb[60].mxu1 %vm358_vm0, %v3464_v41  ;;  %vm2747_vm0 = vcmask 917312  }
 0x120   : > { %1230 = vmatprep.subr.bf16.mxu1 %v860_v16  ;;  %1262 = vmatprep.mubr.bf16.mxu1 %v3945_v1 }
 0x121   : > { %1231 = vmatpush1.bf16.msra.mxu1 %v859_v14 }
 0x122   : > { %v734_v18 = vpop.f32.mrb[20].mxu1 }
 0x123   : > { %1191 = vxpose.xlu0.c.b16.end [2/2] (short) %v848_v58, 128  ;;  %v736_v19 = vpop.f32.mrb[21].mxu1 }
 0x124   : > { %v738_v20 = vpop.f32.mrb[22].mxu1 }
 0x125   : > { %v861_v21 = vpack.c.bf16 %v738_v20, %v734_v18  ;;  %v740_v22 = vpop.f32.mrb[23].mxu1 }
 0x126   : > { %v862_v23 = vpack.c.bf16 %v740_v22, %v736_v19 }
 0x127   : > { %1343 = vxpose.xlu1.c.b16.start [1/2] (short) %v849_v9, 128 }
 0x128   : > { %1232 = vmatprep.subr.bf16.mxu1 %v862_v23 }
 0x129   : > { %1233 = vmatpush1.bf16.msra.mxu1 %v861_v21 }
 0x12a   : > { %v4170_v25 = vpop.f32.mrb[24].mxu1 }
 0x12b   : > { %1344 = vxpose.xlu1.c.b16.end [2/2] (short) %v850_v7, 128  ;;  %v746_v26 = vpop.f32.mrb[25].mxu1 }
 0x12c   : > { %v4174_v27 = vpop.f32.mrb[26].mxu1  ;;  %3440 = vset.pattern.permute.xlu0 %v3945_v1 }
 0x12d   : > { %v863_v28 = vpack.c.bf16 %v4174_v27, %v4170_v25  ;;  %v750_v29 = vpop.f32.mrb[27].mxu1 }
 0x12e   : > { %v864_v30 = vpack.c.bf16 %v750_v29, %v746_v26 }
 0x132   : > { %v4187_v33 = vpop.f32.mrb[28].mxu1 }
 0x133   : > { %v756_v34 = vpop.f32.mrb[29].mxu1 }
 0x134   : > { %v4190_v35 = vpop.f32.mrb[30].mxu1 }
 0x135   : > { %v865_v36 = vpack.c.bf16 %v4190_v35, %v4187_v33  ;;  %v760_v37 = vpop.f32.mrb[31].mxu1 }
 0x136   : > { %v866_v38 = vpack.c.bf16 %v760_v37, %v756_v34 }
 0x13a   : > { %v4271_v4 = vpop.f32.mrb[32].mxu1 }
 0x13b   : > { %5671 = vst [vmem:[#allocation6_spill] sm:$0xff] %v4271_v4  ;;  %v766_v6 = vpop.f32.mrb[33].mxu1 }
 0x13c   : > { %v4273_v7 = vpop.f32.mrb[34].mxu1 }
 0x13d   : > { %5672 = vst [vmem:[#allocation7_spill] sm:$0xff] %v4273_v7  ;;  %v770_v9 = vpop.f32.mrb[35].mxu1 }
 0x13e   : > { %v868_v10 = vpack.c.bf16 %v770_v9, %v766_v6 }
 0x142   : > { %v4279_v11 = vpop.f32.mrb[36].mxu1 }
 0x143   : > { %5673 = vst [vmem:[#allocation8_spill] sm:$0xff] %v4279_v11  ;;  %v4281_v13 = vpop.f32.mrb[37].mxu1 }
 0x144   : > { %5674 = vst [vmem:[#allocation9_spill] sm:$0xff] %v4281_v13  ;;  %v4283_v14 = vpop.f32.mrb[38].mxu1 }
 0x145   : > { %5675 = vst [vmem:[#allocation10_spill] sm:$0xff] %v4283_v14  ;;  %v4287_v16 = vpop.f32.mrb[39].mxu1 }
 0x146   : > { %5676 = vst [vmem:[#allocation11_spill] sm:$0xff] %v4287_v16 }
 0x14a   : > { %v4293_v18 = vpop.f32.mrb[40].mxu1 }
 0x14b   : > { %5677 = vst [vmem:[#allocation12_spill] sm:$0xff] %v4293_v18  ;;  %v786_v20 = vpop.f32.mrb[41].mxu1 }
 0x14c   : > { %v4295_v21 = vpop.f32.mrb[42].mxu1 }
 0x14d   : > { %5678 = vst [vmem:[#allocation13_spill] sm:$0xff] %v4295_v21  ;;  %v790_v23 = vpop.f32.mrb[43].mxu1 }
 0x14e   : > { %v872_v24 = vpack.c.bf16 %v790_v23, %v786_v20 }
 0x168   : > { %v891_v42 = vpop.trf.xlu0 }
 0x169   : > { %3271 = vmatmul.mubr.msk.bf16.vlgmr.msra.gmra.mrb[16].mxu0 %vm899_vm2, %v891_v42 }
 0x16a   : > { %1078 = vmatpush1.bf16.msra.mxu0 %v855_v53  ;;  %966 = vmatprep.mubr.bf16.mxu0 %v3945_v1 }
 0x16b   : > { %1079 = vmatprep.subr.bf16.mxu0 %v858_v5 }
 0x16c   : > { %v892_v43 = vpop.trf.xlu0 }
 0x16e   : > { %1080 = vmatpush1.bf16.msra.mxu0 %v857_v2 }
 0x16f   : > { %1383 = vmatprep.subr.bf16.mxu0 %v864_v30 }
 0x170   : > { %v893_v44 = vpop.trf.xlu0  ;;  %v1045_v54 = vpop.trf.xlu1 }
 0x171   : > { %3272 = vmatmul.mubr.msk.bf16.gmra.mrb[20].mxu0 %vm899_vm2, %v892_v43 }
 0x172   : > { %976 = vmatprep.mubr.bf16.mxu0 %v3945_v1 }
 0x174   : > { %v894_v45 = vpop.trf.xlu0  ;;  %v1046_v56 = vpop.trf.xlu1 }
 0x178   : > { %v895_v46 = vpop.trf.xlu0  ;;  %v1047_v58 = vpop.trf.xlu1 }
 0x179   : > { %3273 = vmatmul.mubr.msk.bf16.gmra.mrb[24].mxu0 %vm899_vm2, %v893_v44 }
 0x17a   : > { %986 = vmatprep.mubr.bf16.mxu0 %v3945_v1 }
 0x17c   : > { %v896_v47 = vpop.trf.xlu0  ;;  %v1048_v60 = vpop.trf.xlu1 }
 0x180   : > { %v897_v48 = vpop.trf.xlu0  ;;  %v1049_v62 = vpop.trf.xlu1 }
 0x181   : > { %3274 = vmatmul.mubr.msk.bf16.gmra.mrb[28].mxu0 %vm899_vm2, %v894_v45 }
 0x182   : > { %996 = vmatprep.mubr.bf16.mxu0 %v3945_v1 }
 0x184   : > { %v898_v49 = vpop.trf.xlu0  ;;  %v1050_v63 = vpop.trf.xlu1 }
 0x188   : > { %v1198_v50 = vpop.trf.xlu0  ;;  %v1051_v0 = vpop.trf.xlu1 }
 0x189   : > { %3275 = vmatmul.mubr.msk.bf16.gmra.mrb[32].mxu0 %vm899_vm2, %v895_v46  ;;  %3287 = vmatmul.mubr.msk.bf16.vlgmr.msra.gmra.mrb[64].mxu1 %vm899_vm2, %v1198_v50 }
 0x18a   : > { %1006 = vmatprep.mubr.bf16.mxu0 %v3945_v1  ;;  %1272 = vmatprep.mubr.bf16.mxu1 %v3945_v1 }
 0x18c   : > { %v1199_v51 = vpop.trf.xlu0  ;;  %v1052_v2 = vpop.trf.xlu1 }
 0x190   : > { %v1200_v52 = vpop.trf.xlu0  ;;  %v1351_v3 = vpop.trf.xlu1 }
 0x191   : > { %3276 = vmatmul.mubr.msk.bf16.gmra.mrb[36].mxu0 %vm899_vm2, %v896_v47  ;;  %3288 = vmatmul.mubr.msk.bf16.gmra.mrb[68].mxu1 %vm899_vm2, %v1199_v51 }
 0x192   : > { %1016 = vmatprep.mubr.bf16.mxu0 %v3945_v1  ;;  %1282 = vmatprep.mubr.bf16.mxu1 %v3945_v1 }
 0x194   : > { %v1201_v53 = vpop.trf.xlu0  ;;  %v1352_v5 = vpop.trf.xlu1 }
 0x198   : > { %v1202_v55 = vpop.trf.xlu0  ;;  %v1353_v12 = vpop.trf.xlu1 }
 0x199   : > { %3277 = vmatmul.mubr.msk.bf16.gmra.mrb[40].mxu0 %vm899_vm2, %v897_v48  ;;  %3289 = vmatmul.mubr.msk.bf16.gmra.mrb[72].mxu1 %vm899_vm2, %v1200_v52 }
 0x19a   : > { %1026 = vmatprep.mubr.bf16.mxu0 %v3945_v1  ;;  %1292 = vmatprep.mubr.bf16.mxu1 %v3945_v1 }
 0x19c   : > { %v1203_v57 = vpop.trf.xlu0  ;;  %v1354_v19 = vpop.trf.xlu1 }
 0x1a0   : > { %v1204_v59 = vpop.trf.xlu0  ;;  %v1355_v26 = vpop.trf.xlu1 }
 0x1a1   : > { %3278 = vmatmul.mubr.msk.bf16.gmra.mrb[44].mxu0 %vm899_vm2, %v898_v49  ;;  %3290 = vmatmul.mubr.msk.bf16.gmra.mrb[76].mxu1 %vm899_vm2, %v1201_v53 }
 0x1a2   : > { %1109 = vmatprep.mubr.bf16.mxu0 %v3945_v1  ;;  %1302 = vmatprep.mubr.bf16.mxu1 %v3945_v1 }
 0x1a4   : > { %v1205_v61 = vpop.trf.xlu0  ;;  %v1356_v33 = vpop.trf.xlu1 }
 0x1a8   : > { %v1357_v40 = vpop.trf.xlu1 }
 0x1a9   : > { %3279 = vmatmul.mubr.msk.bf16.vlgmr.msra.gmra.mrb[48].mxu0 %vm899_vm2, %v1045_v54  ;;  %3291 = vmatmul.mubr.msk.bf16.gmra.mrb[80].mxu1 %vm899_vm2, %v1202_v55 }
 0x1aa   : > { %1384 = vmatpush1.bf16.msra.mxu0 %v863_v28  ;;  %1119 = vmatprep.mubr.bf16.mxu0 %v3945_v1 }
 0x1ab   : > { %1385 = vmatprep.subr.bf16.mxu0 %v866_v38  ;;  %1312 = vmatprep.mubr.bf16.mxu1 %v3945_v1 }
 0x1ac   : > { %v1358_v47 = vpop.trf.xlu1 }
 0x1ae   : > { %1386 = vmatpush1.bf16.msra.mxu0 %v865_v36 }
 0x1b1   : > { %3280 = vmatmul.mubr.msk.bf16.gmra.mrb[52].mxu0 %vm899_vm2, %v1046_v56  ;;  %3292 = vmatmul.mubr.msk.bf16.gmra.mrb[84].mxu1 %vm899_vm2, %v1203_v57 }
 0x1b2   : > { %1129 = vmatprep.mubr.bf16.mxu0 %v3945_v1  ;;  %1322 = vmatprep.mubr.bf16.mxu1 %v3945_v1 }
 0x1b9   : > { %3281 = vmatmul.mubr.msk.bf16.gmra.mrb[56].mxu0 %vm899_vm2, %v1047_v58  ;;  %3293 = vmatmul.mubr.msk.bf16.gmra.mrb[88].mxu1 %vm899_vm2, %v1204_v59 }
 0x1ba   : > { %1139 = vmatprep.mubr.bf16.mxu0 %v3945_v1  ;;  %1332 = vmatprep.mubr.bf16.mxu1 %v3945_v1 }
 0x1c1   : > { %3282 = vmatmul.mubr.msk.bf16.gmra.mrb[60].mxu0 %vm899_vm2, %v1048_v60  ;;  %3294 = vmatmul.mubr.msk.bf16.gmra.mrb[92].mxu1 %vm899_vm2, %v1205_v61 }
 0x1c2   : > { %1149 = vmatprep.mubr.bf16.mxu0 %v3945_v1  ;;  %2360 = vmatprep.mubr.bf16.mxu1 %v868_v10 }
 0x1c9   : > { %3283 = vmatmul.mubr.msk.bf16.gmra.mrb[64].mxu0 %vm899_vm2, %v1049_v62 }
 0x1ca   : > { %1159 = vmatprep.mubr.bf16.mxu0 %v3945_v1 }
 0x1d1   : > { %3284 = vmatmul.mubr.msk.bf16.gmra.mrb[68].mxu0 %vm899_vm2, %v1050_v63 }
 0x1d2   : > { %1169 = vmatprep.mubr.bf16.mxu0 %v3945_v1  ;;  %v4301_v25 = vpop.f32.mrb[44].mxu1 }
 0x1d3   : > { %5679 = vst [vmem:[#allocation14_spill] sm:$0xff] %v4301_v25  ;;  %v4303_v27 = vpop.f32.mrb[45].mxu1 }
 0x1d4   : > { %5680 = vst [vmem:[#allocation15_spill] sm:$0xff] %v4303_v27  ;;  %v4305_v28 = vpop.f32.mrb[46].mxu1 }
 0x1d5   : > { %5681 = vst [vmem:[#allocation16_spill] sm:$0xff] %v4305_v28  ;;  %v4309_v30 = vpop.f32.mrb[47].mxu1 }
 0x1d6   : > { %5682 = vst [vmem:[#allocation17_spill] sm:$0xff] %v4309_v30 }
 0x1d9   : > { %3285 = vmatmul.mubr.msk.bf16.gmra.mrb[72].mxu0 %vm899_vm2, %v1051_v0 }
 0x1da   : > { %1179 = vmatprep.mubr.bf16.mxu0 %v3945_v1  ;;  %v4315_v32 = vpop.f32.mrb[48].mxu1 }
 0x1db   : > { %5683 = vst [vmem:[#allocation18_spill] sm:$0xff] %v4315_v32  ;;  %v4317_v34 = vpop.f32.mrb[49].mxu1 }
 0x1dc   : > { %5684 = vst [vmem:[#allocation19_spill] sm:$0xff] %v4317_v34  ;;  %v4319_v35 = vpop.f32.mrb[50].mxu1 }
 0x1dd   : > { %5685 = vst [vmem:[#allocation20_spill] sm:$0xff] %v4319_v35  ;;  %v4323_v37 = vpop.f32.mrb[51].mxu1 }
 0x1de   : > { %5686 = vst [vmem:[#allocation21_spill] sm:$0xff] %v4323_v37 }
 0x1e1   : > { %3286 = vmatmul.mubr.msk.bf16.gmra.mrb[76].mxu0 %vm899_vm2, %v1052_v2 }
 0x1e2   : > { %1415 = vmatprep.mubr.bf16.mxu0 %v3945_v1  ;;  %v4329_v39 = vpop.f32.mrb[52].mxu1 }
 0x1e3   : > { %5687 = vst [vmem:[#allocation22_spill] sm:$0xff] %v4329_v39  ;;  %v4331_v41 = vpop.f32.mrb[53].mxu1 }
 0x1e4   : > { %5688 = vst [vmem:[#allocation23_spill] sm:$0xff] %v4331_v41  ;;  %v4333_v42 = vpop.f32.mrb[54].mxu1 }
 0x1e5   : > { %5689 = vst [vmem:[#allocation24_spill] sm:$0xff] %v4333_v42  ;;  %v4337_v44 = vpop.f32.mrb[55].mxu1 }
 0x1e6   : > { %5690 = vst [vmem:[#allocation25_spill] sm:$0xff] %v4337_v44 }
 0x1e9   : > { %3295 = vmatmul.mubr.msk.bf16.vlgmr.msra.gmra.mrb[80].mxu0 %vm899_vm2, %v1351_v3 }
 0x1ea   : > { %1425 = vmatprep.mubr.bf16.mxu0 %v3945_v1  ;;  %v4343_v46 = vpop.f32.mrb[56].mxu1 }
 0x1eb   : > { %5691 = vst [vmem:[#allocation26_spill] sm:$0xff] %v4343_v46  ;;  %v4345_v48 = vpop.f32.mrb[57].mxu1 }
 0x1ec   : > { %5692 = vst [vmem:[#allocation27_spill] sm:$0xff] %v4345_v48  ;;  %v4347_v49 = vpop.f32.mrb[58].mxu1 }
 0x1ed   : > { %5693 = vst [vmem:[#allocation28_spill] sm:$0xff] %v4347_v49  ;;  %v4351_v51 = vpop.f32.mrb[59].mxu1 }
 0x1ee   : > { %5694 = vst [vmem:[#allocation29_spill] sm:$0xff] %v4351_v51 }
 0x1f1   : > { %3296 = vmatmul.mubr.msk.bf16.gmra.mrb[84].mxu0 %vm899_vm2, %v1352_v5 }
 0x1f2   : > { %1435 = vmatprep.mubr.bf16.mxu0 %v3945_v1  ;;  %v4356_v53 = vpop.f32.mrb[60].mxu1 }
 0x1f3   : > { %5695 = vst [vmem:[#allocation30_spill] sm:$0xff] %v4356_v53 }
 0x1f9   : > { %3297 = vmatmul.mubr.msk.bf16.gmra.mrb[88].mxu0 %vm899_vm2, %v1353_v12 }
 0x1fa   : > { %1445 = vmatprep.mubr.bf16.mxu0 %v3945_v1 }
 0x201   : > { %3298 = vmatmul.mubr.msk.bf16.gmra.mrb[92].mxu0 %vm899_vm2, %v1354_v19 }
 0x202   : > { %1455 = vmatprep.mubr.bf16.mxu0 %v3945_v1 }
 0x209   : > { %3299 = vmatmul.mubr.msk.bf16.gmra.mrb[96].mxu0 %vm899_vm2, %v1355_v26 }
 0x20a   : > { %1465 = vmatprep.mubr.bf16.mxu0 %v3945_v1 }
 0x211   : > { %3300 = vmatmul.mubr.msk.bf16.gmra.mrb[100].mxu0 %vm899_vm2, %v1356_v33 }
 0x212   : > { %1475 = vmatprep.mubr.bf16.mxu0 %v3945_v1 }
 0x219   : > { %3301 = vmatmul.mubr.msk.bf16.gmra.mrb[104].mxu0 %vm899_vm2, %v1357_v40 }
 0x21a   : > { %1485 = vmatprep.mubr.bf16.mxu0 %v3945_v1  ;;  %v4358_v1 = vpop.f32.mrb[61].mxu1 }
 0x21b   : > { %5696 = vst [vmem:[#allocation31_spill] sm:$0xff] %v4358_v1  ;;  %v4360_v54 = vpop.f32.mrb[62].mxu1 }
 0x21c   : > { %5697 = vst [vmem:[#allocation32_spill] sm:$0xff] %v4360_v54  ;;  %v4364_v56 = vpop.f32.mrb[63].mxu1 }
 0x21d   : > { %5698 = vst [vmem:[#allocation33_spill] sm:$0xff] %v4364_v56 }
 0x221   : > { %3302 = vmatmul.mubr.msk.bf16.gmra.mrb[108].mxu0 %vm899_vm2, %v1358_v47  ;;  %vm2761_vm2 = vcmask 1048512  }
 0x222   : > { %2409 = vmatprep.mubr.bf16.mxu0 %v872_v24 }
 0x23c   : > { %v4368_v58 = vpop.f32.mrb[16].mxu0 }
 0x23d   : > { %v4370_v59 = vpop.f32.mrb[17].mxu0 }
 0x23e   : > { %v4372_v60 = vpop.f32.mrb[18].mxu0  ;;  %v1496_v61 = vmax.f32 %v4368_v58, %v4370_v59 }
 0x23f   : > { %v4376_v62 = vpop.f32.mrb[19].mxu0 }
 0x240   : > { %1497 = vmax.xlane.f32.xlu0 %v1496_v61  ;;  %v1499_v63 = vmax.f32 %v4372_v60, %v4376_v62 }
 0x242   : > { %1500 = vmax.xlane.f32.xlu1 %v1499_v63 }
 0x244   : > { %v4380_v0 = vpop.f32.mrb[20].mxu0 }
 0x245   : > { %v4382_v2 = vpop.f32.mrb[21].mxu0 }
 0x246   : > { %v4384_v3 = vpop.f32.mrb[22].mxu0  ;;  %v1502_v5 = vmax.f32 %v4380_v0, %v4382_v2 }
 0x247   : > { %v4388_v6 = vpop.f32.mrb[23].mxu0 }
 0x248   : > { %1503 = vmax.xlane.f32.xlu0 %v1502_v5  ;;  %v1505_v9 = vmax.f32 %v4384_v3, %v4388_v6 }
 0x24a   : > { %1506 = vmax.xlane.f32.xlu1 %v1505_v9 }
 0x24c   : > { %v4392_v10 = vpop.f32.mrb[24].mxu0 }
 0x24d   : > { %5699 = vst [vmem:[#allocation34_spill] sm:$0xff] %v4392_v10  ;;  %v4394_v12 = vpop.f32.mrb[25].mxu0 }
 0x24e   : > { %5700 = vst [vmem:[#allocation35_spill] sm:$0xff] %v4394_v12  ;;  %v4396_v19 = vpop.f32.mrb[26].mxu0  ;;  %v5729_v13 = vmax.f32 %v4392_v10, %v4394_v12 }
 0x24f   : > { %5701 = vst [vmem:[#allocation36_spill] sm:$0xff] %v4396_v19  ;;  %v4400_v23 = vpop.f32.mrb[27].mxu0 }
 0x250   : > { %5702 = vst [vmem:[#allocation37_spill] sm:$0xff] %v4400_v23 }
 0x254   : > { %v4404_v26 = vpop.f32.mrb[28].mxu0 }
 0x255   : > { %5703 = vst [vmem:[#allocation38_spill] sm:$0xff] %v4404_v26  ;;  %v4406_v33 = vpop.f32.mrb[29].mxu0 }
 0x256   : > { %5704 = vst [vmem:[#allocation39_spill] sm:$0xff] %v4406_v33  ;;  %v4408_v40 = vpop.f32.mrb[30].mxu0 }
 0x257   : > { %5705 = vst [vmem:[#allocation40_spill] sm:$0xff] %v4408_v40  ;;  %v4412_v61 = vpop.f32.mrb[31].mxu0 }
 0x258   : > { %5706 = vst [vmem:[#allocation41_spill] sm:$0xff] %v4412_v61 }
 0x25c   : > { %v4416_v5 = vpop.f32.mrb[32].mxu0  ;;  %v4418_v9 = vpop.f32.mrb[64].mxu1 }
 0x25d   : > { %5707 = vst [vmem:[#allocation42_spill] sm:$0xff] %v4416_v5  ;;  %5708 = vst [vmem:[#allocation43_spill] sm:$0xff] %v4418_v9  ;;  %v4420_v55 = vpop.f32.mrb[33].mxu0  ;;  %v4422_v57 = vpop.f32.mrb[65].mxu1 }
 0x25e   : > { %5709 = vst [vmem:[#allocation44_spill] sm:$0xff] %v4420_v55  ;;  %5710 = vst [vmem:[#allocation45_spill] sm:$0xff] %v4422_v57  ;;  %v4424_v50 = vpop.f32.mrb[34].mxu0  ;;  %v4428_v45 = vpop.f32.mrb[66].mxu1 }
 0x25f   : > { %v4432_v52 = vpop.f32.mrb[35].mxu0  ;;  %v4434_v29 = vpop.f32.mrb[67].mxu1 }
 0x260   : > { %5711 = vst [vmem:[#allocation46_spill] sm:$0xff] %v4432_v52 }
 0x264   : > { %v4440_v38 = vpop.f32.mrb[36].mxu0  ;;  %v4442_v15 = vpop.f32.mrb[68].mxu1 }
 0x265   : > { %v4444_v17 = vpop.f32.mrb[37].mxu0  ;;  %v4446_v8 = vpop.f32.mrb[69].mxu1 }
 0x266   : > { %5712 = vst [vmem:[#allocation47_spill] sm:$0xff] %v4444_v17  ;;  %5713 = vst [vmem:[#allocation48_spill] sm:$0xff] %v4446_v8  ;;  %v4448_v43 = vpop.f32.mrb[38].mxu0  ;;  %v4452_v63 = vpop.f32.mrb[70].mxu1 }
 0x267   : > { %v4456_v47 = vpop.f32.mrb[39].mxu0  ;;  %v4458_v22 = vpop.f32.mrb[71].mxu1 }
 0x268   : > { %5714 = vst [vmem:[#allocation49_spill] sm:$0xff] %v4456_v47  ;;  %5715 = vst [vmem:[#allocation50_spill] sm:$0xff] %v4458_v22 }
 0x26c   : > { %v4464_v53 = vpop.f32.mrb[40].mxu0  ;;  %v4466_v54 = vpop.f32.mrb[72].mxu1 }
 0x26d   : > { %5716 = vst [vmem:[#allocation51_spill] sm:$0xff] %v4464_v53  ;;  %v4468_v36 = vpop.f32.mrb[41].mxu0  ;;  %v4470_v1 = vpop.f32.mrb[73].mxu1 }
 0x26e   : > { %5717 = vst [vmem:[#allocation52_spill] sm:$0xff] %v4468_v36  ;;  %5718 = vst [vmem:[#allocation53_spill] sm:$0xff] %v4470_v1  ;;  %v4472_v56 = vpop.f32.mrb[42].mxu0  ;;  %v4476_v46 = vpop.f32.mrb[74].mxu1 }
 0x26f   : > { %5719 = vst [vmem:[#allocation54_spill] sm:$0xff] %v4476_v46  ;;  %v4480_v49 = vpop.f32.mrb[43].mxu0  ;;  %v4482_v20 = vpop.f32.mrb[75].mxu1 }
 0x270   : > { %5720 = vst [vmem:[#allocation55_spill] sm:$0xff] %v4480_v49  ;;  %5721 = vst [vmem:[#allocation56_spill] sm:$0xff] %v4482_v20 }
 0x274   : > { %v4488_v41 = vpop.f32.mrb[44].mxu0  ;;  %v4490_v44 = vpop.f32.mrb[76].mxu1 }
 0x275   : > { %5722 = vst [vmem:[#allocation57_spill] sm:$0xff] %v4488_v41  ;;  %5723 = vst [vmem:[#allocation58_spill] sm:$0xff] %v4490_v44  ;;  %v4492_v31 = vpop.f32.mrb[45].mxu0  ;;  %v4494_v32 = vpop.f32.mrb[77].mxu1 }
 0x276   : > { %5724 = vst [vmem:[#allocation59_spill] sm:$0xff] %v4492_v31  ;;  %5725 = vst [vmem:[#allocation60_spill] sm:$0xff] %v4494_v32  ;;  %v4496_v35 = vpop.f32.mrb[46].mxu0  ;;  %v4500_v48 = vpop.f32.mrb[78].mxu1 }
 0x277   : > { %v4504_v51 = vpop.f32.mrb[47].mxu0  ;;  %v4506_v42 = vpop.f32.mrb[79].mxu1 }
 0x278   : > { %5726 = vst [vmem:[#allocation61_spill] sm:$0xff] %v4504_v51 }
 0x27c   : > { %v4512_v27 = vpop.f32.mrb[48].mxu0  ;;  %v4514_v30 = vpop.f32.mrb[80].mxu1 }
 0x27d   : > { %v4516_v24 = vpop.f32.mrb[49].mxu0  ;;  %v4518_v18 = vpop.f32.mrb[81].mxu1 }
 0x27e   : > { %v4520_v21 = vpop.f32.mrb[50].mxu0  ;;  %v1544_v39 = vmax.f32 %v4512_v27, %v4516_v24  ;;  %v4524_v34 = vpop.f32.mrb[82].mxu1 }
 0x27f   : > { %5727 = vst [vmem:[#allocation62_spill] sm:$0xff] %v4520_v21  ;;  %v4528_v37 = vpop.f32.mrb[51].mxu0  ;;  %v4530_v28 = vpop.f32.mrb[83].mxu1 }
 0x280   : > { %5728 = vst [vmem:[#allocation63_spill] sm:$0xff] %v4528_v37  ;;  %1545 = vmax.xlane.f32.xlu0 %v1544_v39  ;;  %v1547_v11 = vmax.f32 %v4520_v21, %v4528_v37  ;;  %v5734_v37 = vmax.f32 %v4396_v19, %v4400_v23 }
 0x282   : > { %1548 = vmax.xlane.f32.xlu1 %v1547_v11 }
 0x284   : > { %1509 = vmax.xlane.f32.xlu0 %v5729_v13  ;;  %v4539_v16 = vpop.f32.mrb[52].mxu0  ;;  %v4541_v4 = vpop.f32.mrb[84].mxu1 }
 0x285   : > { %5730 = vst [vmem:[#allocation64_spill] sm:$0xff] %v4539_v16  ;;  %v4543_v25 = vpop.f32.mrb[53].mxu0  ;;  %v4545_v7 = vpop.f32.mrb[85].mxu1 }
 0x286   : > { %5731 = vst [vmem:[#allocation65_spill] sm:$0xff] %v4543_v25  ;;  %5732 = vst [vmem:[#allocation66_spill] sm:$0xff] %v4545_v7  ;;  %v4547_v39 = vpop.f32.mrb[54].mxu0  ;;  %1512 = vmax.xlane.f32.xlu1 %v5734_v37  ;;  %v1550_v11 = vmax.f32 %v4539_v16, %v4543_v25  ;;  %v4554_v14 = vpop.f32.mrb[86].mxu1  ;;  %v5737_v37 = vmax.f32 %v4404_v26, %v4406_v33 }
 0x287   : > { %5733 = vst [vmem:[#allocation67_spill] sm:$0xff] %v4547_v39  ;;  %v4558_v12 = vpop.f32.mrb[55].mxu0  ;;  %v4560_v10 = vpop.f32.mrb[87].mxu1 }
 0x288   : > { %5735 = vst [vmem:[#allocation68_spill] sm:$0xff] %v4558_v12  ;;  %5736 = vst [vmem:[#allocation69_spill] sm:$0xff] %v4560_v10  ;;  %1551 = vmax.xlane.f32.xlu0 %v1550_v11  ;;  %v1553_v21 = vmax.f32 %v4547_v39, %v4558_v12  ;;  %v5743_v12 = vmax.f32 %v4408_v40, %v4412_v61 }
 0x28a   : > { %1554 = vmax.xlane.f32.xlu1 %v1553_v21 }
 0x28c   : > { %1515 = vmax.xlane.f32.xlu0 %v5737_v37  ;;  %v4569_v25 = vpop.f32.mrb[56].mxu0  ;;  %v4571_v16 = vpop.f32.mrb[88].mxu1 }
 0x28d   : > { %5738 = vst [vmem:[#allocation70_spill] sm:$0xff] %v4569_v25  ;;  %5739 = vst [vmem:[#allocation71_spill] sm:$0xff] %v4571_v16  ;;  %v4573_v13 = vpop.f32.mrb[57].mxu0  ;;  %v4575_v19 = vpop.f32.mrb[89].mxu1 }
 0x28e   : > { %5740 = vst [vmem:[#allocation72_spill] sm:$0xff] %v4573_v13  ;;  %5741 = vst [vmem:[#allocation73_spill] sm:$0xff] %v4575_v19  ;;  %v4577_v11 = vpop.f32.mrb[58].mxu0  ;;  %1518 = vmax.xlane.f32.xlu1 %v5743_v12  ;;  %v1556_v21 = vmax.f32 %v4569_v25, %v4573_v13  ;;  %v4584_v23 = vpop.f32.mrb[90].mxu1  ;;  %v5747_v12 = vmax.f32 %v4416_v5, %v4420_v55 }
 0x28f   : > { %5742 = vst [vmem:[#allocation74_spill] sm:$0xff] %v4577_v11  ;;  %5744 = vst [vmem:[#allocation75_spill] sm:$0xff] %v4584_v23  ;;  %v4588_v33 = vpop.f32.mrb[59].mxu0  ;;  %v4590_v26 = vpop.f32.mrb[91].mxu1 }
 0x290   : > { %5745 = vst [vmem:[#allocation76_spill] sm:$0xff] %v4588_v33  ;;  %5746 = vst [vmem:[#allocation77_spill] sm:$0xff] %v4590_v26  ;;  %1557 = vmax.xlane.f32.xlu0 %v1556_v21  ;;  %v1559_v39 = vmax.f32 %v4577_v11, %v4588_v33  ;;  %v5753_v33 = vmax.f32 %v4424_v50, %v4432_v52 }
 0x292   : > { %1560 = vmax.xlane.f32.xlu1 %v1559_v39 }
 0x294   : > { %1521 = vmax.xlane.f32.xlu0 %v5747_v12  ;;  %v4599_v13 = vpop.f32.mrb[60].mxu0  ;;  %v4601_v25 = vpop.f32.mrb[92].mxu1 }
 0x295   : > { %5748 = vst [vmem:[#allocation78_spill] sm:$0xff] %v4599_v13  ;;  %5749 = vst [vmem:[#allocation79_spill] sm:$0xff] %v4601_v25  ;;  %v4603_v37 = vpop.f32.mrb[61].mxu0  ;;  %v4605_v40 = vpop.f32.mrb[93].mxu1 }
 0x296   : > { %5750 = vst [vmem:[#allocation80_spill] sm:$0xff] %v4603_v37  ;;  %5751 = vst [vmem:[#allocation81_spill] sm:$0xff] %v4605_v40  ;;  %v4607_v21 = vpop.f32.mrb[62].mxu0  ;;  %1524 = vmax.xlane.f32.xlu1 %v5753_v33  ;;  %v1562_v39 = vmax.f32 %v4599_v13, %v4603_v37  ;;  %v4614_v61 = vpop.f32.mrb[94].mxu1  ;;  %v5757_v33 = vmax.f32 %v4440_v38, %v4444_v17 }
 0x297   : > { %5752 = vst [vmem:[#allocation82_spill] sm:$0xff] %v4607_v21  ;;  %5754 = vst [vmem:[#allocation83_spill] sm:$0xff] %v4614_v61  ;;  %v4618_v55 = vpop.f32.mrb[63].mxu0  ;;  %v4620_v5 = vpop.f32.mrb[95].mxu1 }
 0x298   : > { %5755 = vst [vmem:[#allocation84_spill] sm:$0xff] %v4618_v55  ;;  %5756 = vst [vmem:[#allocation85_spill] sm:$0xff] %v4620_v5  ;;  %1563 = vmax.xlane.f32.xlu0 %v1562_v39  ;;  %v1565_v11 = vmax.f32 %v4607_v21, %v4618_v55  ;;  %v5759_v39 = vmax.f32 %v4448_v43, %v4456_v47 }
 0x29a   : > { %1566 = vmax.xlane.f32.xlu1 %v1565_v11 }
 0x29c   : > { %1527 = vmax.xlane.f32.xlu0 %v5757_v33  ;;  %v4629_v37 = vpop.f32.mrb[64].mxu0  ;;  %v5760_v33 = vmax.f32 %v4464_v53, %v4468_v36 }
 0x29d   : > { %v4631_v13 = vpop.f32.mrb[65].mxu0 }
 0x29e   : > { %5758 = vst [vmem:[#allocation86_spill] sm:$0xff] %v4631_v13  ;;  %v4633_v12 = vpop.f32.mrb[66].mxu0  ;;  %1530 = vmax.xlane.f32.xlu1 %v5759_v39  ;;  %v1568_v55 = vmax.f32 %v4629_v37, %v4631_v13  ;;  %v5762_v39 = vmax.f32 %v4472_v56, %v4480_v49 }
 0x29f   : > { %v4640_v21 = vpop.f32.mrb[67].mxu0 }
 0x2a0   : > { %1569 = vmax.xlane.f32.xlu0 %v1568_v55  ;;  %v1571_v11 = vmax.f32 %v4633_v12, %v4640_v21 }
 0x2a2   : > { %1572 = vmax.xlane.f32.xlu1 %v1571_v11 }
 0x2a4   : > { %1533 = vmax.xlane.f32.xlu0 %v5760_v33  ;;  %v4647_v52 = vpop.f32.mrb[68].mxu0  ;;  %v5763_v33 = vmax.f32 %v4488_v41, %v4492_v31 }
 0x2a5   : > { %v4649_v17 = vpop.f32.mrb[69].mxu0 }
 0x2a6   : > { %5761 = vst [vmem:[#allocation87_spill] sm:$0xff] %v4649_v17  ;;  %v4651_v47 = vpop.f32.mrb[70].mxu0  ;;  %1536 = vmax.xlane.f32.xlu1 %v5762_v39  ;;  %v1574_v55 = vmax.f32 %v4647_v52, %v4649_v17  ;;  %v5765_v39 = vmax.f32 %v4496_v35, %v4504_v51 }
 0x2a7   : > { %v4658_v13 = vpop.f32.mrb[71].mxu0 }
 0x2a8   : > { %1575 = vmax.xlane.f32.xlu0 %v1574_v55  ;;  %v1577_v11 = vmax.f32 %v4651_v47, %v4658_v13 }
 0x2aa   : > { %1578 = vmax.xlane.f32.xlu1 %v1577_v11 }
 0x2ac   : > { %1539 = vmax.xlane.f32.xlu0 %v5763_v33  ;;  %v4665_v36 = vpop.f32.mrb[72].mxu0  ;;  %v5766_v33 = vmax.f32 %v4418_v9, %v4422_v57 }
 0x2ad   : > { %v4667_v53 = vpop.f32.mrb[73].mxu0 }
 0x2ae   : > { %5764 = vst [vmem:[#allocation88_spill] sm:$0xff] %v4667_v53  ;;  %v4669_v49 = vpop.f32.mrb[74].mxu0  ;;  %1542 = vmax.xlane.f32.xlu1 %v5765_v39  ;;  %v1580_v55 = vmax.f32 %v4665_v36, %v4667_v53  ;;  %v5769_v39 = vmax.f32 %v4428_v45, %v4434_v29 }
 0x2af   : > { %v4676_v17 = vpop.f32.mrb[75].mxu0 }
 0x2b0   : > { %1581 = vmax.xlane.f32.xlu0 %v1580_v55  ;;  %v1583_v11 = vmax.f32 %v4669_v49, %v4676_v17 }
 0x2b2   : > { %1584 = vmax.xlane.f32.xlu1 %v1583_v11 }
 0x2b4   : > { %1593 = vmax.xlane.f32.xlu0 %v5766_v33  ;;  %v4683_v31 = vpop.f32.mrb[76].mxu0  ;;  %v5770_v33 = vmax.f32 %v4442_v15, %v4446_v8 }
 0x2b5   : > { %5767 = vst [vmem:[#allocation89_spill] sm:$0xff] %v4683_v31  ;;  %v4685_v41 = vpop.f32.mrb[77].mxu0 }
 0x2b6   : > { %5768 = vst [vmem:[#allocation90_spill] sm:$0xff] %v4685_v41  ;;  %v4687_v51 = vpop.f32.mrb[78].mxu0  ;;  %1596 = vmax.xlane.f32.xlu1 %v5769_v39  ;;  %v1586_v55 = vmax.f32 %v4683_v31, %v4685_v41  ;;  %v5773_v39 = vmax.f32 %v4452_v63, %v4458_v22 }
 0x2b7   : > { %v4694_v53 = vpop.f32.mrb[79].mxu0 }
 0x2b8   : > { %1587 = vmax.xlane.f32.xlu0 %v1586_v55  ;;  %v1589_v11 = vmax.f32 %v4687_v51, %v4694_v53 }
 0x2ba   : > { %1590 = vmax.xlane.f32.xlu1 %v1589_v11 }
 0x2bc   : > { %1599 = vmax.xlane.f32.xlu0 %v5770_v33  ;;  %v4701_v57 = vpop.f32.mrb[80].mxu0  ;;  %v5774_v33 = vmax.f32 %v4466_v54, %v4470_v1 }
 0x2bd   : > { %5771 = vst [vmem:[#allocation91_spill] sm:$0xff] %v4701_v57  ;;  %v4703_v9 = vpop.f32.mrb[81].mxu0 }
 0x2be   : > { %5772 = vst [vmem:[#allocation92_spill] sm:$0xff] %v4703_v9  ;;  %1602 = vmax.xlane.f32.xlu1 %v5773_v39  ;;  %v4708_v41 = vpop.f32.mrb[82].mxu0  ;;  %v1640_v55 = vmax.f32 %v4701_v57, %v4703_v9  ;;  %v5777_v39 = vmax.f32 %v4476_v46, %v4482_v20 }
 0x2bf   : > { %v4712_v31 = vpop.f32.mrb[83].mxu0 }
 0x2c0   : > { %1641 = vmax.xlane.f32.xlu0 %v1640_v55  ;;  %v1643_v11 = vmax.f32 %v4708_v41, %v4712_v31 }
 0x2c2   : > { %1644 = vmax.xlane.f32.xlu1 %v1643_v11 }
 0x2c4   : > { %1605 = vmax.xlane.f32.xlu0 %v5774_v33  ;;  %v4719_v8 = vpop.f32.mrb[84].mxu0  ;;  %v5780_v33 = vmax.f32 %v4490_v44, %v4494_v32 }
 0x2c5   : > { %5775 = vst [vmem:[#allocation93_spill] sm:$0xff] %v4719_v8  ;;  %v4721_v22 = vpop.f32.mrb[85].mxu0 }
 0x2c6   : > { %5776 = vst [vmem:[#allocation94_spill] sm:$0xff] %v4721_v22  ;;  %1608 = vmax.xlane.f32.xlu1 %v5777_v39  ;;  %v4726_v9 = vpop.f32.mrb[86].mxu0  ;;  %v1646_v55 = vmax.f32 %v4719_v8, %v4721_v22 }
 0x2c7   : > { %5778 = vst [vmem:[#allocation95_spill] sm:$0xff] %v4726_v9  ;;  %v4730_v57 = vpop.f32.mrb[87].mxu0 }
 0x2c8   : > { %5779 = vst [vmem:[#allocation96_spill] sm:$0xff] %v4730_v57  ;;  %1647 = vmax.xlane.f32.xlu0 %v1646_v55  ;;  %v1649_v11 = vmax.f32 %v4726_v9, %v4730_v57  ;;  %v5782_v55 = vmax.f32 %v4500_v48, %v4506_v42 }
 0x2ca   : > { %1650 = vmax.xlane.f32.xlu1 %v1649_v11 }
 0x2cc   : > { %1611 = vmax.xlane.f32.xlu0 %v5780_v33  ;;  %v4737_v1 = vpop.f32.mrb[88].mxu0 }
 0x2cd   : > { %v1498_v20 = vpop.xlane.xlu0 %1497  ;;  %v4739_v39 = vpop.f32.mrb[89].mxu0 }
 0x2ce   : > { %5781 = vst [vmem:[#allocation97_spill] sm:$0xff] %v4739_v39  ;;  %v1688_v46 = vsub.f32 %v4368_v58, %v1498_v20  ;;  %v1689_v22 = vsub.f32 %v4370_v59, %v1498_v20  ;;  %1614 = vmax.xlane.f32.xlu1 %v5782_v55  ;;  %v4746_v8 = vpop.f32.mrb[90].mxu0  ;;  %v1652_v11 = vmax.f32 %v4737_v1, %v4739_v39 }
 0x2cf   : > { %v4750_v32 = vpop.f32.mrb[91].mxu0  ;;  %v1501_v33 = vpop.xlane.xlu1 %1500  ;;  %v5783_v39 = vmax.f32 %v4514_v30, %v4518_v18 }
 0x2d0   : > { %v1816_v44 = vmul.f32 1.442695, %v1688_v46  ;;  %v1818_v57 = vmul.f32 1.442695, %v1689_v22  ;;  %v1690_v9 = vsub.f32 %v4372_v60, %v1501_v33  ;;  %v1691_v58 = vsub.f32 %v4376_v62, %v1501_v33  ;;  %1653 = vmax.xlane.f32.xlu0 %v1652_v11 }
 0x2d1   : > { %v1655_v59 = vmax.f32 %v4746_v8, %v4750_v32 }
 0x2d2   : > { %3465 = vpow2.f32 %v1816_v44  ;;  %v1820_v20 = vmul.f32 1.442695, %v1690_v9  ;;  %v1822_v55 = vmul.f32 1.442695, %v1691_v58  ;;  %v5785_v9 = vmax.f32 %v4524_v34, %v4530_v28 }
 0x2d3   : > { %3467 = vpow2.f32 %v1818_v57  ;;  %1656 = vmax.xlane.f32.xlu1 %v1655_v59 }
 0x2d4   : > { %3469 = vpow2.f32 %v1820_v20  ;;  %1617 = vmax.xlane.f32.xlu0 %v5783_v39  ;;  %v4759_v46 = vpop.f32.mrb[92].mxu0 }
 0x2d5   : > { %3471 = vpow2.f32 %v1822_v55  ;;  %v1504_v22 = vpop.xlane.xlu0 %1503  ;;  %v4761_v60 = vpop.f32.mrb[93].mxu0 }
 0x2d6   : > { %5784 = vst [vmem:[#allocation98_spill] sm:$0xff] %v4761_v60  ;;  %v1692_v62 = vsub.f32 %v4380_v0, %v1504_v22  ;;  %v1693_v11 = vsub.f32 %v4382_v2, %v1504_v22  ;;  %v4765_v44 = vpop.f32.mrb[94].mxu0  ;;  %v1658_v57 = vmax.f32 %v4759_v46, %v4761_v60 }
 0x2d7   : > { %1620 = vmax.xlane.f32.xlu1 %v5785_v9  ;;  %v4772_v39 = vpop.f32.mrb[95].mxu0  ;;  %v1507_v33 = vpop.xlane.xlu1 %1506  ;;  %v5786_v9 = vmax.f32 %v4541_v4, %v4545_v7 }
 0x2d8   : > { %v1824_v58 = vmul.f32 1.442695, %v1692_v62  ;;  %v1826_v59 = vmul.f32 1.442695, %v1693_v11  ;;  %v1694_v20 = vsub.f32 %v4384_v3, %v1507_v33  ;;  %v1695_v0 = vsub.f32 %v4388_v6, %v1507_v33  ;;  %1659 = vmax.xlane.f32.xlu0 %v1658_v57 }
 0x2d9   : > { %v1661_v2 = vmax.f32 %v4765_v44, %v4772_v39 }
 0x2da   : > { %3473 = vpow2.f32 %v1824_v58  ;;  %v1828_v55 = vmul.f32 1.442695, %v1694_v20  ;;  %v1830_v22 = vmul.f32 1.442695, %v1695_v0  ;;  %v5789_v20 = vmax.f32 %v4554_v14, %v4560_v10 }
 0x2db   : > { %3475 = vpow2.f32 %v1826_v59  ;;  %1662 = vmax.xlane.f32.xlu1 %v1661_v2 }
 0x2dc   : > { %v3466_v60 = vpop.eup %3465  ;;  %3477 = vpow2.f32 %v1828_v55  ;;  %1623 = vmax.xlane.f32.xlu0 %v5786_v9  ;;  %v4781_v62 = vpop.f32.mrb[96].mxu0 }
 0x2dd   : > { %5787 = vst [vmem:[#allocation99_spill] sm:$0xff] %v4781_v62  ;;  %v3468_v3 = vpop.eup %3467  ;;  %3479 = vpow2.f32 %v1830_v22  ;;  %v4783_v6 = vpop.f32.mrb[97].mxu0 }
 0x2de   : > { %5788 = vst [vmem:[#allocation100_spill] sm:$0xff] %v4783_v6  ;;  %v3470_v11 = vpop.eup %3469  ;;  %v4785_v57 = vpop.f32.mrb[98].mxu0  ;;  %v1664_v33 = vmax.f32 %v4781_v62, %v4783_v6  ;;  %v2072_v58 = vadd.f32 %v3468_v3, %v3466_v60  ;;  %v5791_v6 = vmax.f32 %v4571_v16, %v4575_v19 }
 0x2df   : > { %v3472_v59 = vpop.eup %3471  ;;  %1626 = vmax.xlane.f32.xlu1 %v5789_v20  ;;  %v4792_v0 = vpop.f32.mrb[99].mxu0  ;;  %v2264_v2 = vpack.c.bf16 %v3470_v11, %v3466_v60 }
 0x2e0   : > { %5790 = vst [vmem:[#allocation101_spill] sm:$0xff] %v4792_v0  ;;  %1665 = vmax.xlane.f32.xlu0 %v1664_v33  ;;  %v2265_v55 = vpack.c.bf16 %v3472_v59, %v3468_v3  ;;  %v1667_v22 = vmax.f32 %v4785_v57, %v4792_v0  ;;  %v2075_v9 = vadd.f32 %v3472_v59, %v3470_v11 }
 0x2e2   : > { %2328 = vmatprep.subr.bf16.mxu1 %v2265_v55 }
 0x2e3   : > { %1668 = vmax.xlane.f32.xlu1 %v1667_v22  ;;  %2329 = vmatpush1.bf16.xpose.msra.mxu1 %v2264_v2  ;;  %v5795_v2 = vmax.f32 %v4584_v23, %v4590_v26 }
 0x2e4   : > { %v3474_v7 = vpop.eup %3473  ;;  %1629 = vmax.xlane.f32.xlu0 %v5791_v6  ;;  %v4799_v62 = vpop.f32.mrb[100].mxu0 }
 0x2e5   : > { %5792 = vst [vmem:[#allocation102_spill] sm:$0xff] %v4799_v62  ;;  %v3476_v20 = vpop.eup %3475  ;;  %v4801_v10 = vpop.f32.mrb[101].mxu0 }
 0x2e6   : > { %5793 = vst [vmem:[#allocation103_spill] sm:$0xff] %v4801_v10  ;;  %v3478_v60 = vpop.eup %3477  ;;  %v4803_v33 = vpop.f32.mrb[102].mxu0  ;;  %v1670_v3 = vmax.f32 %v4799_v62, %v4801_v10  ;;  %v2078_v11 = vadd.f32 %v3476_v20, %v3474_v7  ;;  %v5797_v10 = vmax.f32 %v4601_v25, %v4605_v40 }
 0x2e7   : > { %5794 = vst [vmem:[#allocation104_spill] sm:$0xff] %v4803_v33  ;;  %v3480_v59 = vpop.eup %3479  ;;  %1632 = vmax.xlane.f32.xlu1 %v5795_v2  ;;  %v4810_v55 = vpop.f32.mrb[103].mxu0  ;;  %v2266_v6 = vpack.c.bf16 %v3478_v60, %v3474_v7 }
 0x2e8   : > { %5796 = vst [vmem:[#allocation105_spill] sm:$0xff] %v4810_v55  ;;  %1671 = vmax.xlane.f32.xlu0 %v1670_v3  ;;  %v2267_v22 = vpack.c.bf16 %v3480_v59, %v3476_v20  ;;  %v1673_v19 = vmax.f32 %v4803_v33, %v4810_v55  ;;  %v2081_v16 = vadd.f32 %v3480_v59, %v3478_v60 }
 0x2e9   : > { %v5801_v20 = vmax.f32 %v4614_v61, %v4620_v5  ;;  %v5808_v5 = vld [vmem:[#allocation63_spill] sm:$0xff] }
 0x2ea   : > { %2330 = vmatprep.subr.bf16.mxu1 %v2267_v22 }
 0x2eb   : > { %1674 = vmax.xlane.f32.xlu1 %v1673_v19  ;;  %2331 = vmatpush1.bf16.xpose.msra.mxu1 %v2266_v6 }
 0x2ec   : > { %1635 = vmax.xlane.f32.xlu0 %v5797_v10  ;;  %v4817_v62 = vpop.f32.mrb[104].mxu0 }
 0x2ed   : > { %5798 = vst [vmem:[#allocation106_spill] sm:$0xff] %v4817_v62  ;;  %v4819_v26 = vpop.f32.mrb[105].mxu0 }
 0x2ee   : > { %5799 = vst [vmem:[#allocation107_spill] sm:$0xff] %v4819_v26  ;;  %v4821_v2 = vpop.f32.mrb[106].mxu0  ;;  %v1676_v7 = vmax.f32 %v4817_v62, %v4819_v26 }
 0x2ef   : > { %5800 = vst [vmem:[#allocation108_spill] sm:$0xff] %v4821_v2  ;;  %1638 = vmax.xlane.f32.xlu1 %v5801_v20  ;;  %v4828_v60 = vpop.f32.mrb[107].mxu0 }
 0x2f0   : > { %5802 = vst [vmem:[#allocation109_spill] sm:$0xff] %v4828_v60  ;;  %1677 = vmax.xlane.f32.xlu0 %v1676_v7  ;;  %v1679_v19 = vmax.f32 %v4821_v2, %v4828_v60 }
 0x2f3   : > { %1680 = vmax.xlane.f32.xlu1 %v1679_v19 }
 0x2f4   : > { %v4832_v10 = vpop.f32.mrb[108].mxu0 }
 0x2f5   : > { %5803 = vst [vmem:[#allocation110_spill] sm:$0xff] %v4832_v10  ;;  %v4834_v3 = vpop.f32.mrb[109].mxu0 }
 0x2f6   : > { %5804 = vst [vmem:[#allocation111_spill] sm:$0xff] %v4834_v3  ;;  %v4836_v59 = vpop.f32.mrb[110].mxu0  ;;  %v1682_v6 = vmax.f32 %v4832_v10, %v4834_v3  ;;  %v5807_v3 = vld [vmem:[#allocation62_spill] sm:$0xff] }
 0x2f7   : > { %5805 = vst [vmem:[#allocation112_spill] sm:$0xff] %v4836_v59  ;;  %v4840_v22 = vpop.f32.mrb[111].mxu0 }
 0x2f8   : > { %5806 = vst [vmem:[#allocation113_spill] sm:$0xff] %v4840_v22  ;;  %1683 = vmax.xlane.f32.xlu0 %v1682_v6  ;;  %v1685_v20 = vmax.f32 %v4836_v59, %v4840_v22 }
 0x2fa   : > { %1686 = vmax.xlane.f32.xlu1 %v1685_v20 }
 0x2fc   : > { %2073 = vadd.xlane.f32.xlu0 %v2072_v58  ;;  %v5809_v58 = vld [vmem:[#allocation34_spill] sm:$0xff] }
 0x2fe   : > { %2076 = vadd.xlane.f32.xlu1 %v2075_v9 }
 0x300   : > { %2079 = vadd.xlane.f32.xlu0 %v2078_v11 }
 0x302   : > { %2082 = vadd.xlane.f32.xlu1 %v2081_v16  ;;  %v5810_v16 = vld [vmem:[#allocation35_spill] sm:$0xff] }
 0x30d   : > { %v1546_v7 = vpop.xlane.xlu0 %1545 }
 0x30e   : > { %v1720_v19 = vsub.f32 %v4512_v27, %v1546_v7  ;;  %v1721_v60 = vsub.f32 %v4516_v24, %v1546_v7  ;;  %v5811_v24 = vld [vmem:[#allocation36_spill] sm:$0xff] }
 0x30f   : > { %v1549_v2 = vpop.xlane.xlu1 %1548 }
 0x310   : > { %v1880_v26 = vmul.f32 1.442695, %v1720_v19  ;;  %v1882_v62 = vmul.f32 1.442695, %v1721_v60  ;;  %v1722_v10 = vsub.f32 %v5807_v3, %v1549_v2  ;;  %v1723_v6 = vsub.f32 %v5808_v5, %v1549_v2  ;;  %v5812_v19 = vld [vmem:[#allocation37_spill] sm:$0xff]  ;;  %v5813_v2 = vld [vmem:[#allocation64_spill] sm:$0xff] }
 0x311   : > { %v1510_v61 = vpop.xlane.xlu0 %1509 }
 0x312   : > { %3481 = vpow2.f32 %v1880_v26  ;;  %v1884_v22 = vmul.f32 1.442695, %v1722_v10  ;;  %v1886_v20 = vmul.f32 1.442695, %v1723_v6  ;;  %v1696_v9 = vsub.f32 %v5809_v58, %v1510_v61  ;;  %v5814_v6 = vld [vmem:[#allocation65_spill] sm:$0xff] }
 0x313   : > { %3483 = vpow2.f32 %v1882_v62  ;;  %v1697_v11 = vsub.f32 %v5810_v16, %v1510_v61  ;;  %v1513_v59 = vpop.xlane.xlu1 %1512  ;;  %v5816_v16 = vld [vmem:[#allocation68_spill] sm:$0xff] }
 0x314   : > { %3485 = vpow2.f32 %v1884_v22  ;;  %v1832_v27 = vmul.f32 1.442695, %v1696_v9  ;;  %v1698_v7 = vsub.f32 %v5811_v24, %v1513_v59  ;;  %v1699_v60 = vsub.f32 %v5812_v19, %v1513_v59  ;;  %v5815_v22 = vld [vmem:[#allocation67_spill] sm:$0xff] }
 0x315   : > { %3487 = vpow2.f32 %v1886_v20  ;;  %v1834_v3 = vmul.f32 1.442695, %v1697_v11  ;;  %v1552_v40 = vpop.xlane.xlu0 %1551 }
 0x316   : > { %3489 = vpow2.f32 %v1832_v27  ;;  %v1836_v5 = vmul.f32 1.442695, %v1698_v7  ;;  %v1838_v26 = vmul.f32 1.442695, %v1699_v60  ;;  %v1724_v10 = vsub.f32 %v5813_v2, %v1552_v40  ;;  %v5817_v7 = vld [vmem:[#allocation38_spill] sm:$0xff]  ;;  %v5818_v60 = vld [vmem:[#allocation39_spill] sm:$0xff] }
 0x317   : > { %3491 = vpow2.f32 %v1834_v3  ;;  %v1725_v62 = vsub.f32 %v5814_v6, %v1552_v40  ;;  %v1555_v58 = vpop.xlane.xlu1 %1554 }
 0x318   : > { %3493 = vpow2.f32 %v1836_v5  ;;  %v1888_v61 = vmul.f32 1.442695, %v1724_v10  ;;  %v1726_v9 = vsub.f32 %v5815_v22, %v1555_v58  ;;  %v1727_v24 = vsub.f32 %v5816_v16, %v1555_v58  ;;  %v5819_v10 = vld [vmem:[#allocation40_spill] sm:$0xff]  ;;  %v5820_v22 = vld [vmem:[#allocation41_spill] sm:$0xff] }
 0x319   : > { %3495 = vpow2.f32 %v1838_v26  ;;  %v1890_v59 = vmul.f32 1.442695, %v1725_v62  ;;  %v1516_v20 = vpop.xlane.xlu0 %1515 }
 0x31a   : > { %3497 = vpow2.f32 %v1888_v61  ;;  %v1892_v11 = vmul.f32 1.442695, %v1726_v9  ;;  %v1894_v27 = vmul.f32 1.442695, %v1727_v24  ;;  %v1700_v19 = vsub.f32 %v5817_v7, %v1516_v20  ;;  %v5821_v24 = vld [vmem:[#allocation70_spill] sm:$0xff] }
 0x31b   : > { %3499 = vpow2.f32 %v1890_v59  ;;  %v1701_v3 = vsub.f32 %v5818_v60, %v1516_v20  ;;  %v1519_v2 = vpop.xlane.xlu1 %1518  ;;  %v5822_v20 = vld [vmem:[#allocation72_spill] sm:$0xff] }
 0x31c   : > { %v3482_v40 = vpop.eup %3481  ;;  %3501 = vpow2.f32 %v1892_v11  ;;  %v1840_v5 = vmul.f32 1.442695, %v1700_v19  ;;  %v1702_v6 = vsub.f32 %v5819_v10, %v1519_v2  ;;  %v1703_v25 = vsub.f32 %v5820_v22, %v1519_v2  ;;  %v5825_v22 = vld [vmem:[#allocation76_spill] sm:$0xff] }
 0x31d   : > { %v3484_v58 = vpop.eup %3483  ;;  %3503 = vpow2.f32 %v1894_v27  ;;  %v1842_v26 = vmul.f32 1.442695, %v1701_v3  ;;  %v1558_v62 = vpop.xlane.xlu0 %1557  ;;  %v5824_v27 = vld [vmem:[#allocation74_spill] sm:$0xff] }
 0x31e   : > { %v3486_v61 = vpop.eup %3485  ;;  %3505 = vpow2.f32 %v1840_v5  ;;  %v1844_v9 = vmul.f32 1.442695, %v1702_v6  ;;  %v1846_v16 = vmul.f32 1.442695, %v1703_v25  ;;  %v1728_v59 = vsub.f32 %v5821_v24, %v1558_v62 }
 0x31f   : > { %v3488_v7 = vpop.eup %3487  ;;  %3507 = vpow2.f32 %v1842_v26  ;;  %v1729_v60 = vsub.f32 %v5822_v20, %v1558_v62  ;;  %v1561_v11 = vpop.xlane.xlu1 %1560  ;;  %v2280_v19 = vpack.c.bf16 %v3486_v61, %v3482_v40  ;;  %v4862_v55 = vadd.f32 %v3484_v58, %v3482_v40  ;;  %v5827_v40 = vld [vmem:[#allocation42_spill] sm:$0xff] }
 0x320   : > { %v3490_v10 = vpop.eup %3489  ;;  %3509 = vpow2.f32 %v1844_v9  ;;  %v1896_v2 = vmul.f32 1.442695, %v1728_v59  ;;  %v1730_v3 = vsub.f32 %v5824_v27, %v1561_v11  ;;  %v1731_v33 = vsub.f32 %v5825_v22, %v1561_v11  ;;  %v5828_v9 = vld [vmem:[#allocation44_spill] sm:$0xff] }
 0x321   : > { %5823 = vst [vmem:[#allocation62_spill] sm:$0xff] %v4862_v55  ;;  %v3492_v5 = vpop.eup %3491  ;;  %3511 = vpow2.f32 %v1846_v16  ;;  %v1898_v25 = vmul.f32 1.442695, %v1729_v60  ;;  %v1522_v6 = vpop.xlane.xlu0 %1521  ;;  %v2281_v24 = vpack.c.bf16 %v3488_v7, %v3484_v58  ;;  %v4866_v23 = vadd.f32 %v3488_v7, %v3486_v61  ;;  %v5829_v61 = vld [vmem:[#allocation46_spill] sm:$0xff] }
 0x322   : > { %v3494_v26 = vpop.eup %3493  ;;  %3513 = vpow2.f32 %v1896_v2  ;;  %v1900_v62 = vmul.f32 1.442695, %v1730_v3  ;;  %v1902_v20 = vmul.f32 1.442695, %v1731_v33  ;;  %v1704_v55 = vsub.f32 %v5827_v40, %v1522_v6 }
 0x323   : > { %5826 = vst [vmem:[#allocation63_spill] sm:$0xff] %v4866_v23  ;;  %v3496_v0 = vpop.eup %3495  ;;  %3515 = vpow2.f32 %v1898_v25  ;;  %v1705_v59 = vsub.f32 %v5828_v9, %v1522_v6  ;;  %2377 = vmatprep.subr.bf16.mxu0 %v2281_v24  ;;  %v2084_v27 = vadd.f32 %v3492_v5, %v3490_v10  ;;  %v1525_v11 = vpop.xlane.xlu1 %1524  ;;  %v2268_v22 = vpack.c.bf16 %v3494_v26, %v3490_v10  ;;  %v5830_v10 = vld [vmem:[#allocation78_spill] sm:$0xff] }
 0x324   : > { %v3498_v16 = vpop.eup %3497  ;;  %3517 = vpow2.f32 %v1900_v62  ;;  %v1848_v60 = vmul.f32 1.442695, %v1704_v55  ;;  %2378 = vmatpush1.bf16.xpose.msra.mxu0 %v2280_v19  ;;  %v1706_v58 = vsub.f32 %v4424_v50, %v1525_v11  ;;  %v1707_v7 = vsub.f32 %v5829_v61, %v1525_v11  ;;  %v5831_v55 = vld [vmem:[#allocation80_spill] sm:$0xff] }
 0x325   : > { %v3500_v2 = vpop.eup %3499  ;;  %3519 = vpow2.f32 %v1902_v20  ;;  %v1850_v33 = vmul.f32 1.442695, %v1705_v59  ;;  %2085 = vadd.xlane.f32.xlu0 %v2084_v27  ;;  %v1564_v3 = vpop.xlane.xlu0 %1563  ;;  %v2269_v25 = vpack.c.bf16 %v3496_v0, %v3492_v5  ;;  %v2087_v40 = vadd.f32 %v3496_v0, %v3494_v26  ;;  %v5832_v0 = vld [vmem:[#allocation82_spill] sm:$0xff]  ;;  %v5833_v27 = vld [vmem:[#allocation84_spill] sm:$0xff] }
 0x326   : > { %v3502_v6 = vpop.eup %3501  ;;  %3521 = vpow2.f32 %v1848_v60  ;;  %v1852_v24 = vmul.f32 1.442695, %v1706_v58  ;;  %v1854_v9 = vmul.f32 1.442695, %v1707_v7  ;;  %v1732_v23 = vsub.f32 %v5830_v10, %v1564_v3 }
 0x327   : > { %v3504_v62 = vpop.eup %3503  ;;  %3523 = vpow2.f32 %v1850_v33  ;;  %v1733_v19 = vsub.f32 %v5831_v55, %v1564_v3  ;;  %2332 = vmatprep.subr.bf16.mxu1 %v2269_v25  ;;  %2088 = vadd.xlane.f32.xlu1 %v2087_v40  ;;  %v1567_v50 = vpop.xlane.xlu1 %1566  ;;  %v2282_v11 = vpack.c.bf16 %v3502_v6, %v3498_v16  ;;  %v4874_v20 = vadd.f32 %v3500_v2, %v3498_v16 }
 0x328   : > { %v3506_v59 = vpop.eup %3505  ;;  %3525 = vpow2.f32 %v1852_v24  ;;  %v1904_v5 = vmul.f32 1.442695, %v1732_v23  ;;  %2333 = vmatpush1.bf16.xpose.msra.mxu1 %v2268_v22  ;;  %v1734_v26 = vsub.f32 %v5832_v0, %v1567_v50  ;;  %v1735_v60 = vsub.f32 %v5833_v27, %v1567_v50  ;;  %v5834_v23 = vld [vmem:[#allocation47_spill] sm:$0xff] }
 0x329   : > { %v3508_v58 = vpop.eup %3507  ;;  %3527 = vpow2.f32 %v1854_v9  ;;  %v1906_v61 = vmul.f32 1.442695, %v1733_v19  ;;  %v1528_v7 = vpop.xlane.xlu0 %1527  ;;  %v2283_v33 = vpack.c.bf16 %v3504_v62, %v3500_v2  ;;  %v4878_v3 = vadd.f32 %v3504_v62, %v3502_v6  ;;  %v5835_v6 = vld [vmem:[#allocation49_spill] sm:$0xff] }
 0x32a   : > { %v3510_v25 = vpop.eup %3509  ;;  %3529 = vpow2.f32 %v1904_v5  ;;  %v1908_v40 = vmul.f32 1.442695, %v1734_v26  ;;  %v1910_v16 = vmul.f32 1.442695, %v1735_v60  ;;  %v1708_v10 = vsub.f32 %v4440_v38, %v1528_v7 }
 0x32b   : > { %v3512_v24 = vpop.eup %3511  ;;  %3531 = vpow2.f32 %v1906_v61  ;;  %v1709_v22 = vsub.f32 %v5834_v23, %v1528_v7  ;;  %2379 = vmatprep.subr.bf16.mxu0 %v2283_v33  ;;  %v2090_v55 = vadd.f32 %v3508_v58, %v3506_v59  ;;  %v1531_v50 = vpop.xlane.xlu1 %1530  ;;  %v2270_v0 = vpack.c.bf16 %v3510_v25, %v3506_v59 }
 0x32c   : > { %v3514_v9 = vpop.eup %3513  ;;  %3533 = vpow2.f32 %v1908_v40  ;;  %v1856_v19 = vmul.f32 1.442695, %v1708_v10  ;;  %2380 = vmatpush1.bf16.xpose.msra.mxu0 %v2282_v11  ;;  %v1710_v2 = vsub.f32 %v4448_v43, %v1531_v50  ;;  %v1711_v62 = vsub.f32 %v5835_v6, %v1531_v50  ;;  %v5836_v11 = vld [vmem:[#allocation86_spill] sm:$0xff] }
 0x32d   : > { %v3516_v5 = vpop.eup %3515  ;;  %3535 = vpow2.f32 %v1910_v16  ;;  %v1858_v26 = vmul.f32 1.442695, %v1709_v22  ;;  %2091 = vadd.xlane.f32.xlu0 %v2090_v55  ;;  %v1570_v38 = vpop.xlane.xlu0 %1569  ;;  %v2271_v27 = vpack.c.bf16 %v3512_v24, %v3508_v58  ;;  %v2093_v60 = vadd.f32 %v3512_v24, %v3510_v25 }
 0x32e   : > { %v3518_v61 = vpop.eup %3517  ;;  %3537 = vpow2.f32 %v1856_v19  ;;  %v1860_v7 = vmul.f32 1.442695, %v1710_v2  ;;  %v1862_v33 = vmul.f32 1.442695, %v1711_v62  ;;  %v1736_v59 = vsub.f32 %v4629_v37, %v1570_v38 }
 0x32f   : > { %v3520_v40 = vpop.eup %3519  ;;  %3539 = vpow2.f32 %v1858_v26  ;;  %v1737_v10 = vsub.f32 %v5836_v11, %v1570_v38  ;;  %2334 = vmatprep.subr.bf16.mxu1 %v2271_v27  ;;  %2094 = vadd.xlane.f32.xlu1 %v2093_v60  ;;  %v1573_v43 = vpop.xlane.xlu1 %1572  ;;  %v2284_v23 = vpack.c.bf16 %v3518_v61, %v3514_v9  ;;  %v4886_v16 = vadd.f32 %v3516_v5, %v3514_v9  ;;  %v5837_v26 = vld [vmem:[#allocation51_spill] sm:$0xff] }
 0x330   : > { %v3522_v22 = vpop.eup %3521  ;;  %3541 = vpow2.f32 %v1860_v7  ;;  %v1912_v58 = vmul.f32 1.442695, %v1736_v59  ;;  %2335 = vmatpush1.bf16.xpose.msra.mxu1 %v2270_v0  ;;  %v1738_v25 = vsub.f32 %v4633_v12, %v1573_v43  ;;  %v1739_v24 = vsub.f32 %v4640_v21, %v1573_v43  ;;  %v5838_v0 = vld [vmem:[#allocation52_spill] sm:$0xff]  ;;  %v5839_v59 = vld [vmem:[#allocation55_spill] sm:$0xff] }
 0x331   : > { %v3524_v55 = vpop.eup %3523  ;;  %3543 = vpow2.f32 %v1862_v33  ;;  %v1914_v37 = vmul.f32 1.442695, %v1737_v10  ;;  %v1534_v50 = vpop.xlane.xlu0 %1533  ;;  %v2285_v19 = vpack.c.bf16 %v3520_v40, %v3516_v5  ;;  %v4890_v2 = vadd.f32 %v3520_v40, %v3518_v61 }
 0x332   : > { %v3526_v6 = vpop.eup %3525  ;;  %3545 = vpow2.f32 %v1912_v58  ;;  %v1916_v62 = vmul.f32 1.442695, %v1738_v25  ;;  %v1918_v9 = vmul.f32 1.442695, %v1739_v24  ;;  %v1712_v38 = vsub.f32 %v5837_v26, %v1534_v50 }
 0x333   : > { %v3528_v27 = vpop.eup %3527  ;;  %3547 = vpow2.f32 %v1914_v37  ;;  %v1713_v60 = vsub.f32 %v5838_v0, %v1534_v50  ;;  %2381 = vmatprep.subr.bf16.mxu0 %v2285_v19  ;;  %v1537_v12 = vpop.xlane.xlu1 %1536  ;;  %v2272_v21 = vpack.c.bf16 %v3526_v6, %v3522_v22  ;;  %v4894_v7 = vadd.f32 %v3524_v55, %v3522_v22 }
 0x334   : > { %v3530_v33 = vpop.eup %3529  ;;  %3549 = vpow2.f32 %v1916_v62  ;;  %v1864_v5 = vmul.f32 1.442695, %v1712_v38  ;;  %2382 = vmatpush1.bf16.xpose.msra.mxu0 %v2284_v23  ;;  %v1714_v61 = vsub.f32 %v4472_v56, %v1537_v12  ;;  %v1715_v40 = vsub.f32 %v5839_v59, %v1537_v12  ;;  %v5840_v56 = vld [vmem:[#allocation87_spill] sm:$0xff] }
 0x335   : > { %v3532_v11 = vpop.eup %3531  ;;  %3551 = vpow2.f32 %v1918_v9  ;;  %v1866_v10 = vmul.f32 1.442695, %v1713_v60  ;;  %v1576_v43 = vpop.xlane.xlu0 %1575  ;;  %v2273_v58 = vpack.c.bf16 %v3528_v27, %v3524_v55  ;;  %v4898_v25 = vadd.f32 %v3528_v27, %v3526_v6 }
 0x336   : > { %v4900_v24 = vpop.eup %3533  ;;  %3553 = vpow2.f32 %v1864_v5  ;;  %v1868_v22 = vmul.f32 1.442695, %v1714_v61  ;;  %v1870_v37 = vmul.f32 1.442695, %v1715_v40  ;;  %v1740_v50 = vsub.f32 %v4647_v52, %v1576_v43 }
 0x337   : > { %v4903_v19 = vpop.eup %3535  ;;  %3555 = vpow2.f32 %v1866_v10  ;;  %v1741_v23 = vsub.f32 %v5840_v56, %v1576_v43  ;;  %2336 = vmatprep.subr.bf16.mxu1 %v2273_v58  ;;  %v1579_v62 = vpop.xlane.xlu1 %1578  ;;  %v2286_v9 = vpack.c.bf16 %v4900_v24, %v3530_v33  ;;  %v4907_v26 = vadd.f32 %v3532_v11, %v3530_v33  ;;  %v5841_v33 = vld [vmem:[#allocation57_spill] sm:$0xff]  ;;  %v5842_v43 = vld [vmem:[#allocation59_spill] sm:$0xff] }
 0x338   : > { %v3538_v55 = vpop.eup %3537  ;;  %3557 = vpow2.f32 %v1868_v22  ;;  %v1920_v6 = vmul.f32 1.442695, %v1740_v50  ;;  %2337 = vmatpush1.bf16.xpose.msra.mxu1 %v2272_v21  ;;  %v1742_v38 = vsub.f32 %v4651_v47, %v1579_v62  ;;  %v1743_v27 = vsub.f32 %v4658_v13, %v1579_v62  ;;  %v5843_v50 = vld [vmem:[#allocation61_spill] sm:$0xff] }
 0x339   : > { %v3540_v52 = vpop.eup %3539  ;;  %3559 = vpow2.f32 %v1870_v37  ;;  %v1922_v0 = vmul.f32 1.442695, %v1741_v23  ;;  %v1540_v60 = vpop.xlane.xlu0 %1539  ;;  %v2287_v12 = vpack.c.bf16 %v4903_v19, %v3532_v11 }
 0x33a   : > { %v3542_v5 = vpop.eup %3541  ;;  %3561 = vpow2.f32 %v1920_v6  ;;  %v1924_v61 = vmul.f32 1.442695, %v1742_v38  ;;  %v1926_v59 = vmul.f32 1.442695, %v1743_v27  ;;  %v1716_v40 = vsub.f32 %v5841_v33, %v1540_v60 }
 0x33b   : > { %v3544_v10 = vpop.eup %3543  ;;  %3563 = vpow2.f32 %v1922_v0  ;;  %v1717_v21 = vsub.f32 %v5842_v43, %v1540_v60  ;;  %2383 = vmatprep.subr.bf16.mxu0 %v2287_v12  ;;  %v1543_v47 = vpop.xlane.xlu1 %1542  ;;  %v2274_v58 = vpack.c.bf16 %v3542_v5, %v3538_v55  ;;  %v4914_v13 = vadd.f32 %v3540_v52, %v3538_v55 }
 0x33c   : > { %v4916_v22 = vpop.eup %3545  ;;  %3565 = vpow2.f32 %v1924_v61  ;;  %v1872_v37 = vmul.f32 1.442695, %v1716_v40  ;;  %2384 = vmatpush1.bf16.xpose.msra.mxu0 %v2286_v9  ;;  %v1718_v11 = vsub.f32 %v4496_v35, %v1543_v47  ;;  %v1719_v56 = vsub.f32 %v5843_v50, %v1543_v47  ;;  %v5844_v9 = vld [vmem:[#allocation88_spill] sm:$0xff] }
 0x33d   : > { %v4920_v23 = vpop.eup %3547  ;;  %3567 = vpow2.f32 %v1926_v59  ;;  %v1874_v62 = vmul.f32 1.442695, %v1717_v21  ;;  %v1582_v6 = vpop.xlane.xlu0 %1581  ;;  %v2275_v38 = vpack.c.bf16 %v3544_v10, %v3540_v52  ;;  %v4922_v27 = vadd.f32 %v3544_v10, %v3542_v5 }
 0x33e   : > { %v3550_v0 = vpop.eup %3549  ;;  %3569 = vpow2.f32 %v1872_v37  ;;  %v1876_v55 = vmul.f32 1.442695, %v1718_v11  ;;  %v1878_v60 = vmul.f32 1.442695, %v1719_v56  ;;  %v1744_v12 = vsub.f32 %v4665_v36, %v1582_v6 }
 0x33f   : > { %v3552_v61 = vpop.eup %3551  ;;  %3571 = vpow2.f32 %v1874_v62  ;;  %v1745_v35 = vsub.f32 %v5844_v9, %v1582_v6  ;;  %2338 = vmatprep.subr.bf16.mxu1 %v2275_v38  ;;  %v1585_v33 = vpop.xlane.xlu1 %1584  ;;  %v2288_v40 = vpack.c.bf16 %v3550_v0, %v4916_v22  ;;  %v4932_v37 = vadd.f32 %v4903_v19, %v4900_v24  ;;  %v5845_v62 = vld [vmem:[#allocation43_spill] sm:$0xff] }
 0x340   : > { %v3554_v59 = vpop.eup %3553  ;;  %3573 = vpow2.f32 %v1876_v55  ;;  %v1928_v43 = vmul.f32 1.442695, %v1744_v12  ;;  %2339 = vmatpush1.bf16.xpose.msra.mxu1 %v2274_v58  ;;  %v1746_v52 = vsub.f32 %v4669_v49, %v1585_v33  ;;  %v1747_v5 = vsub.f32 %v4676_v17, %v1585_v33  ;;  %v5846_v49 = vld [vmem:[#allocation45_spill] sm:$0xff] }
 0x341   : > { %v3556_v10 = vpop.eup %3555  ;;  %3575 = vpow2.f32 %v1878_v60  ;;  %v1930_v21 = vmul.f32 1.442695, %v1745_v35  ;;  %v1594_v36 = vpop.xlane.xlu0 %1593  ;;  %v2289_v47 = vpack.c.bf16 %v3552_v61, %v4920_v23 }
 0x342   : > { %v3558_v11 = vpop.eup %3557  ;;  %3577 = vpow2.f32 %v1928_v43  ;;  %v1932_v50 = vmul.f32 1.442695, %v1746_v52  ;;  %v1934_v56 = vmul.f32 1.442695, %v1747_v5  ;;  %v1752_v58 = vsub.f32 %v5845_v62, %v1594_v36 }
 0x343   : > { %v3560_v6 = vpop.eup %3559  ;;  %3579 = vpow2.f32 %v1930_v21  ;;  %v1753_v17 = vsub.f32 %v5846_v49, %v1594_v36  ;;  %2385 = vmatprep.subr.bf16.mxu0 %v2289_v47  ;;  %v1597_v38 = vpop.xlane.xlu1 %1596  ;;  %v2276_v55 = vpack.c.bf16 %v3558_v11, %v3554_v59  ;;  %v4936_v60 = vadd.f32 %v3556_v10, %v3554_v59  ;;  %v5847_v47 = vld [vmem:[#allocation89_spill] sm:$0xff] }
 0x344   : > { %v4938_v12 = vpop.eup %3561  ;;  %3581 = vpow2.f32 %v1932_v50  ;;  %v1944_v24 = vmul.f32 1.442695, %v1752_v58  ;;  %2386 = vmatpush1.bf16.xpose.msra.mxu0 %v2288_v40  ;;  %v1754_v19 = vsub.f32 %v4428_v45, %v1597_v38  ;;  %v1755_v9 = vsub.f32 %v4434_v29, %v1597_v38  ;;  %v5848_v45 = vld [vmem:[#allocation90_spill] sm:$0xff] }
 0x345   : > { %v4942_v35 = vpop.eup %3563  ;;  %3583 = vpow2.f32 %v1934_v56  ;;  %v1946_v33 = vmul.f32 1.442695, %v1753_v17  ;;  %v1588_v43 = vpop.xlane.xlu0 %1587  ;;  %v2277_v52 = vpack.c.bf16 %v3560_v6, %v3556_v10  ;;  %v4944_v5 = vadd.f32 %v3560_v6, %v3558_v11 }
 0x346   : > { %v4946_v21 = vpop.eup %3565  ;;  %3585 = vpow2.f32 %v1944_v24  ;;  %v1948_v59 = vmul.f32 1.442695, %v1754_v19  ;;  %v1950_v36 = vmul.f32 1.442695, %v1755_v9  ;;  %v1748_v50 = vsub.f32 %v5847_v47, %v1588_v43 }
 0x347   : > { %v4949_v40 = vpop.eup %3567  ;;  %3587 = vpow2.f32 %v1946_v33  ;;  %v1749_v29 = vsub.f32 %v5848_v45, %v1588_v43  ;;  %2340 = vmatprep.subr.bf16.mxu1 %v2277_v52  ;;  %v1591_v62 = vpop.xlane.xlu1 %1590  ;;  %v2290_v56 = vpack.c.bf16 %v4946_v21, %v4938_v12  ;;  %v4954_v10 = vadd.f32 %v3552_v61, %v3550_v0 }
 0x348   : > { %v3570_v11 = vpop.eup %3569  ;;  %3589 = vpow2.f32 %v1948_v59  ;;  %v1936_v58 = vmul.f32 1.442695, %v1748_v50  ;;  %2341 = vmatpush1.bf16.xpose.msra.mxu1 %v2276_v55  ;;  %v1750_v6 = vsub.f32 %v4687_v51, %v1591_v62  ;;  %v1751_v49 = vsub.f32 %v4694_v53, %v1591_v62  ;;  %v5849_v53 = vld [vmem:[#allocation48_spill] sm:$0xff]  ;;  %v5850_v50 = vld [vmem:[#allocation50_spill] sm:$0xff] }
 0x349   : > { %v3572_v17 = vpop.eup %3571  ;;  %3591 = vpow2.f32 %v1950_v36  ;;  %v1938_v38 = vmul.f32 1.442695, %v1749_v29  ;;  %v1600_v24 = vpop.xlane.xlu0 %1599  ;;  %v2291_v19 = vpack.c.bf16 %v4949_v40, %v4942_v35  ;;  %v4962_v9 = vadd.f32 %v4920_v23, %v4916_v22 }
 0x34a   : > { %v3574_v0 = vpop.eup %3573  ;;  %3593 = vpow2.f32 %v1936_v58  ;;  %v1940_v61 = vmul.f32 1.442695, %v1750_v6  ;;  %v1942_v33 = vmul.f32 1.442695, %v1751_v49  ;;  %v1756_v55 = vsub.f32 %v4442_v15, %v1600_v24 }
 0x34b   : > { %v3576_v51 = vpop.eup %3575  ;;  %3595 = vpow2.f32 %v1938_v38  ;;  %v1757_v43 = vsub.f32 %v5849_v53, %v1600_v24  ;;  %2387 = vmatprep.subr.bf16.mxu0 %v2291_v19  ;;  %v1603_v52 = vpop.xlane.xlu1 %1602  ;;  %v2278_v59 = vpack.c.bf16 %v3574_v0, %v3570_v11  ;;  %v4966_v36 = vadd.f32 %v3572_v17, %v3570_v11  ;;  %v5851_v24 = vld [vmem:[#allocation91_spill] sm:$0xff] }
 0x34c   : > { %v4968_v47 = vpop.eup %3577  ;;  %3597 = vpow2.f32 %v1940_v61  ;;  %v1952_v22 = vmul.f32 1.442695, %v1756_v55  ;;  %2388 = vmatpush1.bf16.xpose.msra.mxu0 %v2290_v56  ;;  %v1758_v23 = vsub.f32 %v4452_v63, %v1603_v52  ;;  %v1759_v45 = vsub.f32 %v5850_v50, %v1603_v52  ;;  %v5852_v63 = vld [vmem:[#allocation92_spill] sm:$0xff] }
 0x34d   : > { %v4972_v29 = vpop.eup %3579  ;;  %3599 = vpow2.f32 %v1942_v33  ;;  %v1954_v15 = vmul.f32 1.442695, %v1757_v43  ;;  %v1642_v62 = vpop.xlane.xlu0 %1641  ;;  %v2279_v58 = vpack.c.bf16 %v3576_v51, %v3572_v17  ;;  %v4974_v6 = vadd.f32 %v3576_v51, %v3574_v0 }
 0x34e   : > { %v4976_v49 = vpop.eup %3581  ;;  %3601 = vpow2.f32 %v1952_v22  ;;  %v1956_v11 = vmul.f32 1.442695, %v1758_v23  ;;  %v1958_v38 = vmul.f32 1.442695, %v1759_v45  ;;  %v1784_v19 = vsub.f32 %v5851_v24, %v1642_v62 }
 0x34f   : > { %v4979_v56 = vpop.eup %3583  ;;  %3603 = vpow2.f32 %v1954_v15  ;;  %v1785_v61 = vsub.f32 %v5852_v63, %v1642_v62  ;;  %2342 = vmatprep.subr.bf16.mxu1 %v2279_v58  ;;  %v1645_v55 = vpop.xlane.xlu1 %1644  ;;  %v2292_v33 = vpack.c.bf16 %v4976_v49, %v4968_v47  ;;  %v4986_v17 = vadd.f32 %v4942_v35, %v4938_v12  ;;  %v5855_v63 = vld [vmem:[#allocation56_spill] sm:$0xff] }
 0x350   : > { %v3586_v0 = vpop.eup %3585  ;;  %3605 = vpow2.f32 %v1956_v11  ;;  %v2008_v51 = vmul.f32 1.442695, %v1784_v19  ;;  %2343 = vmatpush1.bf16.xpose.msra.mxu1 %v2278_v59  ;;  %v1786_v53 = vsub.f32 %v4708_v41, %v1645_v55  ;;  %v1787_v43 = vsub.f32 %v4712_v31, %v1645_v55  ;;  %v5853_v31 = vld [vmem:[#allocation53_spill] sm:$0xff] }
 0x351   : > { %v3588_v52 = vpop.eup %3587  ;;  %3607 = vpow2.f32 %v1958_v38  ;;  %v2010_v22 = vmul.f32 1.442695, %v1785_v61  ;;  %v1606_v23 = vpop.xlane.xlu0 %1605  ;;  %v2293_v50 = vpack.c.bf16 %v4979_v56, %v4972_v29  ;;  %v4994_v45 = vadd.f32 %v4949_v40, %v4946_v21  ;;  %v5854_v21 = vld [vmem:[#allocation54_spill] sm:$0xff] }
 0x352   : > { %v3590_v12 = vpop.eup %3589  ;;  %3609 = vpow2.f32 %v2008_v51  ;;  %v2012_v35 = vmul.f32 1.442695, %v1786_v53  ;;  %v2014_v15 = vmul.f32 1.442695, %v1787_v43  ;;  %v1760_v59 = vsub.f32 %v4466_v54, %v1606_v23 }
 0x353   : > { %v3592_v41 = vpop.eup %3591  ;;  %3611 = vpow2.f32 %v2010_v22  ;;  %v1761_v62 = vsub.f32 %v5853_v31, %v1606_v23  ;;  %2389 = vmatprep.subr.bf16.mxu0 %v2293_v50  ;;  %v2168_v58 = vadd.f32 %v3588_v52, %v3586_v0  ;;  %v1609_v11 = vpop.xlane.xlu1 %1608  ;;  %v2296_v38 = vpack.c.bf16 %v3590_v12, %v3586_v0  ;;  %v5856_v50 = vld [vmem:[#allocation93_spill] sm:$0xff] }
 0x354   : > { %v4998_v24 = vpop.eup %3593  ;;  %3613 = vpow2.f32 %v2012_v35  ;;  %v1960_v19 = vmul.f32 1.442695, %v1760_v59  ;;  %2390 = vmatpush1.bf16.xpose.msra.mxu0 %v2292_v33  ;;  %v1762_v40 = vsub.f32 %v5854_v21, %v1609_v11  ;;  %v1763_v61 = vsub.f32 %v5855_v63, %v1609_v11  ;;  %v5857_v59 = vld [vmem:[#allocation94_spill] sm:$0xff]  ;;  %v5858_v11 = vld [vmem:[#allocation7_spill] sm:$0xff] }
 0x355   : > { %v5002_v55 = vpop.eup %3595  ;;  %3615 = vpow2.f32 %v2014_v15  ;;  %v1962_v54 = vmul.f32 1.442695, %v1761_v62  ;;  %2169 = vadd.xlane.f32.xlu0 %v2168_v58  ;;  %v1648_v51 = vpop.xlane.xlu0 %1647  ;;  %v2297_v53 = vpack.c.bf16 %v3592_v41, %v3588_v52  ;;  %v2171_v43 = vadd.f32 %v3592_v41, %v3590_v12  ;;  %v5859_v21 = vld [vmem:[#allocation6_spill] sm:$0xff] }
 0x356   : > { %v5004_v22 = vpop.eup %3597  ;;  %3617 = vpow2.f32 %v1960_v19  ;;  %v1964_v0 = vmul.f32 1.442695, %v1762_v40  ;;  %v1966_v23 = vmul.f32 1.442695, %v1763_v61  ;;  %v1788_v35 = vsub.f32 %v5856_v50, %v1648_v51  ;;  %v5861_v19 = vld [vmem:[#allocation11_spill] sm:$0xff]  ;;  %v5862_v40 = vld [vmem:[#allocation9_spill] sm:$0xff] }
 0x357   : > { %v5007_v33 = vpop.eup %3599  ;;  %3619 = vpow2.f32 %v1962_v54  ;;  %v1789_v31 = vsub.f32 %v5857_v59, %v1648_v51  ;;  %v5860_v15 = vpack.c.bf16 %v5858_v11, %v5859_v21  ;;  %2426 = vmatprep.subr.bf16.mxu1 %v2297_v53  ;;  %v1651_v62 = vpop.xlane.xlu1 %1650  ;;  %v2294_v52 = vpack.c.bf16 %v5004_v22, %v4998_v24  ;;  %2172 = vadd.xlane.f32.xlu1 %v2171_v43  ;;  %v5864_v61 = vld [vmem:[#allocation95_spill] sm:$0xff]  ;;  %v5865_v51 = vld [vmem:[#allocation96_spill] sm:$0xff]  ;;  %v5866_v21 = vld [vmem:[#allocation58_spill] sm:$0xff] }
 0x358   : > { %v5017_v12 = vadd.f32 %v4972_v29, %v4968_v47  ;;  %v3602_v41 = vpop.eup %3601  ;;  %3621 = vpow2.f32 %v1964_v0  ;;  %v2016_v58 = vmul.f32 1.442695, %v1788_v35  ;;  %v5863_v63 = vpack.c.bf16 %v5861_v19, %v5862_v40 }
 0x359   : > { %2361 = vmatmul.mubr.bf16.vlgmr.msra.gmra.mrb[96].mxu1 %v5860_v15  ;;  %v1790_v54 = vsub.f32 %v5864_v61, %v1651_v62  ;;  %v1791_v53 = vsub.f32 %v5865_v51, %v1651_v62  ;;  %v3604_v50 = vpop.eup %3603  ;;  %3623 = vpow2.f32 %v1966_v23  ;;  %v2018_v59 = vmul.f32 1.442695, %v1789_v31  ;;  %2097 = vadd.xlane.f32.xlu0 %v4894_v7  ;;  %v1612_v47 = vpop.xlane.xlu0 %1611  ;;  %v5867_v23 = vld [vmem:[#allocation60_spill] sm:$0xff] }
 0x35a   : > { %2368 = vmatprep.mubr.bf16.mxu1 %v5863_v63  ;;  %2427 = vmatpush1.bf16.xpose.msra.mxu1 %v2296_v38  ;;  %v2295_v29 = vpack.c.bf16 %v5007_v33, %v5002_v55  ;;  %v5029_v43 = vadd.f32 %v4979_v56, %v4976_v49  ;;  %v3606_v0 = vpop.eup %3605  ;;  %3625 = vpow2.f32 %v2016_v58  ;;  %v1764_v15 = vsub.f32 %v5866_v21, %v1612_v47  ;;  %v5870_v21 = vld [vmem:[#allocation8_spill] sm:$0xff] }
 0x35b   : > { %v2020_v35 = vmul.f32 1.442695, %v1790_v54  ;;  %v2022_v11 = vmul.f32 1.442695, %v1791_v53  ;;  %v3608_v62 = vpop.eup %3607  ;;  %3627 = vpow2.f32 %v2018_v59  ;;  %v1765_v38 = vsub.f32 %v5867_v23, %v1612_v47  ;;  %v1615_v31 = vpop.xlane.xlu1 %1614 }
 0x35c   : > { %2391 = vmatprep.subr.bf16.mxu0 %v2295_v29  ;;  %v2174_v7 = vadd.f32 %v3604_v50, %v3602_v41  ;;  %v2298_v19 = vpack.c.bf16 %v3606_v0, %v3602_v41  ;;  %v5033_v40 = vpop.eup %3609  ;;  %v1968_v63 = vmul.f32 1.442695, %v1764_v15  ;;  %v1766_v49 = vsub.f32 %v4500_v48, %v1615_v31  ;;  %v5868_v48 = vld [vmem:[#allocation97_spill] sm:$0xff] }
 0x35d   : > { %3629 = vpow2.f32 %v2020_v35  ;;  %2392 = vmatpush1.bf16.xpose.msra.mxu0 %v2294_v52  ;;  %v1767_v56 = vsub.f32 %v4506_v42, %v1615_v31  ;;  %v5037_v58 = vpop.eup %3611  ;;  %v1970_v61 = vmul.f32 1.442695, %v1765_v38  ;;  %2103 = vadd.xlane.f32.xlu0 %v4914_v13  ;;  %v1654_v54 = vpop.xlane.xlu0 %1653  ;;  %v2299_v51 = vpack.c.bf16 %v3608_v62, %v3604_v50  ;;  %v5869_v35 = vld [vmem:[#allocation10_spill] sm:$0xff] }
 0x35e   : > { %3631 = vpow2.f32 %v2022_v11  ;;  %2175 = vadd.xlane.f32.xlu1 %v2174_v7  ;;  %v2177_v53 = vadd.f32 %v3608_v62, %v3606_v0  ;;  %v3614_v41 = vpop.eup %3613  ;;  %v1972_v59 = vmul.f32 1.442695, %v1766_v49  ;;  %v1792_v52 = vsub.f32 %v4737_v1, %v1654_v54  ;;  %v5872_v0 = vld [vmem:[#allocation21_spill] sm:$0xff]  ;;  %v5873_v62 = vld [vmem:[#allocation19_spill] sm:$0xff] }
 0x35f   : > { %3633 = vpow2.f32 %v1968_v63  ;;  %v1974_v47 = vmul.f32 1.442695, %v1767_v56  ;;  %v3616_v29 = vpop.eup %3615  ;;  %v1793_v42 = vsub.f32 %v5868_v48, %v1654_v54  ;;  %v5871_v11 = vpack.c.bf16 %v5869_v35, %v5870_v21  ;;  %2428 = vmatprep.subr.bf16.mxu1 %v2299_v51  ;;  %v5878_v21 = vld [vmem:[#allocation17_spill] sm:$0xff] }
 0x360   : > { %3635 = vpow2.f32 %v1970_v61  ;;  %v2312_v13 = vpack.c.bf16 %v3614_v41, %v5033_v40  ;;  %v3618_v15 = vpop.eup %3617  ;;  %v2024_v50 = vmul.f32 1.442695, %v1792_v52  ;;  %v5874_v23 = vpack.c.bf16 %v5872_v0, %v5873_v62  ;;  %v1657_v38 = vpop.xlane.xlu1 %1656 }
 0x361   : > { %2369 = vmatmul.mubr.bf16.gmra.mrb[100].mxu1 %v5871_v11  ;;  %3637 = vpow2.f32 %v1972_v59  ;;  %v2313_v1 = vpack.c.bf16 %v3616_v29, %v5037_v58  ;;  %v5050_v7 = vadd.f32 %v3616_v29, %v3614_v41  ;;  %v3620_v31 = vpop.eup %3619  ;;  %v2026_v63 = vmul.f32 1.442695, %v1793_v42  ;;  %2106 = vadd.xlane.f32.xlu0 %v4922_v27  ;;  %v1618_v61 = vpop.xlane.xlu0 %1617  ;;  %v5875_v29 = vld [vmem:[#allocation13_spill] sm:$0xff]  ;;  %v5876_v27 = vld [vmem:[#allocation12_spill] sm:$0xff] }
 0x362   : > { %2458 = vmatprep.mubr.bf16.mxu1 %v5874_v23  ;;  %3639 = vpow2.f32 %v1974_v47  ;;  %2429 = vmatpush1.bf16.xpose.msra.mxu1 %v2298_v19  ;;  %v1794_v49 = vsub.f32 %v4746_v8, %v1657_v38  ;;  %v1795_v56 = vsub.f32 %v4750_v32, %v1657_v38  ;;  %v3622_v54 = vpop.eup %3621  ;;  %v1768_v51 = vsub.f32 %v4514_v30, %v1618_v61 }
 0x363   : > { %3641 = vpow2.f32 %v2024_v50  ;;  %2178 = vadd.xlane.f32.xlu1 %v2177_v53  ;;  %v1769_v59 = vsub.f32 %v4518_v18, %v1618_v61  ;;  %2475 = vmatprep.subr.bf16.mxu0 %v2313_v1  ;;  %v2180_v41 = vadd.f32 %v3620_v31, %v3618_v15  ;;  %v3624_v52 = vpop.eup %3623  ;;  %v5877_v48 = vpack.c.bf16 %v5875_v29, %v5876_v27  ;;  %v5879_v53 = vld [vmem:[#allocation15_spill] sm:$0xff] }
 0x364   : > { %3643 = vpow2.f32 %v2026_v63  ;;  %v2028_v47 = vmul.f32 1.442695, %v1794_v49  ;;  %v2030_v19 = vmul.f32 1.442695, %v1795_v56  ;;  %v2300_v8 = vpack.c.bf16 %v3622_v54, %v3618_v15  ;;  %v3626_v32 = vpop.eup %3625  ;;  %v1621_v18 = vpop.xlane.xlu1 %1620  ;;  %v5881_v63 = vld [vmem:[#allocation98_spill] sm:$0xff] }
 0x365   : > { %2410 = vmatmul.mubr.bf16.vlgmr.msra.gmra.mrb[112].mxu0 %v5877_v48  ;;  %v1976_v42 = vmul.f32 1.442695, %v1768_v51  ;;  %v1978_v35 = vmul.f32 1.442695, %v1769_v59  ;;  %v5880_v11 = vpack.c.bf16 %v5878_v21, %v5879_v53  ;;  %v2301_v30 = vpack.c.bf16 %v3624_v52, %v3620_v31  ;;  %v3628_v0 = vpop.eup %3627  ;;  %2109 = vadd.xlane.f32.xlu0 %v4936_v60  ;;  %v1660_v15 = vpop.xlane.xlu0 %1659  ;;  %v5882_v48 = vld [vmem:[#allocation66_spill] sm:$0xff] }
 0x366   : > { %2476 = vmatpush1.bf16.xpose.msra.mxu0 %v2312_v13  ;;  %v2183_v50 = vadd.f32 %v3624_v52, %v3622_v54  ;;  %3645 = vpow2.f32 %v2028_v47  ;;  %v1770_v62 = vsub.f32 %v4524_v34, %v1621_v18  ;;  %v1771_v23 = vsub.f32 %v4530_v28, %v1621_v18  ;;  %v5884_v53 = vld [vmem:[#allocation14_spill] sm:$0xff] }
 0x367   : > { %2417 = vmatprep.mubr.bf16.mxu0 %v5880_v11  ;;  %v3630_v38 = vpop.eup %3629  ;;  %3647 = vpow2.f32 %v2030_v19  ;;  %2181 = vadd.xlane.f32.xlu1 %v2180_v41  ;;  %v1796_v1 = vsub.f32 %v4759_v46, %v1660_v15  ;;  %v1797_v49 = vsub.f32 %v5881_v63, %v1660_v15  ;;  %v5068_v13 = vadd.f32 %v3628_v0, %v3626_v32  ;;  %v5889_v63 = vld [vmem:[#allocation69_spill] sm:$0xff] }
 0x368   : > { %2430 = vmatprep.subr.bf16.mxu1 %v2301_v30  ;;  %v3632_v31 = vpop.eup %3631  ;;  %3649 = vpow2.f32 %v1976_v42  ;;  %v1980_v56 = vmul.f32 1.442695, %v1770_v62  ;;  %v1982_v61 = vmul.f32 1.442695, %v1771_v23  ;;  %v2314_v60 = vpack.c.bf16 %v3630_v38, %v3626_v32  ;;  %v1663_v51 = vpop.xlane.xlu1 %1662 }
 0x369   : > { %v3634_v54 = vpop.eup %3633  ;;  %3651 = vpow2.f32 %v1978_v35  ;;  %v2032_v34 = vmul.f32 1.442695, %v1796_v1  ;;  %v2034_v28 = vmul.f32 1.442695, %v1797_v49  ;;  %v2315_v59 = vpack.c.bf16 %v3632_v31, %v3628_v0  ;;  %v1624_v47 = vpop.xlane.xlu0 %1623 }
 0x36a   : > { %v3636_v52 = vpop.eup %3635  ;;  %3653 = vpow2.f32 %v1980_v56  ;;  %2431 = vmatpush1.bf16.xpose.msra.mxu1 %v2300_v8  ;;  %v1798_v46 = vsub.f32 %v4765_v44, %v1663_v51  ;;  %v1799_v41 = vsub.f32 %v4772_v39, %v1663_v51  ;;  %v5072_v19 = vadd.f32 %v3632_v31, %v3630_v38  ;;  %v5883_v44 = vld [vmem:[#allocation16_spill] sm:$0xff] }
 0x36b   : > { %v3638_v29 = vpop.eup %3637  ;;  %3655 = vpow2.f32 %v1982_v61  ;;  %2100 = vadd.xlane.f32.xlu1 %v4898_v25  ;;  %v1772_v27 = vsub.f32 %v4541_v4, %v1624_v47  ;;  %v1773_v32 = vsub.f32 %v5882_v48, %v1624_v47  ;;  %2477 = vmatprep.subr.bf16.mxu0 %v2315_v59  ;;  %v2186_v42 = vadd.f32 %v3636_v52, %v3634_v54  ;;  %v5886_v25 = vld [vmem:[#allocation29_spill] sm:$0xff]  ;;  %v5887_v4 = vld [vmem:[#allocation27_spill] sm:$0xff] }
 0x36c   : > { %v3640_v35 = vpop.eup %3639  ;;  %3657 = vpow2.f32 %v2032_v34  ;;  %v2036_v8 = vmul.f32 1.442695, %v1798_v46  ;;  %v2038_v21 = vmul.f32 1.442695, %v1799_v41  ;;  %v5885_v39 = vpack.c.bf16 %v5883_v44, %v5884_v53  ;;  %v1627_v23 = vpop.xlane.xlu1 %1626  ;;  %v5890_v61 = vld [vmem:[#allocation99_spill] sm:$0xff]  ;;  %v5891_v34 = vld [vmem:[#allocation100_spill] sm:$0xff] }
 0x36d   : > { %v2302_v11 = vpack.c.bf16 %v3638_v29, %v3634_v54  ;;  %v3642_v18 = vpop.eup %3641  ;;  %3659 = vpow2.f32 %v2034_v28  ;;  %v1984_v30 = vmul.f32 1.442695, %v1772_v27  ;;  %v1986_v0 = vmul.f32 1.442695, %v1773_v32  ;;  %v1666_v31 = vpop.xlane.xlu0 %1665  ;;  %v5892_v48 = vld [vmem:[#allocation101_spill] sm:$0xff]  ;;  %v5893_v44 = vld [vmem:[#allocation71_spill] sm:$0xff] }
 0x36e   : > { %2418 = vmatmul.mubr.bf16.gmra.mrb[116].mxu0 %v5885_v39  ;;  %v5888_v62 = vpack.c.bf16 %v5886_v25, %v5887_v4  ;;  %v2303_v15 = vpack.c.bf16 %v3640_v35, %v3636_v52  ;;  %v3644_v38 = vpop.eup %3643  ;;  %3661 = vpow2.f32 %v2036_v8  ;;  %v1774_v1 = vsub.f32 %v4554_v14, %v1627_v23  ;;  %v5894_v39 = vld [vmem:[#allocation73_spill] sm:$0xff] }
 0x36f   : > { %2478 = vmatpush1.bf16.xpose.msra.mxu0 %v2314_v60  ;;  %v1775_v49 = vsub.f32 %v5889_v63, %v1627_v23  ;;  %v2189_v56 = vadd.f32 %v3640_v35, %v3638_v29  ;;  %3663 = vpow2.f32 %v2038_v21  ;;  %2184 = vadd.xlane.f32.xlu1 %v2183_v50  ;;  %v1800_v54 = vsub.f32 %v5890_v61, %v1666_v31 }
 0x370   : > { %2507 = vmatprep.mubr.bf16.mxu0 %v5888_v62  ;;  %v1801_v60 = vsub.f32 %v5891_v34, %v1666_v31  ;;  %2432 = vmatprep.subr.bf16.mxu1 %v2303_v15  ;;  %v5087_v28 = vadd.f32 %v3644_v38, %v3642_v18  ;;  %v3646_v51 = vpop.eup %3645  ;;  %3665 = vpow2.f32 %v1984_v30  ;;  %v1988_v59 = vmul.f32 1.442695, %v1774_v1  ;;  %v1669_v47 = vpop.xlane.xlu1 %1668  ;;  %v5895_v1 = vld [vmem:[#allocation75_spill] sm:$0xff] }
 0x371   : > { %v1990_v52 = vmul.f32 1.442695, %v1775_v49  ;;  %v3648_v46 = vpop.eup %3647  ;;  %3667 = vpow2.f32 %v1986_v0  ;;  %v2040_v14 = vmul.f32 1.442695, %v1800_v54  ;;  %v2316_v27 = vpack.c.bf16 %v3646_v51, %v3642_v18  ;;  %v1630_v35 = vpop.xlane.xlu0 %1629  ;;  %v5896_v49 = vld [vmem:[#allocation77_spill] sm:$0xff] }
 0x372   : > { %v2042_v41 = vmul.f32 1.442695, %v1801_v60  ;;  %v3650_v29 = vpop.eup %3649  ;;  %3669 = vpow2.f32 %v1988_v59  ;;  %2433 = vmatpush1.bf16.xpose.msra.mxu1 %v2302_v11  ;;  %v1802_v50 = vsub.f32 %v4785_v57, %v1669_v47  ;;  %v1803_v32 = vsub.f32 %v5892_v48, %v1669_v47  ;;  %v5897_v60 = vld [vmem:[#allocation102_spill] sm:$0xff]  ;;  %v5898_v59 = vld [vmem:[#allocation103_spill] sm:$0xff] }
 0x373   : > { %v2317_v8 = vpack.c.bf16 %v3648_v46, %v3644_v38  ;;  %v3652_v21 = vpop.eup %3651  ;;  %3671 = vpow2.f32 %v1990_v52  ;;  %2187 = vadd.xlane.f32.xlu1 %v2186_v42  ;;  %v1776_v53 = vsub.f32 %v5893_v44, %v1630_v35  ;;  %v1777_v30 = vsub.f32 %v5894_v39, %v1630_v35  ;;  %v5900_v44 = vld [vmem:[#allocation105_spill] sm:$0xff] }
 0x374   : > { %v5093_v0 = vadd.f32 %v3648_v46, %v3646_v51  ;;  %v3654_v25 = vpop.eup %3653  ;;  %3673 = vpow2.f32 %v2040_v14  ;;  %v2044_v18 = vmul.f32 1.442695, %v1802_v50  ;;  %v2046_v4 = vmul.f32 1.442695, %v1803_v32  ;;  %v1633_v15 = vpop.xlane.xlu1 %1632 }
 0x375   : > { %2479 = vmatprep.subr.bf16.mxu0 %v2317_v8  ;;  %v2192_v11 = vadd.f32 %v3652_v21, %v3650_v29  ;;  %v3656_v57 = vpop.eup %3655  ;;  %3675 = vpow2.f32 %v2042_v41  ;;  %v1992_v62 = vmul.f32 1.442695, %v1776_v53  ;;  %v1994_v23 = vmul.f32 1.442695, %v1777_v30  ;;  %v1672_v61 = vpop.xlane.xlu0 %1671  ;;  %v5899_v8 = vld [vmem:[#allocation104_spill] sm:$0xff] }
 0x376   : > { %v2304_v38 = vpack.c.bf16 %v3654_v25, %v3650_v29  ;;  %v3658_v42 = vpop.eup %3657  ;;  %3677 = vpow2.f32 %v2044_v18  ;;  %v1778_v63 = vsub.f32 %v5895_v1, %v1633_v15  ;;  %v1779_v31 = vsub.f32 %v5896_v49, %v1633_v15  ;;  %v5901_v18 = vld [vmem:[#allocation79_spill] sm:$0xff] }
 0x377   : > { %2480 = vmatpush1.bf16.xpose.msra.mxu0 %v2316_v27  ;;  %2193 = vadd.xlane.f32.xlu0 %v2192_v11  ;;  %v2305_v54 = vpack.c.bf16 %v3656_v57, %v3652_v21  ;;  %v3660_v34 = vpop.eup %3659  ;;  %3679 = vpow2.f32 %v2046_v4  ;;  %v1804_v51 = vsub.f32 %v5897_v60, %v1672_v61  ;;  %v1805_v52 = vsub.f32 %v5898_v59, %v1672_v61  ;;  %v5902_v11 = vld [vmem:[#allocation81_spill] sm:$0xff]  ;;  %v5903_v61 = vld [vmem:[#allocation83_spill] sm:$0xff] }
 0x378   : > { %2190 = vadd.xlane.f32.xlu1 %v2189_v56  ;;  %v2195_v46 = vadd.f32 %v3656_v57, %v3654_v25  ;;  %v5099_v14 = vpop.eup %3661  ;;  %3681 = vpow2.f32 %v1992_v62  ;;  %v1996_v41 = vmul.f32 1.442695, %v1778_v63  ;;  %v1998_v47 = vmul.f32 1.442695, %v1779_v31  ;;  %v1675_v32 = vpop.xlane.xlu1 %1674 }
 0x379   : > { %2434 = vmatprep.subr.bf16.mxu1 %v2305_v54  ;;  %v5101_v27 = vadd.f32 %v3660_v34, %v3658_v42  ;;  %v5103_v29 = vpop.eup %3663  ;;  %3683 = vpow2.f32 %v1994_v23  ;;  %v2048_v50 = vmul.f32 1.442695, %v1804_v51  ;;  %v2050_v48 = vmul.f32 1.442695, %v1805_v52  ;;  %v1636_v39 = vpop.xlane.xlu0 %1635 }
 0x37a   : > { %v2318_v56 = vpack.c.bf16 %v5099_v14, %v3658_v42  ;;  %v3666_v35 = vpop.eup %3665  ;;  %3685 = vpow2.f32 %v1996_v41  ;;  %2435 = vmatpush1.bf16.xpose.msra.mxu1 %v2304_v38  ;;  %v1806_v21 = vsub.f32 %v5899_v8, %v1675_v32  ;;  %v1807_v53 = vsub.f32 %v5900_v44, %v1675_v32  ;;  %v5906_v41 = vld [vmem:[#allocation106_spill] sm:$0xff] }
 0x37b   : > { %2112 = vadd.xlane.f32.xlu0 %v4944_v5  ;;  %v2319_v30 = vpack.c.bf16 %v5103_v29, %v3660_v34  ;;  %v3668_v25 = vpop.eup %3667  ;;  %3687 = vpow2.f32 %v1998_v47  ;;  %v1780_v4 = vsub.f32 %v5901_v18, %v1636_v39  ;;  %v1781_v57 = vsub.f32 %v5902_v11, %v1636_v39  ;;  %v5904_v34 = vld [vmem:[#allocation85_spill] sm:$0xff] }
 0x37c   : > { %2196 = vadd.xlane.f32.xlu1 %v2195_v46  ;;  %v3670_v62 = vpop.eup %3669  ;;  %3689 = vpow2.f32 %v2048_v50  ;;  %v2052_v23 = vmul.f32 1.442695, %v1806_v21  ;;  %v2054_v15 = vmul.f32 1.442695, %v1807_v53  ;;  %v2198_v5 = vadd.f32 %v3668_v25, %v3666_v35  ;;  %v1639_v63 = vpop.xlane.xlu1 %1638  ;;  %v5905_v46 = vld [vmem:[#allocation63_spill] sm:$0xff] }
 0x37d   : > { %2481 = vmatprep.subr.bf16.mxu0 %v2319_v30  ;;  %v3672_v38 = vpop.eup %3671  ;;  %3691 = vpow2.f32 %v2050_v48  ;;  %v2000_v42 = vmul.f32 1.442695, %v1780_v4  ;;  %v2002_v1 = vmul.f32 1.442695, %v1781_v57  ;;  %v2306_v49 = vpack.c.bf16 %v3670_v62, %v3666_v35  ;;  %v1678_v51 = vpop.xlane.xlu0 %1677  ;;  %v5907_v50 = vld [vmem:[#allocation107_spill] sm:$0xff]  ;;  %v5909_v4 = vld [vmem:[#allocation109_spill] sm:$0xff] }
 0x37e   : > { %v5112_v31 = vpop.eup %3673  ;;  %3693 = vpow2.f32 %v2052_v23  ;;  %v1782_v54 = vsub.f32 %v5903_v61, %v1639_v63  ;;  %v1783_v60 = vsub.f32 %v5904_v34, %v1639_v63  ;;  %v2307_v59 = vpack.c.bf16 %v3672_v38, %v3668_v25  ;;  %v5908_v25 = vld [vmem:[#allocation108_spill] sm:$0xff]  ;;  %v5910_v34 = vld [vmem:[#allocation110_spill] sm:$0xff] }
 0x37f   : > { %2482 = vmatpush1.bf16.xpose.msra.mxu0 %v2318_v56  ;;  %2115 = vadd.xlane.f32.xlu0 %v4966_v36  ;;  %v5117_v52 = vpop.eup %3675  ;;  %3695 = vpow2.f32 %v2054_v15  ;;  %v1808_v47 = vsub.f32 %v5906_v41, %v1678_v51  ;;  %v1809_v48 = vsub.f32 %v5907_v50, %v1678_v51  ;;  %v2201_v32 = vadd.f32 %v3672_v38, %v3670_v62  ;;  %v5911_v51 = vld [vmem:[#allocation111_spill] sm:$0xff]  ;;  %v5912_v50 = vld [vmem:[#allocation112_spill] sm:$0xff] }
 0x380   : > { %2124 = vadd.xlane.f32.xlu1 %v5905_v46  ;;  %v3678_v56 = vpop.eup %3677  ;;  %3697 = vpow2.f32 %v2000_v42  ;;  %v2004_v35 = vmul.f32 1.442695, %v1782_v54  ;;  %v2006_v36 = vmul.f32 1.442695, %v1783_v60  ;;  %2436 = vmatprep.subr.bf16.mxu1 %v2307_v59  ;;  %v1681_v53 = vpop.xlane.xlu1 %1680  ;;  %v5129_v23 = vadd.f32 %v5103_v29, %v5099_v14 }
 0x381   : > { %v3680_v8 = vpop.eup %3679  ;;  %3699 = vpow2.f32 %v2002_v1  ;;  %v2056_v21 = vmul.f32 1.442695, %v1808_v47  ;;  %v2058_v44 = vmul.f32 1.442695, %v1809_v48  ;;  %v2320_v39 = vpack.c.bf16 %v3678_v56, %v5112_v31 }
 0x382   : > { %v3682_v30 = vpop.eup %3681  ;;  %3701 = vpow2.f32 %v2004_v35  ;;  %2437 = vmatpush1.bf16.xpose.msra.mxu1 %v2306_v49  ;;  %v1810_v18 = vsub.f32 %v5908_v25, %v1681_v53  ;;  %v1811_v11 = vsub.f32 %v5909_v4, %v1681_v53  ;;  %v2321_v57 = vpack.c.bf16 %v3680_v8, %v5117_v52 }
 0x383   : > { %2199 = vadd.xlane.f32.xlu0 %v2198_v5  ;;  %v3684_v62 = vpop.eup %3683  ;;  %3703 = vpow2.f32 %v2006_v36  ;;  %v5133_v15 = vadd.f32 %v5002_v55, %v4998_v24  ;;  %v5135_v61 = vadd.f32 %v3680_v8, %v3678_v56  ;;  %v5913_v56 = vld [vmem:[#allocation113_spill] sm:$0xff] }
 0x384   : > { %2127 = vadd.xlane.f32.xlu1 %v4874_v20  ;;  %v3686_v38 = vpop.eup %3685  ;;  %3705 = vpow2.f32 %v2056_v21  ;;  %v2060_v5 = vmul.f32 1.442695, %v1810_v18  ;;  %v2062_v42 = vmul.f32 1.442695, %v1811_v11  ;;  %2483 = vmatprep.subr.bf16.mxu0 %v2321_v57  ;;  %v2204_v1 = vadd.f32 %v3684_v62, %v3682_v30 }
 0x385   : > { %v3688_v63 = vpop.eup %3687  ;;  %3707 = vpow2.f32 %v2058_v44  ;;  %v2308_v49 = vpack.c.bf16 %v3686_v38, %v3682_v30  ;;  %v5139_v20 = vadd.f32 %v5007_v33, %v5004_v22  ;;  %v1684_v24 = vpop.xlane.xlu0 %1683  ;;  %v5147_v22 = vadd.f32 %v5037_v58, %v5033_v40 }
 0x386   : > { %v3690_v14 = vpop.eup %3689  ;;  %3709 = vpow2.f32 %v2060_v5  ;;  %v2309_v55 = vpack.c.bf16 %v3688_v63, %v3684_v62  ;;  %v2207_v29 = vadd.f32 %v3688_v63, %v3686_v38  ;;  %v1812_v60 = vsub.f32 %v5910_v34, %v1684_v24  ;;  %v5915_v34 = vld [vmem:[#allocation20_spill] sm:$0xff] }
 0x387   : > { %2484 = vmatpush1.bf16.xpose.msra.mxu0 %v2320_v39  ;;  %2118 = vadd.xlane.f32.xlu0 %v4974_v6  ;;  %v3692_v54 = vpop.eup %3691  ;;  %3711 = vpow2.f32 %v2062_v42  ;;  %v1813_v59 = vsub.f32 %v5911_v51, %v1684_v24  ;;  %v1687_v41 = vpop.xlane.xlu1 %1686  ;;  %v5156_v30 = vadd.f32 %v5117_v52, %v5112_v31 }
 0x388   : > { %2130 = vadd.xlane.f32.xlu1 %v4878_v3  ;;  %v3694_v46 = vpop.eup %3693  ;;  %2438 = vmatprep.subr.bf16.mxu1 %v2309_v55  ;;  %v2064_v6 = vmul.f32 1.442695, %v1812_v60  ;;  %v1814_v48 = vsub.f32 %v5912_v50, %v1687_v41  ;;  %v1815_v35 = vsub.f32 %v5913_v56, %v1687_v41  ;;  %v5158_v25 = vadd.f32 %v3692_v54, %v3690_v14  ;;  %v5916_v60 = vld [vmem:[#allocation18_spill] sm:$0xff]  ;;  %v5919_v41 = vld [vmem:[#allocation23_spill] sm:$0xff] }
 0x389   : > { %v3696_v33 = vpop.eup %3695  ;;  %v2066_v47 = vmul.f32 1.442695, %v1813_v59  ;;  %v2322_v8 = vpack.c.bf16 %v3694_v46, %v3690_v14  ;;  %v5917_v51 = vpack.c.bf16 %v5915_v34, %v5916_v60  ;;  %v5928_v56 = vld [vmem:[#allocation31_spill] sm:$0xff] }
 0x38a   : > { %v3698_v36 = vpop.eup %3697  ;;  %2439 = vmatpush1.bf16.xpose.msra.mxu1 %v2308_v49  ;;  %v2323_v3 = vpack.c.bf16 %v3696_v33, %v3692_v54  ;;  %3713 = vpow2.f32 %v2064_v6  ;;  %v2068_v44 = vmul.f32 1.442695, %v1814_v48  ;;  %v2070_v53 = vmul.f32 1.442695, %v1815_v35  ;;  %v5924_v6 = vld [vmem:[#allocation28_spill] sm:$0xff]  ;;  %v5927_v48 = vld [vmem:[#allocation33_spill] sm:$0xff] }
 0x38b   : > { %2202 = vadd.xlane.f32.xlu0 %v2201_v32  ;;  %v3700_v21 = vpop.eup %3699  ;;  %v5152_v40 = vadd.f32 %v3696_v33, %v3694_v46  ;;  %3715 = vpow2.f32 %v2066_v47  ;;  %v5918_v46 = vld [vmem:[#allocation25_spill] sm:$0xff]  ;;  %v5925_v47 = vld [vmem:[#allocation26_spill] sm:$0xff] }
 0x38c   : > { %2133 = vadd.xlane.f32.xlu1 %v4886_v16  ;;  %v3702_v58 = vpop.eup %3701  ;;  %2485 = vmatprep.subr.bf16.mxu0 %v2323_v3  ;;  %v2210_v39 = vadd.f32 %v3700_v21, %v3698_v36  ;;  %3717 = vpow2.f32 %v2068_v44  ;;  %v5914_v16 = vld [vmem:[#allocation62_spill] sm:$0xff]  ;;  %v5926_v50 = vpack.c.bf16 %v5924_v6, %v5925_v47 }
 0x38d   : > { %v3704_v32 = vpop.eup %3703  ;;  %v2310_v18 = vpack.c.bf16 %v3702_v58, %v3698_v36  ;;  %3719 = vpow2.f32 %v2070_v53 }
 0x38e   : > { %v3706_v4 = vpop.eup %3705  ;;  %v2311_v11 = vpack.c.bf16 %v3704_v32, %v3700_v21  ;;  %v2213_v57 = vadd.f32 %v3704_v32, %v3702_v58 }
 0x38f   : > { %2486 = vmatpush1.bf16.xpose.msra.mxu0 %v2322_v8  ;;  %2121 = vadd.xlane.f32.xlu0 %v5914_v16  ;;  %v3708_v62 = vpop.eup %3707 }
 0x390   : > { %2136 = vadd.xlane.f32.xlu1 %v4890_v2  ;;  %v3710_v38 = vpop.eup %3709  ;;  %2440 = vmatprep.subr.bf16.mxu1 %v2311_v11  ;;  %v2252_v5 = vadd.f32 %v3708_v62, %v3706_v4 }
 0x391   : > { %v3712_v31 = vpop.eup %3711  ;;  %v2324_v52 = vpack.c.bf16 %v3710_v38, %v3706_v4 }
 0x392   : > { %2441 = vmatpush1.bf16.xpose.msra.mxu1 %v2310_v18  ;;  %v2325_v42 = vpack.c.bf16 %v3712_v31, %v3708_v62  ;;  %v2255_v63 = vadd.f32 %v3712_v31, %v3710_v38 }
 0x393   : > { %2205 = vadd.xlane.f32.xlu0 %v2204_v1 }
 0x394   : > { %2139 = vadd.xlane.f32.xlu1 %v4907_v26  ;;  %2487 = vmatprep.subr.bf16.mxu0 %v2325_v42  ;;  %v3714_v49 = vpop.eup %3713  ;;  %v5920_v26 = vpack.c.bf16 %v5918_v46, %v5919_v41 }
 0x395   : > { %v3716_v14 = vpop.eup %3715 }
 0x396   : > { %v3718_v24 = vpop.eup %3717  ;;  %v2258_v2 = vadd.f32 %v3716_v14, %v3714_v49 }
 0x397   : > { %2488 = vmatpush1.bf16.xpose.msra.mxu0 %v2324_v52  ;;  %2208 = vadd.xlane.f32.xlu0 %v2207_v29  ;;  %v3720_v55 = vpop.eup %3719  ;;  %v2326_v54 = vpack.c.bf16 %v3718_v24, %v3714_v49  ;;  %v5922_v29 = vld [vmem:[#allocation22_spill] sm:$0xff] }
 0x398   : > { %2142 = vadd.xlane.f32.xlu1 %v4932_v37  ;;  %v2327_v1 = vpack.c.bf16 %v3720_v55, %v3716_v14  ;;  %v2261_v59 = vadd.f32 %v3720_v55, %v3718_v24  ;;  %v5921_v37 = vld [vmem:[#allocation24_spill] sm:$0xff] }
 0x399   : > { %2459 = vmatmul.mubr.bf16.vlgmr.msra.gmra.mrb[104].mxu1 %v5917_v51  ;;  %v5923_v33 = vpack.c.bf16 %v5921_v37, %v5922_v29 }
 0x39a   : > { %2466 = vmatprep.mubr.bf16.mxu1 %v5920_v26  ;;  %2489 = vmatprep.subr.bf16.mxu0 %v2327_v1 }
 0x39b   : > { %2211 = vadd.xlane.f32.xlu0 %v2210_v39 }
 0x39c   : > { %2148 = vadd.xlane.f32.xlu1 %v4954_v10  ;;  %v5929_v10 = vpack.c.bf16 %v5927_v48, %v5928_v56 }
 0x39f   : > { %2490 = vmatpush1.bf16.xpose.msra.mxu0 %v2326_v54  ;;  %2214 = vadd.xlane.f32.xlu0 %v2213_v57 }
 0x3a0   : > { %2220 = vadd.xlane.f32.xlu1 %v5050_v7  ;;  %v5930_v7 = vld [vmem:[#allocation32_spill] sm:$0xff] }
 0x3a1   : > { %2467 = vmatmul.mubr.bf16.gmra.mrb[108].mxu1 %v5923_v33 }
 0x3a3   : > { %2145 = vadd.xlane.f32.xlu0 %v4962_v9  ;;  %v5931_v9 = vld [vmem:[#allocation30_spill] sm:$0xff] }
 0x3a4   : > { %2223 = vadd.xlane.f32.xlu1 %v5068_v13  ;;  %v5932_v35 = vpack.c.bf16 %v5930_v7, %v5931_v9 }
 0x3a6   : > { %2508 = vmatmul.mubr.bf16.vlgmr.msra.gmra.mrb[120].mxu0 %v5926_v50  ;;  %v3059_v50 = vld [vmem:[%s5557_s5] sm:$0xff] }
 0x3a7   : > { %2515 = vmatprep.mubr.bf16.mxu0 %v5929_v10  ;;  %2151 = vadd.xlane.f32.xlu0 %v4986_v17  ;;  %v3946_v17 = vmov 0.0  }
 0x3a8   : > { %2226 = vadd.xlane.f32.xlu1 %v5072_v19  ;;  %3345 = vmatprep.subr.bf16.mxu1 %v3946_v17 }
 0x3a9   : > { %3361 = vmatprep.mubr.msk.bf16.mxu1 %vm3947_vm7, %v3946_v17 }
 0x3ab   : > { %2154 = vadd.xlane.f32.xlu0 %v4994_v45  ;;  %v2074_v45 = vpop.xlane.xlu0 %2073 }
 0x3ac   : > { %2229 = vadd.xlane.f32.xlu1 %v5087_v28 }
 0x3ae   : > { %2516 = vmatmul.mubr.bf16.gmra.mrb[124].mxu0 %v5932_v35 }
 0x3af   : > { %2157 = vadd.xlane.f32.xlu0 %v5017_v12  ;;  %v2077_v12 = vpop.xlane.xlu1 %2076 }
 0x3b0   : > { %2232 = vadd.xlane.f32.xlu1 %v5093_v0 }
 0x3b3   : > { %2160 = vadd.xlane.f32.xlu0 %v5029_v43  ;;  %v2080_v43 = vpop.xlane.xlu0 %2079  ;;  %v2083_v13 = vpop.xlane.xlu1 %2082 }
 0x3b4   : > { %2235 = vadd.xlane.f32.xlu1 %v5101_v27 }
 0x3b7   : > { %2163 = vadd.xlane.f32.xlu0 %v5133_v15  ;;  %v5203_v19 = vpop.xlane.xlu0 %2085  ;;  %v5205_v28 = vpop.xlane.xlu1 %2088  ;;  %v2652_v15 = vlaneseq }
 0x3b8   : > { %2238 = vadd.xlane.f32.xlu1 %v5129_v23 }
 0x3b9   : > { %v5213_v36 = vshrl.u32 %v2652_v15, 7 }
 0x3bb   : > { %2166 = vadd.xlane.f32.xlu0 %v5139_v20  ;;  %v5207_v0 = vpop.xlane.xlu0 %2091  ;;  %v5211_v20 = vand.u32 127, %v2652_v15 }
 0x3bc   : > { %2244 = vadd.xlane.f32.xlu1 %v5135_v61  ;;  %v5209_v27 = vpop.xlane.xlu1 %2094 }
 0x3bd   : > { %v2658_v3 = vadd.s32 4294967288, %v5211_v20  ;;  %v5220_v44 = vsub.s32 %v5211_v20, %v5213_v36  ;;  %v2665_v39 = vadd.s32 4294967280, %v5211_v20  ;;  %v2672_v11 = vadd.s32 4294967272, %v5211_v20 }
 0x3be   : > { %v2679_v52 = vadd.s32 4294967264, %v5211_v20  ;;  %v2686_v51 = vadd.s32 4294967256, %v5211_v20  ;;  %v2693_v37 = vadd.s32 4294967248, %v5211_v20  ;;  %v2707_v47 = vadd.s32 4294967232, %v5211_v20 }
 0x3bf   : > { %2217 = vadd.xlane.f32.xlu0 %v5147_v22  ;;  %v5223_v53 = vsub.s32 %v2658_v3, %v5213_v36  ;;  %v5232_v16 = vsub.s32 %v2665_v39, %v5213_v36  ;;  %v5241_v31 = vsub.s32 %v2672_v11, %v5213_v36  ;;  %v2700_v56 = vadd.s32 4294967240, %v5211_v20 }
 0x3c0   : > { %2250 = vadd.xlane.f32.xlu1 %v5152_v40  ;;  %v5247_v24 = vsub.s32 %v2679_v52, %v5213_v36  ;;  %v5256_v41 = vsub.s32 %v2686_v51, %v5213_v36  ;;  %v5273_v9 = vsub.s32 %v2693_v37, %v5213_v36 }
 0x3c3   : > { %2241 = vadd.xlane.f32.xlu0 %v5156_v30 }
 0x3c4   : > { %2256 = vadd.xlane.f32.xlu1 %v2255_v63 }
 0x3c7   : > { %2247 = vadd.xlane.f32.xlu0 %v5158_v25 }
 0x3c8   : > { %2262 = vadd.xlane.f32.xlu1 %v2261_v59 }
 0x3cb   : > { %2253 = vadd.xlane.f32.xlu0 %v2252_v5 }
 0x3cf   : > { %2259 = vadd.xlane.f32.xlu0 %v2258_v2 }
 0x3e2   : > { %v2170_v23 = vpop.xlane.xlu0 %2169 }
 0x3e3   : > { %3721 = vrcp.f32 %v2170_v23  ;;  %v5284_v23 = vsub.s32 %v2700_v56, %v5213_v36 }
 0x3e4   : > { %v2173_v61 = vpop.xlane.xlu1 %2172 }
 0x3e5   : > { %3723 = vrcp.f32 %v2173_v61  ;;  %3062 = vperm.xlu0 %3440, %v3059_v50  }
 0x3e6   : > { %v5216_v8 = vpop.xlane.xlu0 %2097 }
 0x3ea   : > { %v5228_v32 = vpop.xlane.xlu0 %2103 }
 0x3eb   : > { %v2176_v22 = vpop.xlane.xlu1 %2175 }
 0x3ec   : > { %3725 = vrcp.f32 %v2176_v22 }
 0x3ed   : > { %v3722_v21 = vpop.eup %3721 }
 0x3ee   : > { %v2845_v30 = vrot.slane %v3722_v21, %v5220_v44  ;;  %v5238_v5 = vpop.xlane.xlu0 %2106 }
 0x3ef   : > { %v3724_v58 = vpop.eup %3723 }
 0x3f0   : > { %v2179_v40 = vpop.xlane.xlu1 %2178  ;;  %v2849_v25 = vrot.slane %v3724_v58, %v5223_v53 }
 0x3f1   : > { %3727 = vrcp.f32 %v2179_v40 }
 0x3f2   : > { %v2850_v18 = vsel %vm2663_vm3, %v2849_v25, %v2845_v30  ;;  %v5250_v54 = vpop.xlane.xlu0 %2109  ;;  %v2714_v25 = vadd.s32 4294967224, %v5211_v20 }
 0x3f4   : > { %v2182_v4 = vpop.xlane.xlu1 %2181 }
 0x3f5   : > { %3729 = vrcp.f32 %v2182_v4 }
 0x3f6   : > { %v3726_v57 = vpop.eup %3725 }
 0x3f7   : > { %v2854_v62 = vrot.slane %v3726_v57, %v5232_v16 }
 0x3f8   : > { %v5236_v38 = vpop.xlane.xlu1 %2100 }
 0x3f9   : > { %v2855_v42 = vsel %vm2670_vm4, %v2854_v62, %v2850_v18 }
 0x3fb   : > { %v3728_v63 = vpop.eup %3727 }
 0x3fc   : > { %v2859_v49 = vrot.slane %v3728_v63, %v5241_v31  ;;  %v2185_v14 = vpop.xlane.xlu1 %2184 }
 0x3fd   : > { %3731 = vrcp.f32 %v2185_v14  ;;  %v2721_v14 = vadd.s32 4294967216, %v5211_v20 }
 0x3fe   : > { %v2860_v2 = vsel %vm2677_vm5, %v2859_v49, %v2855_v42  ;;  %3733 = vrcp.f32 %v2077_v12 }
 0x3ff   : > { %v3730_v55 = vpop.eup %3729 }
 0x400   : > { %v2864_v34 = vrot.slane %v3730_v55, %v5247_v24  ;;  %v2188_v60 = vpop.xlane.xlu1 %2187 }
 0x401   : > { %3735 = vrcp.f32 %v2188_v60 }
 0x402   : > { %3737 = vrcp.f32 %v2074_v45  ;;  %v2865_v1 = vsel %vm2684_vm6, %v2864_v34, %v2860_v2  ;;  %v5307_v2 = vsub.s32 %v2714_v25, %v5213_v36 }
 0x403   : > { %3739 = vrcp.f32 %v2080_v43 }
 0x404   : > { %v2194_v59 = vpop.xlane.xlu0 %2193 }
 0x405   : > { %3741 = vrcp.f32 %v2194_v59  ;;  %v2191_v46 = vpop.xlane.xlu1 %2190 }
 0x406   : > { %3743 = vrcp.f32 %v2191_v46 }
 0x407   : > { %3745 = vrcp.f32 %v2083_v13  ;;  %v3732_v26 = vpop.eup %3731 }
 0x408   : > { %3747 = vrcp.f32 %v5203_v19  ;;  %v5260_v29 = vpop.xlane.xlu0 %2112  ;;  %v2869_v33 = vrot.slane %v3732_v26, %v5256_v41  ;;  %v3734_v48 = vpop.eup %3733  ;;  %v5280_v19 = vsub.s32 %v2707_v47, %v5213_v36 }
 0x409   : > { %v2197_v6 = vpop.xlane.xlu1 %2196  ;;  %3749 = vrcp.f32 %v5205_v28  ;;  %v2662_v13 = vrot.slane %v3734_v48, %v5223_v53 }
 0x40a   : > { %3751 = vrcp.f32 %v5207_v0  ;;  %v2870_v10 = vsel %vm2691_vm8, %v2869_v33, %v2865_v1  ;;  %v5318_v33 = vsub.s32 %v2721_v14, %v5213_v36 }
 0x40b   : > { %v3736_v7 = vpop.eup %3735  ;;  %3753 = vrcp.f32 %v2197_v6 }
 0x40c   : > { %v2116_v35 = vpop.xlane.xlu0 %2115  ;;  %v3738_v45 = vpop.eup %3737  ;;  %3755 = vrcp.f32 %v5209_v27  ;;  %v2874_v28 = vrot.slane %v3736_v7, %v5273_v9 }
 0x40d   : > { %v5275_v12 = vpop.xlane.xlu1 %2124  ;;  %v3740_v43 = vpop.eup %3739  ;;  %3757 = vrcp.f32 %v5216_v8  ;;  %v2657_v61 = vrot.slane %v3738_v45, %v5220_v44 }
 0x40e   : > { %3759 = vrcp.f32 %v5236_v38  ;;  %v2669_v21 = vrot.slane %v3740_v43, %v5232_v16  ;;  %v2875_v30 = vsel %vm2698_vm9, %v2874_v28, %v2870_v10  ;;  %v2742_v28 = vadd.s32 4294967192, %v5211_v20 }
 0x40f   : > { %v3742_v0 = vpop.eup %3741  ;;  %v2664_v8 = vsel %vm2663_vm3, %v2662_v13, %v2657_v61  ;;  %v2735_v61 = vadd.s32 4294967200, %v5211_v20 }
 0x410   : > { %v3744_v15 = vpop.eup %3743  ;;  %v2884_v22 = vrot.slane %v3742_v0, %v5280_v19  ;;  %v2200_v3 = vpop.xlane.xlu0 %2199  ;;  %v2671_v52 = vsel %vm2670_vm4, %v2669_v21, %v2664_v8 }
 0x411   : > { %v3746_v27 = vpop.eup %3745  ;;  %v2879_v40 = vrot.slane %v3744_v15, %v5284_v23  ;;  %3761 = vrcp.f32 %v2200_v3  ;;  %v5292_v58 = vpop.xlane.xlu1 %2127  ;;  %v2749_v3 = vadd.s32 4294967184, %v5211_v20 }
 0x412   : > { %v3748_v39 = vpop.eup %3747  ;;  %v2676_v11 = vrot.slane %v3746_v27, %v5241_v31  ;;  %3763 = vrcp.f32 %v5228_v32 }
 0x413   : > { %v2880_v18 = vsel %vm2705_vm10, %v2879_v40, %v2875_v30  ;;  %v3750_v4 = vpop.eup %3749  ;;  %v2683_v42 = vrot.slane %v3748_v39, %v5247_v24  ;;  %3765 = vrcp.f32 %v5238_v5  ;;  %v2756_v39 = vadd.s32 4294967176, %v5211_v20 }
 0x414   : > { %v2885_v57 = vsel %vm2712_vm11, %v2884_v22, %v2880_v18  ;;  %v2119_v62 = vpop.xlane.xlu0 %2118  ;;  %v3752_v38 = vpop.eup %3751  ;;  %v2678_v34 = vsel %vm2677_vm5, %v2676_v11, %v2671_v52  ;;  %v2690_v60 = vrot.slane %v3750_v4, %v5256_v41  ;;  %v5349_v18 = vsub.s32 %v2742_v28, %v5213_v36 }
 0x415   : > { %v5302_v63 = vpop.xlane.xlu1 %2130  ;;  %v3754_v49 = vpop.eup %3753  ;;  %v2685_v59 = vsel %vm2684_vm6, %v2683_v42, %v2678_v34  ;;  %v2697_v46 = vrot.slane %v3752_v38, %v5273_v9  ;;  %v5363_v14 = vsub.s32 %v2756_v39, %v5213_v36 }
 0x416   : > { %v3756_v55 = vpop.eup %3755  ;;  %v2889_v26 = vrot.slane %v3754_v49, %v5307_v2  ;;  %v2692_v5 = vsel %vm2691_vm8, %v2690_v60, %v2685_v59 }
 0x417   : > { %v3758_v1 = vpop.eup %3757  ;;  %v2704_v47 = vrot.slane %v3756_v55, %v5284_v23  ;;  %v2699_v56 = vsel %vm2698_vm9, %v2697_v46, %v2692_v5 }
 0x418   : > { %v2203_v51 = vpop.xlane.xlu0 %2202  ;;  %v3760_v37 = vpop.eup %3759  ;;  %v2711_v10 = vrot.slane %v3758_v1, %v5280_v19  ;;  %v2890_v7 = vsel %vm2719_vm12, %v2889_v26, %v2885_v57 }
 0x419   : > { %3767 = vrcp.f32 %v2203_v51  ;;  %v5315_v32 = vpop.xlane.xlu1 %2133  ;;  %v2718_v45 = vrot.slane %v3760_v37, %v5307_v2 }
 0x41a   : > { %3769 = vrcp.f32 %v5250_v54 }
 0x41b   : > { %v3762_v6 = vpop.eup %3761  ;;  %3771 = vrcp.f32 %v5260_v29  ;;  %v2728_v29 = vadd.s32 4294967208, %v5211_v20  ;;  %v5359_v20 = vsub.s32 %v2749_v3, %v5213_v36 }
 0x41c   : > { %3773 = vrcp.f32 %v2116_v35  ;;  %v2894_v50 = vrot.slane %v3762_v6, %v5318_v33  ;;  %v2122_v48 = vpop.xlane.xlu0 %2121  ;;  %v3764_v13 = vpop.eup %3763  ;;  %v2706_v35 = vsel %vm2705_vm10, %v2704_v47, %v2699_v56 }
 0x41d   : > { %3775 = vrcp.f32 %v2119_v62  ;;  %v5328_v54 = vpop.xlane.xlu1 %2136  ;;  %v2713_v15 = vsel %vm2712_vm11, %v2711_v10, %v2706_v35  ;;  %v3766_v27 = vpop.eup %3765  ;;  %v5343_v21 = vsub.s32 %v2728_v29, %v5213_v36  ;;  %v2725_v30 = vrot.slane %v3764_v13, %v5318_v33 }
 0x41e   : > { %v2895_v43 = vsel %vm2726_vm13, %v2894_v50, %v2890_v7  ;;  %v2720_v40 = vsel %vm2719_vm12, %v2718_v45, %v2713_v15  ;;  %v5355_v62 = vsub.s32 %v2735_v61, %v5213_v36  ;;  %3777 = vrcp.f32 %v2122_v48 }
 0x41f   : > { %v2727_v52 = vsel %vm2726_vm13, %v2725_v30, %v2720_v40  ;;  %v2732_v49 = vrot.slane %v3766_v27, %v5343_v21  ;;  %3779 = vrcp.f32 %v5275_v12 }
 0x420   : > { %v5335_v0 = vpop.xlane.xlu0 %2205  ;;  %3781 = vrcp.f32 %v5292_v58 }
 0x421   : > { %v5339_v22 = vpop.xlane.xlu1 %2139  ;;  %v2734_v1 = vsel %vm2733_vm14, %v2732_v49, %v2727_v52  ;;  %3783 = vrcp.f32 %v5302_v63 }
 0x422   : > { %3785 = vrcp.f32 %v5315_v32 }
 0x423   : > { %v3768_v8 = vpop.eup %3767  ;;  %3787 = vrcp.f32 %v5328_v54 }
 0x424   : > { %v3770_v25 = vpop.eup %3769  ;;  %v2899_v4 = vrot.slane %v3768_v8, %v5343_v21  ;;  %v5352_v11 = vpop.xlane.xlu0 %2208  ;;  %3789 = vrcp.f32 %v5339_v22 }
 0x425   : > { %v3772_v57 = vpop.eup %3771  ;;  %v2143_v38 = vpop.xlane.xlu1 %2142  ;;  %v2739_v59 = vrot.slane %v3770_v25, %v5355_v62 }
 0x426   : > { %v3774_v42 = vpop.eup %3773  ;;  %v5366_v55 = vsel %vm2733_vm14, %v2899_v4, %v2895_v43  ;;  %v2746_v60 = vrot.slane %v3772_v57, %v5349_v18  ;;  %3791 = vrcp.f32 %v2143_v38 }
 0x427   : > { %v3776_v34 = vpop.eup %3775  ;;  %v2753_v26 = vrot.slane %v3774_v42, %v5359_v20  ;;  %v2741_v37 = vsel %vm2740_vm15, %v2739_v59, %v2734_v1 }
 0x428   : > { %v5369_v51 = vpop.xlane.xlu0 %2211  ;;  %v2760_v36 = vrot.slane %v3776_v34, %v5363_v14  ;;  %v2748_v5 = vsel %vm2747_vm0, %v2746_v60, %v2741_v37  ;;  %v3778_v61 = vpop.eup %3777 }
 0x429   : > { %v2149_v46 = vpop.xlane.xlu1 %2148  ;;  %v2755_v50 = vsel %vm2754_vm1, %v2753_v26, %v2748_v5  ;;  %v3780_v40 = vpop.eup %3779  ;;  %v2766_v25 = vrot.slane %v3778_v61, %v5220_v44 }
 0x42a   : > { %v2762_v7 = vsel %vm2761_vm2, %v2760_v36, %v2755_v50  ;;  %v3782_v42 = vpop.eup %3781  ;;  %v2770_v49 = vrot.slane %v3780_v40, %v5223_v53 }
 0x42b   : > { %v3784_v59 = vpop.eup %3783  ;;  %v2775_v54 = vrot.slane %v3782_v42, %v5232_v16 }
 0x42c   : > { %v2362_v6 = vpop.f32.mrb[96].mxu1  ;;  %v5377_v47 = vpop.xlane.xlu0 %2214  ;;  %v2771_v60 = vsel %vm2663_vm3, %v2770_v49, %v2766_v25  ;;  %v2780_v22 = vrot.slane %v3784_v59, %v5241_v31 }
 0x42d   : > { %v5381_v56 = vpop.xlane.xlu1 %2220  ;;  %v2364_v10 = vpop.f32.mrb[97].mxu1  ;;  %v3034_v45 = vmul.f32 %v2762_v7, %v2362_v6  ;;  %v2776_v36 = vsel %vm2670_vm4, %v2775_v54, %v2771_v60 }
 0x42e   : > { %v2365_v29 = vpop.f32.mrb[98].mxu1  ;;  %v3786_v37 = vpop.eup %3785  ;;  %v2781_v50 = vsel %vm2677_vm5, %v2780_v22, %v2776_v36 }
 0x42f   : > { %v3035_v48 = vmul.f32 %v2762_v7, %v2365_v29  ;;  %v2367_v43 = vpop.f32.mrb[99].mxu1  ;;  %v2785_v29 = vrot.slane %v3786_v37, %v5247_v24 }
 0x430   : > { %v2146_v13 = vpop.xlane.xlu0 %2145 }
 0x431   : > { %v3050_v35 = vpack.c.bf16 %v3035_v48, %v3034_v45  ;;  %v5385_v28 = vpop.xlane.xlu1 %2223  ;;  %3793 = vrcp.f32 %v2146_v13 }
 0x432   : > { %3795 = vrcp.f32 %v2149_v46 }
 0x433   : > { %3346 = vmatpush3.bf16.msra.mxu1 %v3050_v35  ;;  %v2786_v35 = vsel %vm2684_vm6, %v2785_v29, %v2781_v50 }
 0x434   : > { %v2370_v12 = vpop.f32.mrb[100].mxu1  ;;  %v2152_v15 = vpop.xlane.xlu0 %2151  ;;  %3347 = vmatprep.subr.bf16.mxu1 %v3946_v17 }
 0x435   : > { %v2372_v3 = vpop.f32.mrb[101].mxu1  ;;  %v3036_v39 = vmul.f32 %v2762_v7, %v2370_v12  ;;  %v5390_v8 = vpop.xlane.xlu1 %2226  ;;  %3797 = vrcp.f32 %v2152_v15 }
 0x436   : > { %v2373_v27 = vpop.f32.mrb[102].mxu1 }
 0x437   : > { %v3037_v58 = vmul.f32 %v2762_v7, %v2373_v27  ;;  %v2375_v30 = vpop.f32.mrb[103].mxu1  ;;  %v3788_v7 = vpop.eup %3787 }
 0x438   : > { %v5393_v4 = vpop.f32.mrb[112].mxu0  ;;  %v2155_v63 = vpop.xlane.xlu0 %2154  ;;  %v2790_v15 = vrot.slane %v3788_v7, %v5256_v41 }
 0x439   : > { %v3051_v57 = vpack.c.bf16 %v3037_v58, %v3036_v39  ;;  %v2413_v52 = vpop.f32.mrb[113].mxu0  ;;  %v2230_v26 = vpop.xlane.xlu1 %2229  ;;  %3799 = vrcp.f32 %v2155_v63 }
 0x43a   : > { %v5398_v32 = vpop.f32.mrb[114].mxu0  ;;  %v3790_v46 = vpop.eup %3789  ;;  %v2791_v3 = vsel %vm2691_vm8, %v2790_v15, %v2786_v35 }
 0x43b   : > { %v2416_v34 = vpop.f32.mrb[115].mxu0  ;;  %3348 = vmatpush3.bf16.msra.mxu1 %v3051_v57  ;;  %v3792_v13 = vpop.eup %3791  ;;  %v2795_v61 = vrot.slane %v3790_v46, %v5273_v9 }
 0x43c   : > { %v2158_v1 = vpop.xlane.xlu0 %2157  ;;  %3349 = vmatprep.subr.bf16.mxu1 %v3946_v17  ;;  %v3794_v12 = vpop.eup %3793  ;;  %v2800_v27 = vrot.slane %v3792_v13, %v5284_v23 }
 0x43d   : > { %3801 = vrcp.f32 %v2158_v1  ;;  %v2233_v48 = vpop.xlane.xlu1 %2232  ;;  %v3796_v39 = vpop.eup %3795  ;;  %v2805_v58 = vrot.slane %v3794_v12, %v5280_v19  ;;  %v2796_v57 = vsel %vm2698_vm9, %v2795_v61, %v2791_v3 }
 0x43e   : > { %v2801_v42 = vsel %vm2705_vm10, %v2800_v27, %v2796_v57 }
 0x43f   : > { %v3798_v30 = vpop.eup %3797  ;;  %v2806_v60 = vsel %vm2712_vm11, %v2805_v58, %v2801_v42 }
 0x440   : > { %v2161_v6 = vpop.xlane.xlu0 %2160  ;;  %v2815_v1 = vrot.slane %v3798_v30, %v5318_v33 }
 0x441   : > { %v5405_v38 = vpop.f32.mrb[116].mxu0  ;;  %3803 = vrcp.f32 %v2161_v6  ;;  %v2236_v25 = vpop.xlane.xlu1 %2235 }
 0x442   : > { %v2421_v5 = vpop.f32.mrb[117].mxu0 }
 0x443   : > { %v5408_v10 = vpop.f32.mrb[118].mxu0  ;;  %v3800_v63 = vpop.eup %3799 }
 0x444   : > { %v2424_v45 = vpop.f32.mrb[119].mxu0  ;;  %v2164_v43 = vpop.xlane.xlu0 %2163  ;;  %v2820_v59 = vrot.slane %v3800_v63, %v5343_v21 }
 0x445   : > { %3805 = vrcp.f32 %v2164_v43  ;;  %v2239_v37 = vpop.xlane.xlu1 %2238 }
 0x447   : > { %v3802_v52 = vpop.eup %3801 }
 0x448   : > { %v2167_v40 = vpop.xlane.xlu0 %2166 }
 0x449   : > { %3807 = vrcp.f32 %v2167_v40  ;;  %v2245_v35 = vpop.xlane.xlu1 %2244 }
 0x44a   : > { %3809 = vrcp.f32 %v5381_v56  ;;  %v2810_v56 = vrot.slane %v3796_v39, %v5307_v2 }
 0x44b   : > { %3811 = vrcp.f32 %v5385_v28  ;;  %v3804_v34 = vpop.eup %3803  ;;  %v2825_v28 = vrot.slane %v3802_v52, %v5355_v62 }
 0x44c   : > { %3813 = vrcp.f32 %v5390_v8  ;;  %v2218_v49 = vpop.xlane.xlu0 %2217  ;;  %v2811_v36 = vsel %vm2719_vm12, %v2810_v56, %v2806_v60  ;;  %v2830_v8 = vrot.slane %v3804_v34, %v5349_v18 }
 0x44d   : > { %3815 = vrcp.f32 %v2218_v49  ;;  %v2816_v22 = vsel %vm2726_vm13, %v2815_v1, %v2811_v36 }
 0x44e   : > { %3817 = vrcp.f32 %v2230_v26  ;;  %v2821_v50 = vsel %vm2733_vm14, %v2820_v59, %v2816_v22 }
 0x44f   : > { %v3806_v54 = vpop.eup %3805  ;;  %3819 = vrcp.f32 %v2233_v48  ;;  %v2826_v26 = vsel %vm2740_vm15, %v2825_v28, %v2821_v50 }
 0x450   : > { %v2835_v6 = vrot.slane %v3806_v54, %v5359_v20  ;;  %v2242_v5 = vpop.xlane.xlu0 %2241  ;;  %3821 = vrcp.f32 %v2236_v25  ;;  %v2831_v45 = vsel %vm2747_vm0, %v2830_v8, %v2826_v26 }
 0x451   : > { %3823 = vrcp.f32 %v5335_v0 }
 0x452   : > { %3825 = vrcp.f32 %v2239_v37  ;;  %v2836_v43 = vsel %vm2754_vm1, %v2835_v6, %v2831_v45 }
 0x453   : > { %v3808_v7 = vpop.eup %3807  ;;  %3827 = vrcp.f32 %v5352_v11 }
 0x454   : > { %v3810_v29 = vpop.eup %3809  ;;  %v2840_v46 = vrot.slane %v3808_v7, %v5363_v14  ;;  %v2248_v61 = vpop.xlane.xlu0 %2247  ;;  %3829 = vrcp.f32 %v2242_v5 }
 0x455   : > { %v3812_v48 = vpop.eup %3811  ;;  %v2928_v58 = vrot.slane %v3810_v29, %v5223_v53  ;;  %3831 = vrcp.f32 %v5369_v51 }
 0x456   : > { %v3814_v13 = vpop.eup %3813  ;;  %v2841_v12 = vsel %vm2761_vm2, %v2840_v46, %v2836_v43  ;;  %v2933_v25 = vrot.slane %v3812_v48, %v5232_v16  ;;  %3833 = vrcp.f32 %v5377_v47  ;;  %v2251_v16 = vpop.xlane.xlu1 %2250 }
 0x457   : > { %v3816_v15 = vpop.eup %3815  ;;  %v3038_v3 = vmul.f32 %v2841_v12, %v5393_v4  ;;  %v3039_v0 = vmul.f32 %v2841_v12, %v5398_v32  ;;  %v3040_v27 = vmul.f32 %v2841_v12, %v5405_v38  ;;  %v3041_v40 = vmul.f32 %v2841_v12, %v5408_v10 }
 0x458   : > { %v3818_v39 = vpop.eup %3817  ;;  %v2924_v30 = vrot.slane %v3816_v15, %v5220_v44  ;;  %v2938_v4 = vrot.slane %v3814_v13, %v5241_v31  ;;  %3835 = vrcp.f32 %v2245_v35  ;;  %v2254_v31 = vpop.xlane.xlu0 %2253 }
 0x459   : > { %v3820_v11 = vpop.eup %3819  ;;  %v3052_v63 = vpack.c.bf16 %v3039_v0, %v3038_v3  ;;  %v3053_v57 = vpack.c.bf16 %v3041_v40, %v3040_v27  ;;  %v2943_v38 = vrot.slane %v3818_v39, %v5247_v24  ;;  %3837 = vrcp.f32 %v2248_v61 }
 0x45a   : > { %v2929_v32 = vsel %vm2663_vm3, %v2928_v58, %v2924_v30  ;;  %v3822_v44 = vpop.eup %3821  ;;  %v2948_v10 = vrot.slane %v3820_v11, %v5256_v41  ;;  %3839 = vrcp.f32 %v2251_v16  ;;  %v2257_v56 = vpop.xlane.xlu1 %2256 }
 0x45b   : > { %v2934_v53 = vsel %vm2670_vm4, %v2933_v25, %v2929_v32  ;;  %3350 = vmatpush3.bf16.msra.mxu1 %v3052_v63  ;;  %v3824_v52 = vpop.eup %3823  ;;  %v2953_v49 = vrot.slane %v3822_v44, %v5273_v9  ;;  %3841 = vrcp.f32 %v2254_v31 }
 0x45c   : > { %v2939_v51 = vsel %vm2677_vm5, %v2938_v4, %v2934_v53  ;;  %3351 = vmatprep.subr.bf16.mxu1 %v3946_v17  ;;  %v3826_v24 = vpop.eup %3825  ;;  %v2260_v54 = vpop.xlane.xlu0 %2259  ;;  %v2904_v22 = vrot.slane %v3824_v52, %v5355_v62 }
 0x45d   : > { %v2944_v47 = vsel %vm2684_vm6, %v2943_v38, %v2939_v51  ;;  %v3828_v34 = vpop.eup %3827  ;;  %v2958_v1 = vrot.slane %v3826_v24, %v5284_v23  ;;  %3843 = vrcp.f32 %v2260_v54  ;;  %v3058_v54 = vld [vmem:[%s5556_s4] sm:$0xf] }
 0x45e   : > { %v2949_v42 = vsel %vm2691_vm8, %v2948_v10, %v2944_v47  ;;  %v3830_v60 = vpop.eup %3829  ;;  %v2909_v6 = vrot.slane %v3828_v34, %v5349_v18  ;;  %3845 = vrcp.f32 %v2257_v56  ;;  %v2263_v50 = vpop.xlane.xlu1 %2262 }
 0x45f   : > { %3352 = vmatpush3.bf16.msra.mxu1 %v3053_v57  ;;  %v2954_v41 = vsel %vm2698_vm9, %v2953_v49, %v2949_v42  ;;  %v3832_v59 = vpop.eup %3831  ;;  %v2963_v9 = vrot.slane %v3830_v60, %v5280_v19  ;;  %v2905_v19 = vsel %vm2740_vm15, %v2904_v22, %v5366_v55  ;;  %3847 = vrcp.f32 %v2263_v50 }
 0x460   : > { %3353 = vmatprep.subr.bf16.mxu1 %v3946_v17  ;;  %v3834_v28 = vpop.eup %3833  ;;  %v2959_v36 = vsel %vm2705_vm10, %v2958_v1, %v2954_v41  ;;  %v2914_v7 = vrot.slane %v3832_v59, %v5359_v20  ;;  %v2910_v48 = vsel %vm2747_vm0, %v2909_v6, %v2905_v19 }
 0x461   : > { %v2964_v5 = vsel %vm2712_vm11, %v2963_v9, %v2959_v36  ;;  %v2919_v29 = vrot.slane %v3834_v28, %v5363_v14 }
 0x462   : > { %v3836_v8 = vpop.eup %3835  ;;  %v2915_v13 = vsel %vm2754_vm1, %v2914_v7, %v2910_v48 }
 0x463   : > { %v3838_v37 = vpop.eup %3837  ;;  %v2968_v23 = vrot.slane %v3836_v8, %v5307_v2  ;;  %v2920_v35 = vsel %vm2761_vm2, %v2919_v29, %v2915_v13 }
 0x464   : > { %v2973_v26 = vrot.slane %v3838_v37, %v5318_v33  ;;  %v3840_v46 = vpop.eup %3839  ;;  %v3063_v28 = vpop.permute.xlu0 %3062 }
 0x465   : > { %v2969_v45 = vsel %vm2719_vm12, %v2968_v23, %v2964_v5  ;;  %v3842_v43 = vpop.eup %3841  ;;  %v2978_v33 = vrot.slane %v3840_v46, %v5343_v21 }
 0x466   : > { %v2974_v12 = vsel %vm2726_vm13, %v2973_v26, %v2969_v45  ;;  %v2983_v55 = vrot.slane %v3842_v43, %v5355_v62 }
 0x467   : > { %v3844_v0 = vpop.eup %3843  ;;  %v2979_v39 = vsel %vm2733_vm14, %v2978_v33, %v2974_v12 }
 0x468   : > { %v3846_v58 = vpop.eup %3845  ;;  %v2984_v11 = vsel %vm2740_vm15, %v2983_v55, %v2979_v39  ;;  %v2993_v25 = vrot.slane %v3844_v0, %v5359_v20 }
 0x469   : > { %v2988_v63 = vrot.slane %v3846_v58, %v5349_v18  ;;  %v3848_v21 = vpop.eup %3847 }
 0x46a   : > { %v2998_v16 = vrot.slane %v3848_v21, %v5363_v14 }
 0x46b   : > { %v2989_v32 = vsel %vm2747_vm0, %v2988_v63, %v2984_v11 }
 0x46c   : > { %v2460_v2 = vpop.f32.mrb[104].mxu1  ;;  %v2994_v53 = vsel %vm2754_vm1, %v2993_v25, %v2989_v32 }
 0x46d   : > { %v3042_v15 = vmul.f32 %v2920_v35, %v2460_v2  ;;  %v2462_v61 = vpop.f32.mrb[105].mxu1  ;;  %v2999_v18 = vsel %vm2761_vm2, %v2998_v16, %v2994_v53 }
 0x46e   : > { %v2463_v3 = vpop.f32.mrb[106].mxu1 }
 0x46f   : > { %v3043_v27 = vmul.f32 %v2920_v35, %v2463_v3  ;;  %v2465_v40 = vpop.f32.mrb[107].mxu1 }
 0x471   : > { %v3054_v30 = vpack.c.bf16 %v3043_v27, %v3042_v15 }
 0x473   : > { %3354 = vmatpush3.bf16.msra.mxu1 %v3054_v30 }
 0x474   : > { %v2468_v57 = vpop.f32.mrb[108].mxu1  ;;  %3355 = vmatprep.subr.bf16.mxu1 %v3946_v17 }
 0x475   : > { %v3044_v62 = vmul.f32 %v2920_v35, %v2468_v57  ;;  %v2470_v4 = vpop.f32.mrb[109].mxu1 }
 0x476   : > { %v2471_v38 = vpop.f32.mrb[110].mxu1 }
 0x477   : > { %v3045_v44 = vmul.f32 %v2920_v35, %v2471_v38  ;;  %v2473_v10 = vpop.f32.mrb[111].mxu1 }
 0x479   : > { %v2509_v51 = vpop.f32.mrb[120].mxu0  ;;  %v3055_v47 = vpack.c.bf16 %v3045_v44, %v3044_v62 }
 0x47a   : > { %v2511_v20 = vpop.f32.mrb[121].mxu0  ;;  %v3046_v52 = vmul.f32 %v2999_v18, %v2509_v51 }
 0x47b   : > { %v2512_v31 = vpop.f32.mrb[122].mxu0  ;;  %3356 = vmatpush3.bf16.msra.mxu1 %v3055_v47 }
 0x47c   : > { %v3047_v42 = vmul.f32 %v2999_v18, %v2512_v31  ;;  %v2514_v24 = vpop.f32.mrb[123].mxu0  ;;  %3357 = vmatprep.subr.bf16.mxu1 %v3946_v17 }
 0x47e   : > { %v3056_v49 = vpack.c.bf16 %v3047_v42, %v3046_v52 }
 0x480   : > { %3358 = vmatpush3.bf16.msra.mxu1 %v3056_v49 }
 0x481   : > { %v2517_v34 = vpop.f32.mrb[124].mxu0  ;;  %3359 = vmatprep.subr.bf16.mxu1 %v3946_v17 }
 0x482   : > { %v2519_v41 = vpop.f32.mrb[125].mxu0  ;;  %v3048_v60 = vmul.f32 %v2999_v18, %v2517_v34 }
 0x483   : > { %v2520_v14 = vpop.f32.mrb[126].mxu0 }
 0x484   : > { %v3049_v1 = vmul.f32 %v2999_v18, %v2520_v14  ;;  %v2522_v56 = vpop.f32.mrb[127].mxu0 }
 0x486   : > { %v3057_v59 = vpack.c.bf16 %v3049_v1, %v3048_v60 }
 0x488   : > { %3360 = vmatpush3.bf16.msra.mxu1 %v3057_v59 }
 0x48b   : > { %3362 = vmatmul.mubr.bf16.vlgmr.msra.gmra.mrb[112].mxu1 %v3058_v54 }
 0x55e   : > { %v3099_v17 = vpop.f32.mrb[112].mxu1 }
 0x55f   : > { %v3100_v36 = vadd.f32 %v3099_v17, %v3063_v28  ;;  %v3363_v8 = vpop.f32.mrb[113].mxu1 }
 0x560   : > { %v3102_v9 = vpop.f32.mrb[114].mxu1 }
 0x561   : > { %3105 = vst [vmem:[%s281_s12] sm:$0xff] %v3100_v36  ;;  %v3364_v37 = vpop.f32.mrb[115].mxu1 }
 0x562   : > { %3862 = shalt.err (!%p3859_p7)
}
 0x563   : > { %s3863_s20 = scalar_lea.hbm %s5499_s17, 128  ;;  %s3867_s8 = scalar_lea.hbm %s5558_s6, 512 }
 0x564   : > { %p3864_p9 = scmp.ne.s32.totalorder %s5499_s17, %s3863_s20  ;;  %p3868_p12 = scmp.lt.u32.totalorder %s5499_s17, %s5558_s6 }
 0x565   : > { %p3869_p13 = scmp.lt.u32.totalorder %s3867_s8, %s3863_s20  ;;  %p3871_p1 = scmp.lt.u32.totalorder %s3863_s20, %s5499_s17 }
 0x566   : > { %p3865_p10 = pnand %p3864_p9, %p4035_p3 }
 0x567   : > { %p3870_p0 = por %p3869_p13, %p3868_p12 }
 0x568   : > { %p3866_p11 = pneg %p3865_p10 }
 0x569   : > { %p3872_p2 = por %p3871_p1, %p3870_p0 }
 0x56b   : > { %p3873_p4 = pnand %p3872_p2, %p3866_p11 }
 0x56d   : > { %3876 = shalt.err (!%p3873_p4)
}
 0x56e   : > { %3366 = dma.vmem_to_hbm [thread:$0]  (%p4035_p3), %s5501_s13, 128, %s5499_s17, %s3107_s24  }
 0x56f PF: > { %p3372_p5 = scmp.ge.s32.totalorder %s3943_s28, 2  ;;  %s3134_s16 = sand.u32 1, %s3915_s21  }
 0x570   : > { %s3135_s25 = scalar_lea.sflag [#allocation3], %s3134_s16 }
 0x571   : > { %p3369_p6 = pnand %p3372_p5, %p4044_p8 }
 0x573   : > { %3910 = dma.done.wait (!%p3369_p6), %s3135_s25, 128  }
 0x574   : > { %3912 = vsyncadd (!%p3369_p6), %s3135_s25, 4294967168  ;;  %s19_s28 = sadd.s32 1, %s3943_s28   ;;  %s5933_s10 = sld [smem:[#allocation5_spill]] }
 0x575   : > { %p16_p7 = scmp.ge.s32.totalorder %s19_s28, 6   ;;  %s5934_s21 = smov %s3919_s22 }
 0x576   : > { %s5935_s22 = smov %s3923_s23  ;;  %s5936_s23 = smov %s4053_s15 }
 0x577   : > { %s5937_s24 = smov %s3935_s26  ;;  %s5938_s25 = smov %s3939_s27 }
 0x578   : > { %s5939_s26 = smov %s5942_s7  ;;  %18 = sbr.rel (!%p16_p7) target bundleno = 5 (0x5), region = 82 }
 0x57a   : > { %s5940_s27 = smov %s5933_s10 }
 0x57f   :  { %3140 = vsyncpa [#allocation3], 1 }
 0x580   :  { %3142 = vsyncpa [#allocation3 + $0x1], 1 }

</bundles_post_ra>
